<compile_context>
chip_gen: v7x
topology: tpu7x:2x2x1
jax: 0.10.0
libtpu: 0.0.40
codegen_flags: <defaults>
</compile_context>

<pallas_src>
import functools

import numpy as np
import jax
import jax.numpy as jnp
from jax import lax
from jax.experimental import pallas as pl
from jax.experimental.pallas import tpu as pltpu

UNKNOWN_CLS_IDX = 1
KSIZE = 7
SIGMA = 1.0
PAD = KSIZE // 2


# ---------------------------------------------------------------------------
# Host-side constants: 1-D Gaussian and reflect-padded band matrices
# ---------------------------------------------------------------------------
def _gauss_1d():
    c = KSIZE // 2
    xs = np.arange(KSIZE, dtype=np.float64) - c
    g = np.exp(-(xs * xs) / (2.0 * SIGMA ** 2))
    return g / g.sum()


def _reflect_index(q, n):
    if q < 0:
        return -q
    if q >= n:
        return 2 * (n - 1) - q
    return q


def _band_matrix(n):
    """band[i, o] = weight of input position i in blurred output o (reflect pad)."""
    g = _gauss_1d()
    band = np.zeros((n, n), np.float64)
    for o in range(n):
        for k in range(KSIZE):
            i = _reflect_index(o - PAD + k, n)
            band[i, o] += g[k]
    return band


def _gauss_3d_kernel():
    # Built exactly as the torch reference builds it (for the pure-JAX reference).
    c = KSIZE // 2
    var = SIGMA ** 2
    ker = np.zeros((KSIZE, KSIZE, KSIZE), np.float32)
    for i in range(KSIZE):
        for j in range(KSIZE):
            for k in range(KSIZE):
                x, y, z = i - c, j - c, k - c
                ker[i, j, k] = (1.0 / (2.0 * np.pi * var) ** 0.5
                                * np.exp(-(x ** 2 + y ** 2 + z ** 2) / (2.0 * var)))
    ker /= ker.sum()
    return ker


# ---------------------------------------------------------------------------
# Fused per-batch kernel
# ---------------------------------------------------------------------------
def _gambler_kernel(pred_ref, tgt_ref, bw_ref, bht_ref, out_ref,
                    *, unk, novel_class_list, num_classes, fuse_dh):
    C = num_classes
    restricted = [c for c in range(1, C) if c != unk]
    f32 = jnp.float32
    _, D, H, W = tgt_ref.shape

    # shifted targets -> true_pred channel index per voxel.
    # (Out-of-range indices fall through to the 1e-7 clamp below instead of
    #  being clamped to the last channel like take_along_axis -- only differs
    #  for malformed targets.)
    t = tgt_ref[0]                                        # (D, H, W) int32
    shifted = t
    for n_cls in tuple(novel_class_list)[::-1]:
        shifted = shifted - (shifted > n_cls).astype(shifted.dtype)

    # Softmax statistics over channels 1..C-1 (channel 0 is forced to -99999
    # by the reference -> exp == 0 in f32, so it is simply skipped), fused
    # with the per-voxel gather of the target channel's numerator.
    x_unk = pred_ref[0, unk].astype(f32)                  # (D, H, W)
    m_r = pred_ref[0, restricted[0]].astype(f32)          # restricted max
    for c in restricted[1:]:
        m_r = jnp.maximum(m_r, pred_ref[0, c].astype(f32))
    m = jnp.maximum(m_r, x_unk)                           # max over channels 1..C-1

    s_r = jnp.zeros_like(m)                               # restricted sum (!=0, !=unk)
    gathered_e = jnp.zeros_like(m)
    for c in restricted:
        e_c = jnp.exp(pred_ref[0, c].astype(f32) - m)
        s_r = s_r + e_c
        j = c if c < unk else c - 1                       # prob channel -> true_pred channel
        gathered_e = jnp.where(shifted == j, e_c, gathered_e)
    e_unk = jnp.exp(x_unk - m)

    inv_s = pl.reciprocal(s_r + e_unk)                    # one exact reciprocal / voxel
    resv = jnp.maximum(e_unk * inv_s, f32(1e-7))          # clamp(softmax)[unk]
    # shifted == 0 keeps gathered_e == 0 -> clamp gives 1e-7, matching
    # clamp(softmax of -99999) for true_pred channel 0 (masked out anyway).
    gathered = jnp.maximum(gathered_e * inv_s, f32(1e-7))

    # Pre-blur reward = logsumexp(channels != 0, != unk)^2.  s_r is its own
    # accumulator (no s - e_unk cancellation); if it underflows because the
    # unk logit dominates by > ~88 nats, fall back to the restricted max.
    lse = jnp.where(s_r > 0.0, m + jnp.log(s_r), m_r)
    rew = lse * lse                                       # (D, H, W) f32

    # ---- separable 7^3 reflect-padded Gaussian blur -----------------------
    g = [float(v) for v in _gauss_1d()]

    # D axis: reflect-pad along the untiled leading axis, 7 shifted slab FMAs.
    rpad = jnp.concatenate(
        [rew[3:4], rew[2:3], rew[1:2], rew,
         rew[D - 2:D - 1], rew[D - 3:D - 2], rew[D - 4:D - 3]], axis=0)
    rd = g[0] * rpad[0:D]
    for k in range(1, KSIZE):
        rd = rd + g[k] * rpad[k:k + D]                    # (D, H, W)

    # W axis: one lane-axis contraction on the MXU with M = D*H rows
    # (layout no-op reshape when H % 8 == 0; otherwise done per depth slab).
    rw = None
    if fuse_dh:
        rw = jnp.dot(rd.reshape(D * H, W), bw_ref[...],
                     preferred_element_type=f32).reshape(D, H, W)

    # H axis: per-depth-slab (H, H) @ (H, W) matmuls, fused with the loss
    # reduction so the blurred reward is never re-materialized.
    acc = jnp.zeros((H, W), f32)
    for d in range(D):
        if fuse_dh:
            slab = rw[d]
        else:
            slab = jnp.dot(rd[d], bw_ref[...], preferred_element_type=f32)
        blur_d = jnp.dot(bht_ref[...], slab, preferred_element_type=f32)
        vals_d = jnp.log(gathered[d]
                         + resv[d] * pl.reciprocal(blur_d, approx=True))
        acc = acc + jnp.where(t[d] != 0, vals_d, f32(0.0))

    psum = jnp.sum(acc)
    pcnt = jnp.sum((t != 0).astype(f32))

    # Merged (1, 1, 2) output block: [partial sum, valid-voxel count].
    lane = lax.broadcasted_iota(jnp.int32, (1, 1, 2), 2)
    out_ref[...] = jnp.where(lane == 0, psum, pcnt)


# ---------------------------------------------------------------------------
# Wrapper
# ---------------------------------------------------------------------------
def gambler_loss(pred, targets, *, unknown_cls_idx=UNKNOWN_CLS_IDX,
                 novel_class_list=(12, 13, 14, 15)):
    B, C, D, H, W = pred.shape
    assert 1 <= unknown_cls_idx < C
    assert C >= 3, "need at least one channel besides channel 0 and unknown"
    assert min(D, H, W) > PAD, "reflect padding needs spatial dims > 3"

    tgt = jnp.asarray(targets, dtype=jnp.int32)

    band_w = jnp.asarray(_band_matrix(W), dtype=jnp.float32)        # [in, out]
    band_h_t = jnp.asarray(_band_matrix(H).T, dtype=jnp.float32)    # [out, in]

    fuse_dh = (H % 8) == 0   # (D, H, W) -> (D*H, W) reshape is a layout no-op

    kern = functools.partial(
        _gambler_kernel, unk=unknown_cls_idx,
        novel_class_list=tuple(int(n) for n in novel_class_list),
        num_classes=C, fuse_dh=fuse_dh)

    # VMEM budget derived from the actual block bytes (double-buffered pred /
    # targets, band constants, ~14 live (D,H,W) f32 temporaries) + margin.
    pred_block = C * D * H * W * pred.dtype.itemsize
    tgt_block = D * H * W * 4
    const_bytes = (W * W + H * H) * 4
    scratch = 14 * D * H * W * 4
    need = 2 * (pred_block + tgt_block) + 2 * const_bytes + scratch + (4 << 20)
    vmem_limit = int(min(max(need, 32 << 20), 100 << 20))

    out = pl.pallas_call(
        kern,
        grid=(B,),
        in_specs=[pl.BlockSpec((1, C, D, H, W), lambda b: (b, 0, 0, 0, 0)),
                  pl.BlockSpec((1, D, H, W), lambda b: (b, 0, 0, 0)),
                  pl.BlockSpec((W, W), lambda b: (0, 0)),
                  pl.BlockSpec((H, H), lambda b: (0, 0))],
        out_specs=pl.BlockSpec((1, 1, 2), lambda b: (b, 0, 0)),
        out_shape=jax.ShapeDtypeStruct((B, 1, 2), jnp.float32),
        compiler_params=pltpu.CompilerParams(
            dimension_semantics=("parallel",),   # B >= 2 keeps both v7x TCs busy
            vmem_limit_bytes=vmem_limit),
    )(pred, tgt, band_w, band_h_t)

    # Tiny JAX epilogue: global -(sum / count) over the per-batch partials.
    return -(jnp.sum(out[:, 0, 0]) / jnp.sum(out[:, 0, 1]))


# ---------------------------------------------------------------------------
# Pure-JAX reference (mirrors the torch forward, wrong_sample=False)
# ---------------------------------------------------------------------------
def gambler_loss_ref(pred, targets, unknown_cls_idx=UNKNOWN_CLS_IDX,
                     novel_class_list=(12, 13, 14, 15)):
    pred = pred.astype(jnp.float32)
    pred = pred.at[:, 0].set(-99999.0)
    prob = jax.nn.softmax(pred, axis=1)
    prob = jnp.maximum(prob, 1e-7)
    true_pred = jnp.concatenate(
        [prob[:, :unknown_cls_idx], prob[:, unknown_cls_idx + 1:]], axis=1)
    reservation = prob[:, unknown_cls_idx:unknown_cls_idx + 1]
    rest = jnp.concatenate(
        [pred[:, 1:unknown_cls_idx], pred[:, unknown_cls_idx + 1:]], axis=1)
    reward = jax.nn.logsumexp(rest, axis=1) ** 2           # [B, D, H, W]
    rpad = jnp.pad(reward, ((0, 0), (PAD, PAD), (PAD, PAD), (PAD, PAD)),
                   mode="reflect")
    ker = jnp.asarray(_gauss_3d_kernel())
    blurred = lax.conv_general_dilated(
        rpad[:, None], ker[None, None], window_strides=(1, 1, 1),
        padding="VALID", dimension_numbers=("NCDHW", "OIDHW", "NCDHW"))
    resv = reservation / blurred
    tgt = targets.astype(jnp.int32)[:, None]
    shifted = tgt
    for n in list(novel_class_list)[::-1]:
        shifted = shifted - (shifted > n).astype(jnp.int32)
    gathered = jnp.take_along_axis(true_pred, shifted, axis=1)
    gl = jnp.log(gathered + resv)
    mask = tgt == 0
    return -(jnp.sum(jnp.where(mask, 0.0, gl))
             / jnp.sum((~mask).astype(jnp.float32)))


if __name__ == "__main__":
    key = jax.random.PRNGKey(0)
    k1, k2 = jax.random.split(key)
    B, C, D, H, W = 2, 16, 8, 8, 8          # pred: [B, C, D, H, W], targets: [B, D, H, W]
    pred = jax.random.normal(k1, (B, C, D, H, W), dtype=jnp.float32)
    targets = jax.random.randint(k2, (B, D, H, W), 0, C, dtype=jnp.int32)

    loss = gambler_loss(pred, targets)
    loss = jax.block_until_ready(loss)

    ref = gambler_loss_ref(pred, targets)
    assert jnp.isfinite(loss), "kernel produced non-finite loss"
    assert abs(float(loss) - float(ref)) < 1e-3 * max(1.0, abs(float(ref))), \
        (float(loss), float(ref))
    print("KERNEL_OK")
</pallas_src>

<mosaic_0001>
module attributes {stable_mosaic.version = 11 : i64} {
  func.func @_gambler_kernel(%arg0: i32, %arg1: memref<1x16x8x8x8xf32, #tpu.memory_space<vmem>>, %arg2: memref<1x8x8x8xi32, #tpu.memory_space<vmem>>, %arg3: memref<8x8xf32, #tpu.memory_space<vmem>>, %arg4: memref<8x8xf32, #tpu.memory_space<vmem>>, %arg5: memref<1x1x2xf32, #tpu.memory_space<vmem>>) attributes {dimension_semantics = [#tpu.dimension_semantics<parallel>], iteration_bounds = array<i64: 2>, scalar_prefetch = 0 : i64, scratch_operands = 0 : i64, tpu.core_type = #tpu.core_type<tc>, window_params = [{transform_indices = @transform_0, window_bounds = array<i64: 1, 16, 8, 8, 8>}, {transform_indices = @transform_1, window_bounds = array<i64: 1, 8, 8, 8>}, {pipeline_mode = #tpu.pipeline_mode<synchronous>, transform_indices = @transform_2, window_bounds = array<i64: 8, 8>}, {pipeline_mode = #tpu.pipeline_mode<synchronous>, transform_indices = @transform_3, window_bounds = array<i64: 8, 8>}, {transform_indices = @transform_4, window_bounds = array<i64: 1, 1, 2>}]} {
    %c0 = arith.constant 0 : index
    %c0_0 = arith.constant 0 : index
    %c0_1 = arith.constant 0 : index
    %c0_2 = arith.constant 0 : index
    %0 = vector.load %arg2[%c0, %c0_0, %c0_1, %c0_2] : memref<1x8x8x8xi32, #tpu.memory_space<vmem>>, vector<1x8x8x8xi32>
    %1 = vector.shape_cast %0 : vector<1x8x8x8xi32> to vector<8x8x8xi32>
    %c15_i32 = arith.constant 15 : i32
    %2 = vector.broadcast %c15_i32 : i32 to vector<8x8x8xi32>
    %3 = arith.cmpi sgt, %1, %2 : vector<8x8x8xi32>
    %4 = arith.extui %3 : vector<8x8x8xi1> to vector<8x8x8xi32>
    %5 = arith.subi %1, %4 : vector<8x8x8xi32>
    %c14_i32 = arith.constant 14 : i32
    %6 = vector.broadcast %c14_i32 : i32 to vector<8x8x8xi32>
    %7 = arith.cmpi sgt, %5, %6 : vector<8x8x8xi32>
    %8 = arith.extui %7 : vector<8x8x8xi1> to vector<8x8x8xi32>
    %9 = arith.subi %5, %8 : vector<8x8x8xi32>
    %c13_i32 = arith.constant 13 : i32
    %10 = vector.broadcast %c13_i32 : i32 to vector<8x8x8xi32>
    %11 = arith.cmpi sgt, %9, %10 : vector<8x8x8xi32>
    %12 = arith.extui %11 : vector<8x8x8xi1> to vector<8x8x8xi32>
    %13 = arith.subi %9, %12 : vector<8x8x8xi32>
    %c12_i32 = arith.constant 12 : i32
    %14 = vector.broadcast %c12_i32 : i32 to vector<8x8x8xi32>
    %15 = arith.cmpi sgt, %13, %14 : vector<8x8x8xi32>
    %16 = arith.extui %15 : vector<8x8x8xi1> to vector<8x8x8xi32>
    %17 = arith.subi %13, %16 : vector<8x8x8xi32>
    %c0_3 = arith.constant 0 : index
    %c1 = arith.constant 1 : index
    %c0_4 = arith.constant 0 : index
    %c0_5 = arith.constant 0 : index
    %c0_6 = arith.constant 0 : index
    %18 = vector.load %arg1[%c0_3, %c1, %c0_4, %c0_5, %c0_6] : memref<1x16x8x8x8xf32, #tpu.memory_space<vmem>>, vector<1x1x8x8x8xf32>
    %19 = vector.shape_cast %18 : vector<1x1x8x8x8xf32> to vector<8x8x8xf32>
    %c0_7 = arith.constant 0 : index
    %c2 = arith.constant 2 : index
    %c0_8 = arith.constant 0 : index
    %c0_9 = arith.constant 0 : index
    %c0_10 = arith.constant 0 : index
    %20 = vector.load %arg1[%c0_7, %c2, %c0_8, %c0_9, %c0_10] : memref<1x16x8x8x8xf32, #tpu.memory_space<vmem>>, vector<1x1x8x8x8xf32>
    %21 = vector.shape_cast %20 : vector<1x1x8x8x8xf32> to vector<8x8x8xf32>
    %c0_11 = arith.constant 0 : index
    %c3 = arith.constant 3 : index
    %c0_12 = arith.constant 0 : index
    %c0_13 = arith.constant 0 : index
    %c0_14 = arith.constant 0 : index
    %22 = vector.load %arg1[%c0_11, %c3, %c0_12, %c0_13, %c0_14] : memref<1x16x8x8x8xf32, #tpu.memory_space<vmem>>, vector<1x1x8x8x8xf32>
    %23 = vector.shape_cast %22 : vector<1x1x8x8x8xf32> to vector<8x8x8xf32>
    %24 = arith.maximumf %21, %23 : vector<8x8x8xf32>
    %c0_15 = arith.constant 0 : index
    %c4 = arith.constant 4 : index
    %c0_16 = arith.constant 0 : index
    %c0_17 = arith.constant 0 : index
    %c0_18 = arith.constant 0 : index
    %25 = vector.load %arg1[%c0_15, %c4, %c0_16, %c0_17, %c0_18] : memref<1x16x8x8x8xf32, #tpu.memory_space<vmem>>, vector<1x1x8x8x8xf32>
    %26 = vector.shape_cast %25 : vector<1x1x8x8x8xf32> to vector<8x8x8xf32>
    %27 = arith.maximumf %24, %26 : vector<8x8x8xf32>
    %c0_19 = arith.constant 0 : index
    %c5 = arith.constant 5 : index
    %c0_20 = arith.constant 0 : index
    %c0_21 = arith.constant 0 : index
    %c0_22 = arith.constant 0 : index
    %28 = vector.load %arg1[%c0_19, %c5, %c0_20, %c0_21, %c0_22] : memref<1x16x8x8x8xf32, #tpu.memory_space<vmem>>, vector<1x1x8x8x8xf32>
    %29 = vector.shape_cast %28 : vector<1x1x8x8x8xf32> to vector<8x8x8xf32>
    %30 = arith.maximumf %27, %29 : vector<8x8x8xf32>
    %c0_23 = arith.constant 0 : index
    %c6 = arith.constant 6 : index
    %c0_24 = arith.constant 0 : index
    %c0_25 = arith.constant 0 : index
    %c0_26 = arith.constant 0 : index
    %31 = vector.load %arg1[%c0_23, %c6, %c0_24, %c0_25, %c0_26] : memref<1x16x8x8x8xf32, #tpu.memory_space<vmem>>, vector<1x1x8x8x8xf32>
    %32 = vector.shape_cast %31 : vector<1x1x8x8x8xf32> to vector<8x8x8xf32>
    %33 = arith.maximumf %30, %32 : vector<8x8x8xf32>
    %c0_27 = arith.constant 0 : index
    %c7 = arith.constant 7 : index
    %c0_28 = arith.constant 0 : index
    %c0_29 = arith.constant 0 : index
    %c0_30 = arith.constant 0 : index
    %34 = vector.load %arg1[%c0_27, %c7, %c0_28, %c0_29, %c0_30] : memref<1x16x8x8x8xf32, #tpu.memory_space<vmem>>, vector<1x1x8x8x8xf32>
    %35 = vector.shape_cast %34 : vector<1x1x8x8x8xf32> to vector<8x8x8xf32>
    %36 = arith.maximumf %33, %35 : vector<8x8x8xf32>
    %c0_31 = arith.constant 0 : index
    %c8 = arith.constant 8 : index
    %c0_32 = arith.constant 0 : index
    %c0_33 = arith.constant 0 : index
    %c0_34 = arith.constant 0 : index
    %37 = vector.load %arg1[%c0_31, %c8, %c0_32, %c0_33, %c0_34] : memref<1x16x8x8x8xf32, #tpu.memory_space<vmem>>, vector<1x1x8x8x8xf32>
    %38 = vector.shape_cast %37 : vector<1x1x8x8x8xf32> to vector<8x8x8xf32>
    %39 = arith.maximumf %36, %38 : vector<8x8x8xf32>
    %c0_35 = arith.constant 0 : index
    %c9 = arith.constant 9 : index
    %c0_36 = arith.constant 0 : index
    %c0_37 = arith.constant 0 : index
    %c0_38 = arith.constant 0 : index
    %40 = vector.load %arg1[%c0_35, %c9, %c0_36, %c0_37, %c0_38] : memref<1x16x8x8x8xf32, #tpu.memory_space<vmem>>, vector<1x1x8x8x8xf32>
    %41 = vector.shape_cast %40 : vector<1x1x8x8x8xf32> to vector<8x8x8xf32>
    %42 = arith.maximumf %39, %41 : vector<8x8x8xf32>
    %c0_39 = arith.constant 0 : index
    %c10 = arith.constant 10 : index
    %c0_40 = arith.constant 0 : index
    %c0_41 = arith.constant 0 : index
    %c0_42 = arith.constant 0 : index
    %43 = vector.load %arg1[%c0_39, %c10, %c0_40, %c0_41, %c0_42] : memref<1x16x8x8x8xf32, #tpu.memory_space<vmem>>, vector<1x1x8x8x8xf32>
    %44 = vector.shape_cast %43 : vector<1x1x8x8x8xf32> to vector<8x8x8xf32>
    %45 = arith.maximumf %42, %44 : vector<8x8x8xf32>
    %c0_43 = arith.constant 0 : index
    %c11 = arith.constant 11 : index
    %c0_44 = arith.constant 0 : index
    %c0_45 = arith.constant 0 : index
    %c0_46 = arith.constant 0 : index
    %46 = vector.load %arg1[%c0_43, %c11, %c0_44, %c0_45, %c0_46] : memref<1x16x8x8x8xf32, #tpu.memory_space<vmem>>, vector<1x1x8x8x8xf32>
    %47 = vector.shape_cast %46 : vector<1x1x8x8x8xf32> to vector<8x8x8xf32>
    %48 = arith.maximumf %45, %47 : vector<8x8x8xf32>
    %c0_47 = arith.constant 0 : index
    %c12 = arith.constant 12 : index
    %c0_48 = arith.constant 0 : index
    %c0_49 = arith.constant 0 : index
    %c0_50 = arith.constant 0 : index
    %49 = vector.load %arg1[%c0_47, %c12, %c0_48, %c0_49, %c0_50] : memref<1x16x8x8x8xf32, #tpu.memory_space<vmem>>, vector<1x1x8x8x8xf32>
    %50 = vector.shape_cast %49 : vector<1x1x8x8x8xf32> to vector<8x8x8xf32>
    %51 = arith.maximumf %48, %50 : vector<8x8x8xf32>
    %c0_51 = arith.constant 0 : index
    %c13 = arith.constant 13 : index
    %c0_52 = arith.constant 0 : index
    %c0_53 = arith.constant 0 : index
    %c0_54 = arith.constant 0 : index
    %52 = vector.load %arg1[%c0_51, %c13, %c0_52, %c0_53, %c0_54] : memref<1x16x8x8x8xf32, #tpu.memory_space<vmem>>, vector<1x1x8x8x8xf32>
    %53 = vector.shape_cast %52 : vector<1x1x8x8x8xf32> to vector<8x8x8xf32>
    %54 = arith.maximumf %51, %53 : vector<8x8x8xf32>
    %c0_55 = arith.constant 0 : index
    %c14 = arith.constant 14 : index
    %c0_56 = arith.constant 0 : index
    %c0_57 = arith.constant 0 : index
    %c0_58 = arith.constant 0 : index
    %55 = vector.load %arg1[%c0_55, %c14, %c0_56, %c0_57, %c0_58] : memref<1x16x8x8x8xf32, #tpu.memory_space<vmem>>, vector<1x1x8x8x8xf32>
    %56 = vector.shape_cast %55 : vector<1x1x8x8x8xf32> to vector<8x8x8xf32>
    %57 = arith.maximumf %54, %56 : vector<8x8x8xf32>
    %c0_59 = arith.constant 0 : index
    %c15 = arith.constant 15 : index
    %c0_60 = arith.constant 0 : index
    %c0_61 = arith.constant 0 : index
    %c0_62 = arith.constant 0 : index
    %58 = vector.load %arg1[%c0_59, %c15, %c0_60, %c0_61, %c0_62] : memref<1x16x8x8x8xf32, #tpu.memory_space<vmem>>, vector<1x1x8x8x8xf32>
    %59 = vector.shape_cast %58 : vector<1x1x8x8x8xf32> to vector<8x8x8xf32>
    %60 = arith.maximumf %57, %59 : vector<8x8x8xf32>
    %61 = arith.maximumf %60, %19 : vector<8x8x8xf32>
    %cst = arith.constant 0.000000e+00 : f32
    %62 = vector.broadcast %cst : f32 to vector<8x8x8xf32>
    %cst_63 = arith.constant 0.000000e+00 : f32
    %63 = vector.broadcast %cst_63 : f32 to vector<8x8x8xf32>
    %c0_64 = arith.constant 0 : index
    %c2_65 = arith.constant 2 : index
    %c0_66 = arith.constant 0 : index
    %c0_67 = arith.constant 0 : index
    %c0_68 = arith.constant 0 : index
    %64 = vector.load %arg1[%c0_64, %c2_65, %c0_66, %c0_67, %c0_68] : memref<1x16x8x8x8xf32, #tpu.memory_space<vmem>>, vector<1x1x8x8x8xf32>
    %65 = vector.shape_cast %64 : vector<1x1x8x8x8xf32> to vector<8x8x8xf32>
    %66 = arith.subf %65, %61 : vector<8x8x8xf32>
    %67 = math.exp %66 : vector<8x8x8xf32>
    %68 = arith.addf %62, %67 : vector<8x8x8xf32>
    %c1_i32 = arith.constant 1 : i32
    %69 = vector.broadcast %c1_i32 : i32 to vector<8x8x8xi32>
    %70 = arith.cmpi eq, %17, %69 : vector<8x8x8xi32>
    %71 = arith.select %70, %67, %63 : vector<8x8x8xi1>, vector<8x8x8xf32>
    %c0_69 = arith.constant 0 : index
    %c3_70 = arith.constant 3 : index
    %c0_71 = arith.constant 0 : index
    %c0_72 = arith.constant 0 : index
    %c0_73 = arith.constant 0 : index
    %72 = vector.load %arg1[%c0_69, %c3_70, %c0_71, %c0_72, %c0_73] : memref<1x16x8x8x8xf32, #tpu.memory_space<vmem>>, vector<1x1x8x8x8xf32>
    %73 = vector.shape_cast %72 : vector<1x1x8x8x8xf32> to vector<8x8x8xf32>
    %74 = arith.subf %73, %61 : vector<8x8x8xf32>
    %75 = math.exp %74 : vector<8x8x8xf32>
    %76 = arith.addf %68, %75 : vector<8x8x8xf32>
    %c2_i32 = arith.constant 2 : i32
    %77 = vector.broadcast %c2_i32 : i32 to vector<8x8x8xi32>
    %78 = arith.cmpi eq, %17, %77 : vector<8x8x8xi32>
    %79 = arith.select %78, %75, %71 : vector<8x8x8xi1>, vector<8x8x8xf32>
    %c0_74 = arith.constant 0 : index
    %c4_75 = arith.constant 4 : index
    %c0_76 = arith.constant 0 : index
    %c0_77 = arith.constant 0 : index
    %c0_78 = arith.constant 0 : index
    %80 = vector.load %arg1[%c0_74, %c4_75, %c0_76, %c0_77, %c0_78] : memref<1x16x8x8x8xf32, #tpu.memory_space<vmem>>, vector<1x1x8x8x8xf32>
    %81 = vector.shape_cast %80 : vector<1x1x8x8x8xf32> to vector<8x8x8xf32>
    %82 = arith.subf %81, %61 : vector<8x8x8xf32>
    %83 = math.exp %82 : vector<8x8x8xf32>
    %84 = arith.addf %76, %83 : vector<8x8x8xf32>
    %c3_i32 = arith.constant 3 : i32
    %85 = vector.broadcast %c3_i32 : i32 to vector<8x8x8xi32>
    %86 = arith.cmpi eq, %17, %85 : vector<8x8x8xi32>
    %87 = arith.select %86, %83, %79 : vector<8x8x8xi1>, vector<8x8x8xf32>
    %c0_79 = arith.constant 0 : index
    %c5_80 = arith.constant 5 : index
    %c0_81 = arith.constant 0 : index
    %c0_82 = arith.constant 0 : index
    %c0_83 = arith.constant 0 : index
    %88 = vector.load %arg1[%c0_79, %c5_80, %c0_81, %c0_82, %c0_83] : memref<1x16x8x8x8xf32, #tpu.memory_space<vmem>>, vector<1x1x8x8x8xf32>
    %89 = vector.shape_cast %88 : vector<1x1x8x8x8xf32> to vector<8x8x8xf32>
    %90 = arith.subf %89, %61 : vector<8x8x8xf32>
    %91 = math.exp %90 : vector<8x8x8xf32>
    %92 = arith.addf %84, %91 : vector<8x8x8xf32>
    %c4_i32 = arith.constant 4 : i32
    %93 = vector.broadcast %c4_i32 : i32 to vector<8x8x8xi32>
    %94 = arith.cmpi eq, %17, %93 : vector<8x8x8xi32>
    %95 = arith.select %94, %91, %87 : vector<8x8x8xi1>, vector<8x8x8xf32>
    %c0_84 = arith.constant 0 : index
    %c6_85 = arith.constant 6 : index
    %c0_86 = arith.constant 0 : index
    %c0_87 = arith.constant 0 : index
    %c0_88 = arith.constant 0 : index
    %96 = vector.load %arg1[%c0_84, %c6_85, %c0_86, %c0_87, %c0_88] : memref<1x16x8x8x8xf32, #tpu.memory_space<vmem>>, vector<1x1x8x8x8xf32>
    %97 = vector.shape_cast %96 : vector<1x1x8x8x8xf32> to vector<8x8x8xf32>
    %98 = arith.subf %97, %61 : vector<8x8x8xf32>
    %99 = math.exp %98 : vector<8x8x8xf32>
    %100 = arith.addf %92, %99 : vector<8x8x8xf32>
    %c5_i32 = arith.constant 5 : i32
    %101 = vector.broadcast %c5_i32 : i32 to vector<8x8x8xi32>
    %102 = arith.cmpi eq, %17, %101 : vector<8x8x8xi32>
    %103 = arith.select %102, %99, %95 : vector<8x8x8xi1>, vector<8x8x8xf32>
    %c0_89 = arith.constant 0 : index
    %c7_90 = arith.constant 7 : index
    %c0_91 = arith.constant 0 : index
    %c0_92 = arith.constant 0 : index
    %c0_93 = arith.constant 0 : index
    %104 = vector.load %arg1[%c0_89, %c7_90, %c0_91, %c0_92, %c0_93] : memref<1x16x8x8x8xf32, #tpu.memory_space<vmem>>, vector<1x1x8x8x8xf32>
    %105 = vector.shape_cast %104 : vector<1x1x8x8x8xf32> to vector<8x8x8xf32>
    %106 = arith.subf %105, %61 : vector<8x8x8xf32>
    %107 = math.exp %106 : vector<8x8x8xf32>
    %108 = arith.addf %100, %107 : vector<8x8x8xf32>
    %c6_i32 = arith.constant 6 : i32
    %109 = vector.broadcast %c6_i32 : i32 to vector<8x8x8xi32>
    %110 = arith.cmpi eq, %17, %109 : vector<8x8x8xi32>
    %111 = arith.select %110, %107, %103 : vector<8x8x8xi1>, vector<8x8x8xf32>
    %c0_94 = arith.constant 0 : index
    %c8_95 = arith.constant 8 : index
    %c0_96 = arith.constant 0 : index
    %c0_97 = arith.constant 0 : index
    %c0_98 = arith.constant 0 : index
    %112 = vector.load %arg1[%c0_94, %c8_95, %c0_96, %c0_97, %c0_98] : memref<1x16x8x8x8xf32, #tpu.memory_space<vmem>>, vector<1x1x8x8x8xf32>
    %113 = vector.shape_cast %112 : vector<1x1x8x8x8xf32> to vector<8x8x8xf32>
    %114 = arith.subf %113, %61 : vector<8x8x8xf32>
    %115 = math.exp %114 : vector<8x8x8xf32>
    %116 = arith.addf %108, %115 : vector<8x8x8xf32>
    %c7_i32 = arith.constant 7 : i32
    %117 = vector.broadcast %c7_i32 : i32 to vector<8x8x8xi32>
    %118 = arith.cmpi eq, %17, %117 : vector<8x8x8xi32>
    %119 = arith.select %118, %115, %111 : vector<8x8x8xi1>, vector<8x8x8xf32>
    %c0_99 = arith.constant 0 : index
    %c9_100 = arith.constant 9 : index
    %c0_101 = arith.constant 0 : index
    %c0_102 = arith.constant 0 : index
    %c0_103 = arith.constant 0 : index
    %120 = vector.load %arg1[%c0_99, %c9_100, %c0_101, %c0_102, %c0_103] : memref<1x16x8x8x8xf32, #tpu.memory_space<vmem>>, vector<1x1x8x8x8xf32>
    %121 = vector.shape_cast %120 : vector<1x1x8x8x8xf32> to vector<8x8x8xf32>
    %122 = arith.subf %121, %61 : vector<8x8x8xf32>
    %123 = math.exp %122 : vector<8x8x8xf32>
    %124 = arith.addf %116, %123 : vector<8x8x8xf32>
    %c8_i32 = arith.constant 8 : i32
    %125 = vector.broadcast %c8_i32 : i32 to vector<8x8x8xi32>
    %126 = arith.cmpi eq, %17, %125 : vector<8x8x8xi32>
    %127 = arith.select %126, %123, %119 : vector<8x8x8xi1>, vector<8x8x8xf32>
    %c0_104 = arith.constant 0 : index
    %c10_105 = arith.constant 10 : index
    %c0_106 = arith.constant 0 : index
    %c0_107 = arith.constant 0 : index
    %c0_108 = arith.constant 0 : index
    %128 = vector.load %arg1[%c0_104, %c10_105, %c0_106, %c0_107, %c0_108] : memref<1x16x8x8x8xf32, #tpu.memory_space<vmem>>, vector<1x1x8x8x8xf32>
    %129 = vector.shape_cast %128 : vector<1x1x8x8x8xf32> to vector<8x8x8xf32>
    %130 = arith.subf %129, %61 : vector<8x8x8xf32>
    %131 = math.exp %130 : vector<8x8x8xf32>
    %132 = arith.addf %124, %131 : vector<8x8x8xf32>
    %c9_i32 = arith.constant 9 : i32
    %133 = vector.broadcast %c9_i32 : i32 to vector<8x8x8xi32>
    %134 = arith.cmpi eq, %17, %133 : vector<8x8x8xi32>
    %135 = arith.select %134, %131, %127 : vector<8x8x8xi1>, vector<8x8x8xf32>
    %c0_109 = arith.constant 0 : index
    %c11_110 = arith.constant 11 : index
    %c0_111 = arith.constant 0 : index
    %c0_112 = arith.constant 0 : index
    %c0_113 = arith.constant 0 : index
    %136 = vector.load %arg1[%c0_109, %c11_110, %c0_111, %c0_112, %c0_113] : memref<1x16x8x8x8xf32, #tpu.memory_space<vmem>>, vector<1x1x8x8x8xf32>
    %137 = vector.shape_cast %136 : vector<1x1x8x8x8xf32> to vector<8x8x8xf32>
    %138 = arith.subf %137, %61 : vector<8x8x8xf32>
    %139 = math.exp %138 : vector<8x8x8xf32>
    %140 = arith.addf %132, %139 : vector<8x8x8xf32>
    %c10_i32 = arith.constant 10 : i32
    %141 = vector.broadcast %c10_i32 : i32 to vector<8x8x8xi32>
    %142 = arith.cmpi eq, %17, %141 : vector<8x8x8xi32>
    %143 = arith.select %142, %139, %135 : vector<8x8x8xi1>, vector<8x8x8xf32>
    %c0_114 = arith.constant 0 : index
    %c12_115 = arith.constant 12 : index
    %c0_116 = arith.constant 0 : index
    %c0_117 = arith.constant 0 : index
    %c0_118 = arith.constant 0 : index
    %144 = vector.load %arg1[%c0_114, %c12_115, %c0_116, %c0_117, %c0_118] : memref<1x16x8x8x8xf32, #tpu.memory_space<vmem>>, vector<1x1x8x8x8xf32>
    %145 = vector.shape_cast %144 : vector<1x1x8x8x8xf32> to vector<8x8x8xf32>
    %146 = arith.subf %145, %61 : vector<8x8x8xf32>
    %147 = math.exp %146 : vector<8x8x8xf32>
    %148 = arith.addf %140, %147 : vector<8x8x8xf32>
    %c11_i32 = arith.constant 11 : i32
    %149 = vector.broadcast %c11_i32 : i32 to vector<8x8x8xi32>
    %150 = arith.cmpi eq, %17, %149 : vector<8x8x8xi32>
    %151 = arith.select %150, %147, %143 : vector<8x8x8xi1>, vector<8x8x8xf32>
    %c0_119 = arith.constant 0 : index
    %c13_120 = arith.constant 13 : index
    %c0_121 = arith.constant 0 : index
    %c0_122 = arith.constant 0 : index
    %c0_123 = arith.constant 0 : index
    %152 = vector.load %arg1[%c0_119, %c13_120, %c0_121, %c0_122, %c0_123] : memref<1x16x8x8x8xf32, #tpu.memory_space<vmem>>, vector<1x1x8x8x8xf32>
    %153 = vector.shape_cast %152 : vector<1x1x8x8x8xf32> to vector<8x8x8xf32>
    %154 = arith.subf %153, %61 : vector<8x8x8xf32>
    %155 = math.exp %154 : vector<8x8x8xf32>
    %156 = arith.addf %148, %155 : vector<8x8x8xf32>
    %c12_i32_124 = arith.constant 12 : i32
    %157 = vector.broadcast %c12_i32_124 : i32 to vector<8x8x8xi32>
    %158 = arith.cmpi eq, %17, %157 : vector<8x8x8xi32>
    %159 = arith.select %158, %155, %151 : vector<8x8x8xi1>, vector<8x8x8xf32>
    %c0_125 = arith.constant 0 : index
    %c14_126 = arith.constant 14 : index
    %c0_127 = arith.constant 0 : index
    %c0_128 = arith.constant 0 : index
    %c0_129 = arith.constant 0 : index
    %160 = vector.load %arg1[%c0_125, %c14_126, %c0_127, %c0_128, %c0_129] : memref<1x16x8x8x8xf32, #tpu.memory_space<vmem>>, vector<1x1x8x8x8xf32>
    %161 = vector.shape_cast %160 : vector<1x1x8x8x8xf32> to vector<8x8x8xf32>
    %162 = arith.subf %161, %61 : vector<8x8x8xf32>
    %163 = math.exp %162 : vector<8x8x8xf32>
    %164 = arith.addf %156, %163 : vector<8x8x8xf32>
    %c13_i32_130 = arith.constant 13 : i32
    %165 = vector.broadcast %c13_i32_130 : i32 to vector<8x8x8xi32>
    %166 = arith.cmpi eq, %17, %165 : vector<8x8x8xi32>
    %167 = arith.select %166, %163, %159 : vector<8x8x8xi1>, vector<8x8x8xf32>
    %c0_131 = arith.constant 0 : index
    %c15_132 = arith.constant 15 : index
    %c0_133 = arith.constant 0 : index
    %c0_134 = arith.constant 0 : index
    %c0_135 = arith.constant 0 : index
    %168 = vector.load %arg1[%c0_131, %c15_132, %c0_133, %c0_134, %c0_135] : memref<1x16x8x8x8xf32, #tpu.memory_space<vmem>>, vector<1x1x8x8x8xf32>
    %169 = vector.shape_cast %168 : vector<1x1x8x8x8xf32> to vector<8x8x8xf32>
    %170 = arith.subf %169, %61 : vector<8x8x8xf32>
    %171 = math.exp %170 : vector<8x8x8xf32>
    %172 = arith.addf %164, %171 : vector<8x8x8xf32>
    %c14_i32_136 = arith.constant 14 : i32
    %173 = vector.broadcast %c14_i32_136 : i32 to vector<8x8x8xi32>
    %174 = arith.cmpi eq, %17, %173 : vector<8x8x8xi32>
    %175 = arith.select %174, %171, %167 : vector<8x8x8xi1>, vector<8x8x8xf32>
    %176 = arith.subf %19, %61 : vector<8x8x8xf32>
    %177 = math.exp %176 : vector<8x8x8xf32>
    %178 = arith.addf %172, %177 : vector<8x8x8xf32>
    %179 = tpu.reciprocal %178 : vector<8x8x8xf32> -> vector<8x8x8xf32>
    %180 = arith.mulf %177, %179 : vector<8x8x8xf32>
    %cst_137 = arith.constant 1.000000e-07 : f32
    %181 = vector.broadcast %cst_137 : f32 to vector<8x8x8xf32>
    %182 = arith.maximumf %180, %181 : vector<8x8x8xf32>
    %183 = arith.mulf %175, %179 : vector<8x8x8xf32>
    %cst_138 = arith.constant 1.000000e-07 : f32
    %184 = vector.broadcast %cst_138 : f32 to vector<8x8x8xf32>
    %185 = arith.maximumf %183, %184 : vector<8x8x8xf32>
    %cst_139 = arith.constant 0.000000e+00 : f32
    %186 = vector.broadcast %cst_139 : f32 to vector<8x8x8xf32>
    %187 = arith.cmpf ogt, %172, %186 : vector<8x8x8xf32>
    %188 = math.log %172 : vector<8x8x8xf32>
    %189 = arith.addf %61, %188 : vector<8x8x8xf32>
    %190 = arith.select %187, %189, %60 : vector<8x8x8xi1>, vector<8x8x8xf32>
    %191 = arith.mulf %190, %190 : vector<8x8x8xf32>
    %192 = vector.extract_strided_slice %191 {offsets = [3, 0, 0], sizes = [1, 8, 8], strides = [1, 1, 1]} : vector<8x8x8xf32> to vector<1x8x8xf32>
    %193 = vector.extract_strided_slice %191 {offsets = [2, 0, 0], sizes = [1, 8, 8], strides = [1, 1, 1]} : vector<8x8x8xf32> to vector<1x8x8xf32>
    %194 = vector.extract_strided_slice %191 {offsets = [1, 0, 0], sizes = [1, 8, 8], strides = [1, 1, 1]} : vector<8x8x8xf32> to vector<1x8x8xf32>
    %195 = vector.extract_strided_slice %191 {offsets = [6, 0, 0], sizes = [1, 8, 8], strides = [1, 1, 1]} : vector<8x8x8xf32> to vector<1x8x8xf32>
    %196 = vector.extract_strided_slice %191 {offsets = [5, 0, 0], sizes = [1, 8, 8], strides = [1, 1, 1]} : vector<8x8x8xf32> to vector<1x8x8xf32>
    %197 = vector.extract_strided_slice %191 {offsets = [4, 0, 0], sizes = [1, 8, 8], strides = [1, 1, 1]} : vector<8x8x8xf32> to vector<1x8x8xf32>
    %198 = tpu.concatenate %192, %193, %194, %191, %195, %196, %197 in 0 : vector<1x8x8xf32>, vector<1x8x8xf32>, vector<1x8x8xf32>, vector<8x8x8xf32>, vector<1x8x8xf32>, vector<1x8x8xf32>, vector<1x8x8xf32> -> vector<14x8x8xf32>
    %199 = vector.extract_strided_slice %198 {offsets = [0, 0, 0], sizes = [8, 8, 8], strides = [1, 1, 1]} : vector<14x8x8xf32> to vector<8x8x8xf32>
    %cst_140 = arith.constant 0.00443304796 : f32
    %200 = vector.broadcast %cst_140 : f32 to vector<8x8x8xf32>
    %201 = arith.mulf %200, %199 : vector<8x8x8xf32>
    %202 = vector.extract_strided_slice %198 {offsets = [1, 0, 0], sizes = [8, 8, 8], strides = [1, 1, 1]} : vector<14x8x8xf32> to vector<8x8x8xf32>
    %cst_141 = arith.constant 0.0540055819 : f32
    %203 = vector.broadcast %cst_141 : f32 to vector<8x8x8xf32>
    %204 = arith.mulf %203, %202 : vector<8x8x8xf32>
    %205 = arith.addf %201, %204 : vector<8x8x8xf32>
    %206 = vector.extract_strided_slice %198 {offsets = [2, 0, 0], sizes = [8, 8, 8], strides = [1, 1, 1]} : vector<14x8x8xf32> to vector<8x8x8xf32>
    %cst_142 = arith.constant 0.242036223 : f32
    %207 = vector.broadcast %cst_142 : f32 to vector<8x8x8xf32>
    %208 = arith.mulf %207, %206 : vector<8x8x8xf32>
    %209 = arith.addf %205, %208 : vector<8x8x8xf32>
    %210 = vector.extract_strided_slice %198 {offsets = [3, 0, 0], sizes = [8, 8, 8], strides = [1, 1, 1]} : vector<14x8x8xf32> to vector<8x8x8xf32>
    %cst_143 = arith.constant 0.399050266 : f32
    %211 = vector.broadcast %cst_143 : f32 to vector<8x8x8xf32>
    %212 = arith.mulf %211, %210 : vector<8x8x8xf32>
    %213 = arith.addf %209, %212 : vector<8x8x8xf32>
    %214 = vector.extract_strided_slice %198 {offsets = [4, 0, 0], sizes = [8, 8, 8], strides = [1, 1, 1]} : vector<14x8x8xf32> to vector<8x8x8xf32>
    %cst_144 = arith.constant 0.242036223 : f32
    %215 = vector.broadcast %cst_144 : f32 to vector<8x8x8xf32>
    %216 = arith.mulf %215, %214 : vector<8x8x8xf32>
    %217 = arith.addf %213, %216 : vector<8x8x8xf32>
    %218 = vector.extract_strided_slice %198 {offsets = [5, 0, 0], sizes = [8, 8, 8], strides = [1, 1, 1]} : vector<14x8x8xf32> to vector<8x8x8xf32>
    %cst_145 = arith.constant 0.0540055819 : f32
    %219 = vector.broadcast %cst_145 : f32 to vector<8x8x8xf32>
    %220 = arith.mulf %219, %218 : vector<8x8x8xf32>
    %221 = arith.addf %217, %220 : vector<8x8x8xf32>
    %222 = vector.extract_strided_slice %198 {offsets = [6, 0, 0], sizes = [8, 8, 8], strides = [1, 1, 1]} : vector<14x8x8xf32> to vector<8x8x8xf32>
    %cst_146 = arith.constant 0.00443304796 : f32
    %223 = vector.broadcast %cst_146 : f32 to vector<8x8x8xf32>
    %224 = arith.mulf %223, %222 : vector<8x8x8xf32>
    %225 = arith.addf %221, %224 : vector<8x8x8xf32>
    %226 = vector.shape_cast %225 : vector<8x8x8xf32> to vector<64x8xf32>
    %c0_147 = arith.constant 0 : index
    %c0_148 = arith.constant 0 : index
    %227 = vector.load %arg3[%c0_147, %c0_148] : memref<8x8xf32, #tpu.memory_space<vmem>>, vector<8x8xf32>
    %cst_149 = arith.constant dense<0.000000e+00> : vector<64x8xf32>
    %228 = tpu.matmul %226, %227, %cst_149 {dimension_numbers = #tpu.dot_dimension_numbers<[1], [0], [0], [1], [0, 0, 1, 1], [], []>} : vector<64x8xf32>, vector<8x8xf32>, vector<64x8xf32> -> vector<64x8xf32>
    %229 = vector.shape_cast %228 : vector<64x8xf32> to vector<8x8x8xf32>
    %cst_150 = arith.constant 0.000000e+00 : f32
    %230 = vector.broadcast %cst_150 : f32 to vector<8x8xf32>
    %231 = vector.extract_strided_slice %229 {offsets = [0, 0, 0], sizes = [1, 8, 8], strides = [1, 1, 1]} : vector<8x8x8xf32> to vector<1x8x8xf32>
    %232 = vector.shape_cast %231 : vector<1x8x8xf32> to vector<8x8xf32>
    %c0_151 = arith.constant 0 : index
    %c0_152 = arith.constant 0 : index
    %233 = vector.load %arg4[%c0_151, %c0_152] : memref<8x8xf32, #tpu.memory_space<vmem>>, vector<8x8xf32>
    %cst_153 = arith.constant dense<0.000000e+00> : vector<8x8xf32>
    %234 = tpu.matmul %233, %232, %cst_153 {dimension_numbers = #tpu.dot_dimension_numbers<[1], [0], [0], [1], [0, 0, 1, 1], [], []>} : vector<8x8xf32>, vector<8x8xf32>, vector<8x8xf32> -> vector<8x8xf32>
    %235 = vector.extract_strided_slice %185 {offsets = [0, 0, 0], sizes = [1, 8, 8], strides = [1, 1, 1]} : vector<8x8x8xf32> to vector<1x8x8xf32>
    %236 = vector.shape_cast %235 : vector<1x8x8xf32> to vector<8x8xf32>
    %237 = vector.extract_strided_slice %182 {offsets = [0, 0, 0], sizes = [1, 8, 8], strides = [1, 1, 1]} : vector<8x8x8xf32> to vector<1x8x8xf32>
    %238 = vector.shape_cast %237 : vector<1x8x8xf32> to vector<8x8xf32>
    %239 = tpu.reciprocal %234 {approx = true} : vector<8x8xf32> -> vector<8x8xf32>
    %240 = arith.mulf %238, %239 : vector<8x8xf32>
    %241 = arith.addf %236, %240 : vector<8x8xf32>
    %242 = math.log %241 : vector<8x8xf32>
    %243 = vector.extract_strided_slice %1 {offsets = [0, 0, 0], sizes = [1, 8, 8], strides = [1, 1, 1]} : vector<8x8x8xi32> to vector<1x8x8xi32>
    %244 = vector.shape_cast %243 : vector<1x8x8xi32> to vector<8x8xi32>
    %c0_i32 = arith.constant 0 : i32
    %245 = vector.broadcast %c0_i32 : i32 to vector<8x8xi32>
    %246 = arith.cmpi ne, %244, %245 : vector<8x8xi32>
    %cst_154 = arith.constant 0.000000e+00 : f32
    %247 = vector.broadcast %cst_154 : f32 to vector<8x8xf32>
    %248 = arith.select %246, %242, %247 : vector<8x8xi1>, vector<8x8xf32>
    %249 = arith.addf %230, %248 : vector<8x8xf32>
    %250 = vector.extract_strided_slice %229 {offsets = [1, 0, 0], sizes = [1, 8, 8], strides = [1, 1, 1]} : vector<8x8x8xf32> to vector<1x8x8xf32>
    %251 = vector.shape_cast %250 : vector<1x8x8xf32> to vector<8x8xf32>
    %c0_155 = arith.constant 0 : index
    %c0_156 = arith.constant 0 : index
    %252 = vector.load %arg4[%c0_155, %c0_156] : memref<8x8xf32, #tpu.memory_space<vmem>>, vector<8x8xf32>
    %cst_157 = arith.constant dense<0.000000e+00> : vector<8x8xf32>
    %253 = tpu.matmul %252, %251, %cst_157 {dimension_numbers = #tpu.dot_dimension_numbers<[1], [0], [0], [1], [0, 0, 1, 1], [], []>} : vector<8x8xf32>, vector<8x8xf32>, vector<8x8xf32> -> vector<8x8xf32>
    %254 = vector.extract_strided_slice %185 {offsets = [1, 0, 0], sizes = [1, 8, 8], strides = [1, 1, 1]} : vector<8x8x8xf32> to vector<1x8x8xf32>
    %255 = vector.shape_cast %254 : vector<1x8x8xf32> to vector<8x8xf32>
    %256 = vector.extract_strided_slice %182 {offsets = [1, 0, 0], sizes = [1, 8, 8], strides = [1, 1, 1]} : vector<8x8x8xf32> to vector<1x8x8xf32>
    %257 = vector.shape_cast %256 : vector<1x8x8xf32> to vector<8x8xf32>
    %258 = tpu.reciprocal %253 {approx = true} : vector<8x8xf32> -> vector<8x8xf32>
    %259 = arith.mulf %257, %258 : vector<8x8xf32>
    %260 = arith.addf %255, %259 : vector<8x8xf32>
    %261 = math.log %260 : vector<8x8xf32>
    %262 = vector.extract_strided_slice %1 {offsets = [1, 0, 0], sizes = [1, 8, 8], strides = [1, 1, 1]} : vector<8x8x8xi32> to vector<1x8x8xi32>
    %263 = vector.shape_cast %262 : vector<1x8x8xi32> to vector<8x8xi32>
    %c0_i32_158 = arith.constant 0 : i32
    %264 = vector.broadcast %c0_i32_158 : i32 to vector<8x8xi32>
    %265 = arith.cmpi ne, %263, %264 : vector<8x8xi32>
    %cst_159 = arith.constant 0.000000e+00 : f32
    %266 = vector.broadcast %cst_159 : f32 to vector<8x8xf32>
    %267 = arith.select %265, %261, %266 : vector<8x8xi1>, vector<8x8xf32>
    %268 = arith.addf %249, %267 : vector<8x8xf32>
    %269 = vector.extract_strided_slice %229 {offsets = [2, 0, 0], sizes = [1, 8, 8], strides = [1, 1, 1]} : vector<8x8x8xf32> to vector<1x8x8xf32>
    %270 = vector.shape_cast %269 : vector<1x8x8xf32> to vector<8x8xf32>
    %c0_160 = arith.constant 0 : index
    %c0_161 = arith.constant 0 : index
    %271 = vector.load %arg4[%c0_160, %c0_161] : memref<8x8xf32, #tpu.memory_space<vmem>>, vector<8x8xf32>
    %cst_162 = arith.constant dense<0.000000e+00> : vector<8x8xf32>
    %272 = tpu.matmul %271, %270, %cst_162 {dimension_numbers = #tpu.dot_dimension_numbers<[1], [0], [0], [1], [0, 0, 1, 1], [], []>} : vector<8x8xf32>, vector<8x8xf32>, vector<8x8xf32> -> vector<8x8xf32>
    %273 = vector.extract_strided_slice %185 {offsets = [2, 0, 0], sizes = [1, 8, 8], strides = [1, 1, 1]} : vector<8x8x8xf32> to vector<1x8x8xf32>
    %274 = vector.shape_cast %273 : vector<1x8x8xf32> to vector<8x8xf32>
    %275 = vector.extract_strided_slice %182 {offsets = [2, 0, 0], sizes = [1, 8, 8], strides = [1, 1, 1]} : vector<8x8x8xf32> to vector<1x8x8xf32>
    %276 = vector.shape_cast %275 : vector<1x8x8xf32> to vector<8x8xf32>
    %277 = tpu.reciprocal %272 {approx = true} : vector<8x8xf32> -> vector<8x8xf32>
    %278 = arith.mulf %276, %277 : vector<8x8xf32>
    %279 = arith.addf %274, %278 : vector<8x8xf32>
    %280 = math.log %279 : vector<8x8xf32>
    %281 = vector.extract_strided_slice %1 {offsets = [2, 0, 0], sizes = [1, 8, 8], strides = [1, 1, 1]} : vector<8x8x8xi32> to vector<1x8x8xi32>
    %282 = vector.shape_cast %281 : vector<1x8x8xi32> to vector<8x8xi32>
    %c0_i32_163 = arith.constant 0 : i32
    %283 = vector.broadcast %c0_i32_163 : i32 to vector<8x8xi32>
    %284 = arith.cmpi ne, %282, %283 : vector<8x8xi32>
    %cst_164 = arith.constant 0.000000e+00 : f32
    %285 = vector.broadcast %cst_164 : f32 to vector<8x8xf32>
    %286 = arith.select %284, %280, %285 : vector<8x8xi1>, vector<8x8xf32>
    %287 = arith.addf %268, %286 : vector<8x8xf32>
    %288 = vector.extract_strided_slice %229 {offsets = [3, 0, 0], sizes = [1, 8, 8], strides = [1, 1, 1]} : vector<8x8x8xf32> to vector<1x8x8xf32>
    %289 = vector.shape_cast %288 : vector<1x8x8xf32> to vector<8x8xf32>
    %c0_165 = arith.constant 0 : index
    %c0_166 = arith.constant 0 : index
    %290 = vector.load %arg4[%c0_165, %c0_166] : memref<8x8xf32, #tpu.memory_space<vmem>>, vector<8x8xf32>
    %cst_167 = arith.constant dense<0.000000e+00> : vector<8x8xf32>
    %291 = tpu.matmul %290, %289, %cst_167 {dimension_numbers = #tpu.dot_dimension_numbers<[1], [0], [0], [1], [0, 0, 1, 1], [], []>} : vector<8x8xf32>, vector<8x8xf32>, vector<8x8xf32> -> vector<8x8xf32>
    %292 = vector.extract_strided_slice %185 {offsets = [3, 0, 0], sizes = [1, 8, 8], strides = [1, 1, 1]} : vector<8x8x8xf32> to vector<1x8x8xf32>
    %293 = vector.shape_cast %292 : vector<1x8x8xf32> to vector<8x8xf32>
    %294 = vector.extract_strided_slice %182 {offsets = [3, 0, 0], sizes = [1, 8, 8], strides = [1, 1, 1]} : vector<8x8x8xf32> to vector<1x8x8xf32>
    %295 = vector.shape_cast %294 : vector<1x8x8xf32> to vector<8x8xf32>
    %296 = tpu.reciprocal %291 {approx = true} : vector<8x8xf32> -> vector<8x8xf32>
    %297 = arith.mulf %295, %296 : vector<8x8xf32>
    %298 = arith.addf %293, %297 : vector<8x8xf32>
    %299 = math.log %298 : vector<8x8xf32>
    %300 = vector.extract_strided_slice %1 {offsets = [3, 0, 0], sizes = [1, 8, 8], strides = [1, 1, 1]} : vector<8x8x8xi32> to vector<1x8x8xi32>
    %301 = vector.shape_cast %300 : vector<1x8x8xi32> to vector<8x8xi32>
    %c0_i32_168 = arith.constant 0 : i32
    %302 = vector.broadcast %c0_i32_168 : i32 to vector<8x8xi32>
    %303 = arith.cmpi ne, %301, %302 : vector<8x8xi32>
    %cst_169 = arith.constant 0.000000e+00 : f32
    %304 = vector.broadcast %cst_169 : f32 to vector<8x8xf32>
    %305 = arith.select %303, %299, %304 : vector<8x8xi1>, vector<8x8xf32>
    %306 = arith.addf %287, %305 : vector<8x8xf32>
    %307 = vector.extract_strided_slice %229 {offsets = [4, 0, 0], sizes = [1, 8, 8], strides = [1, 1, 1]} : vector<8x8x8xf32> to vector<1x8x8xf32>
    %308 = vector.shape_cast %307 : vector<1x8x8xf32> to vector<8x8xf32>
    %c0_170 = arith.constant 0 : index
    %c0_171 = arith.constant 0 : index
    %309 = vector.load %arg4[%c0_170, %c0_171] : memref<8x8xf32, #tpu.memory_space<vmem>>, vector<8x8xf32>
    %cst_172 = arith.constant dense<0.000000e+00> : vector<8x8xf32>
    %310 = tpu.matmul %309, %308, %cst_172 {dimension_numbers = #tpu.dot_dimension_numbers<[1], [0], [0], [1], [0, 0, 1, 1], [], []>} : vector<8x8xf32>, vector<8x8xf32>, vector<8x8xf32> -> vector<8x8xf32>
    %311 = vector.extract_strided_slice %185 {offsets = [4, 0, 0], sizes = [1, 8, 8], strides = [1, 1, 1]} : vector<8x8x8xf32> to vector<1x8x8xf32>
    %312 = vector.shape_cast %311 : vector<1x8x8xf32> to vector<8x8xf32>
    %313 = vector.extract_strided_slice %182 {offsets = [4, 0, 0], sizes = [1, 8, 8], strides = [1, 1, 1]} : vector<8x8x8xf32> to vector<1x8x8xf32>
    %314 = vector.shape_cast %313 : vector<1x8x8xf32> to vector<8x8xf32>
    %315 = tpu.reciprocal %310 {approx = true} : vector<8x8xf32> -> vector<8x8xf32>
    %316 = arith.mulf %314, %315 : vector<8x8xf32>
    %317 = arith.addf %312, %316 : vector<8x8xf32>
    %318 = math.log %317 : vector<8x8xf32>
    %319 = vector.extract_strided_slice %1 {offsets = [4, 0, 0], sizes = [1, 8, 8], strides = [1, 1, 1]} : vector<8x8x8xi32> to vector<1x8x8xi32>
    %320 = vector.shape_cast %319 : vector<1x8x8xi32> to vector<8x8xi32>
    %c0_i32_173 = arith.constant 0 : i32
    %321 = vector.broadcast %c0_i32_173 : i32 to vector<8x8xi32>
    %322 = arith.cmpi ne, %320, %321 : vector<8x8xi32>
    %cst_174 = arith.constant 0.000000e+00 : f32
    %323 = vector.broadcast %cst_174 : f32 to vector<8x8xf32>
    %324 = arith.select %322, %318, %323 : vector<8x8xi1>, vector<8x8xf32>
    %325 = arith.addf %306, %324 : vector<8x8xf32>
    %326 = vector.extract_strided_slice %229 {offsets = [5, 0, 0], sizes = [1, 8, 8], strides = [1, 1, 1]} : vector<8x8x8xf32> to vector<1x8x8xf32>
    %327 = vector.shape_cast %326 : vector<1x8x8xf32> to vector<8x8xf32>
    %c0_175 = arith.constant 0 : index
    %c0_176 = arith.constant 0 : index
    %328 = vector.load %arg4[%c0_175, %c0_176] : memref<8x8xf32, #tpu.memory_space<vmem>>, vector<8x8xf32>
    %cst_177 = arith.constant dense<0.000000e+00> : vector<8x8xf32>
    %329 = tpu.matmul %328, %327, %cst_177 {dimension_numbers = #tpu.dot_dimension_numbers<[1], [0], [0], [1], [0, 0, 1, 1], [], []>} : vector<8x8xf32>, vector<8x8xf32>, vector<8x8xf32> -> vector<8x8xf32>
    %330 = vector.extract_strided_slice %185 {offsets = [5, 0, 0], sizes = [1, 8, 8], strides = [1, 1, 1]} : vector<8x8x8xf32> to vector<1x8x8xf32>
    %331 = vector.shape_cast %330 : vector<1x8x8xf32> to vector<8x8xf32>
    %332 = vector.extract_strided_slice %182 {offsets = [5, 0, 0], sizes = [1, 8, 8], strides = [1, 1, 1]} : vector<8x8x8xf32> to vector<1x8x8xf32>
    %333 = vector.shape_cast %332 : vector<1x8x8xf32> to vector<8x8xf32>
    %334 = tpu.reciprocal %329 {approx = true} : vector<8x8xf32> -> vector<8x8xf32>
    %335 = arith.mulf %333, %334 : vector<8x8xf32>
    %336 = arith.addf %331, %335 : vector<8x8xf32>
    %337 = math.log %336 : vector<8x8xf32>
    %338 = vector.extract_strided_slice %1 {offsets = [5, 0, 0], sizes = [1, 8, 8], strides = [1, 1, 1]} : vector<8x8x8xi32> to vector<1x8x8xi32>
    %339 = vector.shape_cast %338 : vector<1x8x8xi32> to vector<8x8xi32>
    %c0_i32_178 = arith.constant 0 : i32
    %340 = vector.broadcast %c0_i32_178 : i32 to vector<8x8xi32>
    %341 = arith.cmpi ne, %339, %340 : vector<8x8xi32>
    %cst_179 = arith.constant 0.000000e+00 : f32
    %342 = vector.broadcast %cst_179 : f32 to vector<8x8xf32>
    %343 = arith.select %341, %337, %342 : vector<8x8xi1>, vector<8x8xf32>
    %344 = arith.addf %325, %343 : vector<8x8xf32>
    %345 = vector.extract_strided_slice %229 {offsets = [6, 0, 0], sizes = [1, 8, 8], strides = [1, 1, 1]} : vector<8x8x8xf32> to vector<1x8x8xf32>
    %346 = vector.shape_cast %345 : vector<1x8x8xf32> to vector<8x8xf32>
    %c0_180 = arith.constant 0 : index
    %c0_181 = arith.constant 0 : index
    %347 = vector.load %arg4[%c0_180, %c0_181] : memref<8x8xf32, #tpu.memory_space<vmem>>, vector<8x8xf32>
    %cst_182 = arith.constant dense<0.000000e+00> : vector<8x8xf32>
    %348 = tpu.matmul %347, %346, %cst_182 {dimension_numbers = #tpu.dot_dimension_numbers<[1], [0], [0], [1], [0, 0, 1, 1], [], []>} : vector<8x8xf32>, vector<8x8xf32>, vector<8x8xf32> -> vector<8x8xf32>
    %349 = vector.extract_strided_slice %185 {offsets = [6, 0, 0], sizes = [1, 8, 8], strides = [1, 1, 1]} : vector<8x8x8xf32> to vector<1x8x8xf32>
    %350 = vector.shape_cast %349 : vector<1x8x8xf32> to vector<8x8xf32>
    %351 = vector.extract_strided_slice %182 {offsets = [6, 0, 0], sizes = [1, 8, 8], strides = [1, 1, 1]} : vector<8x8x8xf32> to vector<1x8x8xf32>
    %352 = vector.shape_cast %351 : vector<1x8x8xf32> to vector<8x8xf32>
    %353 = tpu.reciprocal %348 {approx = true} : vector<8x8xf32> -> vector<8x8xf32>
    %354 = arith.mulf %352, %353 : vector<8x8xf32>
    %355 = arith.addf %350, %354 : vector<8x8xf32>
    %356 = math.log %355 : vector<8x8xf32>
    %357 = vector.extract_strided_slice %1 {offsets = [6, 0, 0], sizes = [1, 8, 8], strides = [1, 1, 1]} : vector<8x8x8xi32> to vector<1x8x8xi32>
    %358 = vector.shape_cast %357 : vector<1x8x8xi32> to vector<8x8xi32>
    %c0_i32_183 = arith.constant 0 : i32
    %359 = vector.broadcast %c0_i32_183 : i32 to vector<8x8xi32>
    %360 = arith.cmpi ne, %358, %359 : vector<8x8xi32>
    %cst_184 = arith.constant 0.000000e+00 : f32
    %361 = vector.broadcast %cst_184 : f32 to vector<8x8xf32>
    %362 = arith.select %360, %356, %361 : vector<8x8xi1>, vector<8x8xf32>
    %363 = arith.addf %344, %362 : vector<8x8xf32>
    %364 = vector.extract_strided_slice %229 {offsets = [7, 0, 0], sizes = [1, 8, 8], strides = [1, 1, 1]} : vector<8x8x8xf32> to vector<1x8x8xf32>
    %365 = vector.shape_cast %364 : vector<1x8x8xf32> to vector<8x8xf32>
    %c0_185 = arith.constant 0 : index
    %c0_186 = arith.constant 0 : index
    %366 = vector.load %arg4[%c0_185, %c0_186] : memref<8x8xf32, #tpu.memory_space<vmem>>, vector<8x8xf32>
    %cst_187 = arith.constant dense<0.000000e+00> : vector<8x8xf32>
    %367 = tpu.matmul %366, %365, %cst_187 {dimension_numbers = #tpu.dot_dimension_numbers<[1], [0], [0], [1], [0, 0, 1, 1], [], []>} : vector<8x8xf32>, vector<8x8xf32>, vector<8x8xf32> -> vector<8x8xf32>
    %368 = vector.extract_strided_slice %185 {offsets = [7, 0, 0], sizes = [1, 8, 8], strides = [1, 1, 1]} : vector<8x8x8xf32> to vector<1x8x8xf32>
    %369 = vector.shape_cast %368 : vector<1x8x8xf32> to vector<8x8xf32>
    %370 = vector.extract_strided_slice %182 {offsets = [7, 0, 0], sizes = [1, 8, 8], strides = [1, 1, 1]} : vector<8x8x8xf32> to vector<1x8x8xf32>
    %371 = vector.shape_cast %370 : vector<1x8x8xf32> to vector<8x8xf32>
    %372 = tpu.reciprocal %367 {approx = true} : vector<8x8xf32> -> vector<8x8xf32>
    %373 = arith.mulf %371, %372 : vector<8x8xf32>
    %374 = arith.addf %369, %373 : vector<8x8xf32>
    %375 = math.log %374 : vector<8x8xf32>
    %376 = vector.extract_strided_slice %1 {offsets = [7, 0, 0], sizes = [1, 8, 8], strides = [1, 1, 1]} : vector<8x8x8xi32> to vector<1x8x8xi32>
    %377 = vector.shape_cast %376 : vector<1x8x8xi32> to vector<8x8xi32>
    %c0_i32_188 = arith.constant 0 : i32
    %378 = vector.broadcast %c0_i32_188 : i32 to vector<8x8xi32>
    %379 = arith.cmpi ne, %377, %378 : vector<8x8xi32>
    %cst_189 = arith.constant 0.000000e+00 : f32
    %380 = vector.broadcast %cst_189 : f32 to vector<8x8xf32>
    %381 = arith.select %379, %375, %380 : vector<8x8xi1>, vector<8x8xf32>
    %382 = arith.addf %363, %381 : vector<8x8xf32>
    %383 = vector.shape_cast %382 : vector<8x8xf32> to vector<1x8x8xf32>
    %cst_190 = arith.constant dense<0.000000e+00> : vector<1xf32>
    %384 = vector.multi_reduction <add>, %383, %cst_190 [1, 2] : vector<1x8x8xf32> to vector<1xf32>
    %385 = vector.shape_cast %384 : vector<1xf32> to vector<1x1x1xf32>
    %386 = vector.extract %385[0, 0, 0] : f32 from vector<1x1x1xf32>
    %c0_i32_191 = arith.constant 0 : i32
    %387 = vector.broadcast %c0_i32_191 : i32 to vector<8x8x8xi32>
    %388 = arith.cmpi ne, %1, %387 : vector<8x8x8xi32>
    %389 = arith.extui %388 : vector<8x8x8xi1> to vector<8x8x8xi32>
    %390 = arith.sitofp %389 : vector<8x8x8xi32> to vector<8x8x8xf32>
    %391 = vector.shape_cast %390 : vector<8x8x8xf32> to vector<1x8x8x8xf32>
    %cst_192 = arith.constant dense<0.000000e+00> : vector<1xf32>
    %392 = vector.multi_reduction <add>, %391, %cst_192 [1, 2, 3] : vector<1x8x8x8xf32> to vector<1xf32>
    %393 = vector.shape_cast %392 : vector<1xf32> to vector<1x1x1x1xf32>
    %394 = vector.extract %393[0, 0, 0, 0] : f32 from vector<1x1x1x1xf32>
    %395 = tpu.iota {dimensions = array<i32: 2>} : vector<1x1x2xi32>
    %c0_i32_193 = arith.constant 0 : i32
    %396 = vector.broadcast %c0_i32_193 : i32 to vector<1x1x2xi32>
    %397 = arith.cmpi eq, %395, %396 : vector<1x1x2xi32>
    %398 = vector.broadcast %386 : f32 to vector<1x1x2xf32>
    %399 = vector.broadcast %394 : f32 to vector<1x1x2xf32>
    %400 = arith.select %397, %398, %399 : vector<1x1x2xi1>, vector<1x1x2xf32>
    %c0_194 = arith.constant 0 : index
    %c0_195 = arith.constant 0 : index
    %c0_196 = arith.constant 0 : index
    %401 = vector.load %arg5[%c0_194, %c0_195, %c0_196] : memref<1x1x2xf32, #tpu.memory_space<vmem>>, vector<1x1x2xf32>
    tpu.vector_store %arg5[%c0_194, %c0_195, %c0_196], %400 {strides = array<i32>} : memref<1x1x2xf32, #tpu.memory_space<vmem>>, vector<1x1x2xf32>,
    return
  }
  func.func @transform_0(%arg0: i32) -> (i32, i32, i32, i32, i32) {
    %c0_i32 = arith.constant 0 : i32
    %c0_i32_0 = arith.constant 0 : i32
    %c0_i32_1 = arith.constant 0 : i32
    %c0_i32_2 = arith.constant 0 : i32
    %c0_i32_3 = arith.constant 0 : i32
    return %arg0, %c0_i32, %c0_i32_0, %c0_i32_1, %c0_i32_2 : i32, i32, i32, i32, i32
  }
  func.func @transform_1(%arg0: i32) -> (i32, i32, i32, i32) {
    %c0_i32 = arith.constant 0 : i32
    %c0_i32_0 = arith.constant 0 : i32
    %c0_i32_1 = arith.constant 0 : i32
    %c0_i32_2 = arith.constant 0 : i32
    return %arg0, %c0_i32, %c0_i32_0, %c0_i32_1 : i32, i32, i32, i32
  }
  func.func @transform_2(%arg0: i32) -> (i32, i32) {
    %c0_i32 = arith.constant 0 : i32
    %c0_i32_0 = arith.constant 0 : i32
    %c0_i32_1 = arith.constant 0 : i32
    return %c0_i32, %c0_i32_0 : i32, i32
  }
  func.func @transform_3(%arg0: i32) -> (i32, i32) {
    %c0_i32 = arith.constant 0 : i32
    %c0_i32_0 = arith.constant 0 : i32
    %c0_i32_1 = arith.constant 0 : i32
    return %c0_i32, %c0_i32_0 : i32, i32
  }
  func.func @transform_4(%arg0: i32) -> (i32, i32, i32) {
    %c0_i32 = arith.constant 0 : i32
    %c0_i32_0 = arith.constant 0 : i32
    %c0_i32_1 = arith.constant 0 : i32
    return %arg0, %c0_i32, %c0_i32_0 : i32, i32, i32
  }
}

</mosaic_0001>

<bundles_post_ra>
// kernel: tpu_custom_call.1
= control target key start
LH: loop header
LB: loop body
LE: loop exit
PB: predicated region body
PF: predicated region fallthrough
CT: control target
= control target key end

     0   :  { %9 = vsyncpa [#allocation3], 0  ;;  %s4817_s0 = inlined_call_operand.vmem [shape: f32[2,16,8,8,8], index: 0, kind: input, shape index: {}]   ;;  %s4818_s1 = inlined_call_operand.vmem [shape: s32[2,8,8,8], index: 1, kind: input, shape index: {}]   ;;  %s4819_s2 = inlined_call_operand.vmem [shape: f32[8,8], index: 2, kind: input, shape index: {}]   ;;  %s4820_s3 = inlined_call_operand.vmem [shape: f32[8,8], index: 3, kind: input, shape index: {}]   ;;  %s4821_s4 = inlined_call_operand.hbm [shape: f32[2,1,2], index: 4, kind: output, shape index: {}]  }
   0x1   :  { %11 = vsyncpa [#allocation3 + $0x1], 0  ;;  %s3022_s15 = smov 0   ;;  %s3024_s16 = smov 0  }
   0x2   :  { %s3026_s17 = smov 0   ;;  %s3028_s18 = smov 0  }
   0x3 LB: > { %s3043_s19 = sadd.s32 4294967295, %s2991_s18   ;;  %s2335_s20 = sadd.s32 4294967294, %s2991_s18   ;;  %s2991_s18 = sphi %s3028_s18, %s5265_s18   ;;  %s2987_s17 = sphi %s3026_s17, %s5264_s17   ;;  %s2983_s16 = sphi %s3024_s16, %s5263_s16   ;;  %s2979_s15 = sphi %s3022_s15, %s5262_s15  }
   0x4   : > { %s3047_s21 = sadd.s32 1, %s2991_s18   ;;  %s118_s22 = sadd.s32 1, %s2987_s17 }
   0x5   : > { %s115_s23 = ssub.s32 %s2991_s18, %s3047_s21  ;;  %p128_p0 = scmp.ne.s32.totalorder %s2987_s17, %s2983_s16 }
   0x6   : > { %p116_p1 = scmp.eq.s32.totalorder %s115_s23, 0  ;;  %p129_p2 = scmp.eq.s32.totalorder %s3043_s19, 1 }
   0x7   : > { %p134_p3 = scmp.ne.s32.totalorder %s2983_s16, %s2979_s15  ;;  %p135_p4 = scmp.eq.s32.totalorder %s2335_s20, 1 }
   0x8   : > { %s3058_s24 = scalar_select %p116_p1, %s2987_s17, %s118_s22  }
   0x9   : > { %p3060_p5 = por %p129_p2, %p128_p0  ;;  %p3064_p6 = por %p135_p4, %p134_p3 }
   0xa   : > { %p2338_p7 = scmp.ge.s32.totalorder %s2991_s18, 1  ;;  %p175_p8 = scmp.lt.s32.totalorder %s2991_s18, 3 }
   0xc   : > { %p176_p9 = pnand %p2338_p7, %p175_p8 }
   0xe   : > { %179 = sbr.rel (%p176_p9) target bundleno = 948 (0x3b4), region = 36 }
  0x15   : > { %v1438_v0 = vld [vmem:[%s4819_s2] sm:$0xff]  ;;  %p205_p10 = scmp.lt.s32.totalorder %s3043_s19, 1  ;;  %vm1439_vm6 = vcmask 64512   ;;  %vm2994_vm9 = vmmov 0   ;;  %s203_s14 = sand.u32 1, %s2983_s16  }
  0x16   : > { %2517 = vmatprep.subr.mxu0 %v1438_v0  ;;  %s2487_s20 = sshll.u32 %s3043_s19, 4  ;;  %s204_s23 = scalar_lea.vmem [#allocation2], %s203_s14 }
  0x17   : > { %2518 = vmatpush3.msra.mxu0 %v1438_v0  ;;  %s3075_s29 = scalar_select %p205_p10, %s3043_s19, 1 }
  0x18   : > { %s2268_s27 = sshll.u32 %s204_s23, 4  ;;  %s4775_s5 = scalar_lea.hbm %s4821_s4, %s2487_s20  ;;  %s4777_s27 = int_to_ptr.vmem [resolvable:$true] %s2268_s27 }
  0x19   : > { %s2490_s30 = sshll.u32 %s3075_s29, 10  ;;  %s2491_s10 = sshll.u32 %s3075_s29, 6 }
  0x1a   : > { %s3081_s7 = scalar_lea.vmem %s4817_s0, %s2490_s30  ;;  %s4320_s13 = scalar_lea.vmem %s4818_s1, %s2491_s10 }
  0x1b   : > { %v3084_v1 = vld [vmem:[%s3081_s7 + $0x80] sm:$0xff]  ;;  %v3087_v2 = vld [vmem:[%s3081_s7 + $0x88] sm:$0xff]  ;;  %v3090_v3 = vld [vmem:[%s3081_s7 + $0x90] sm:$0xff]  ;;  %s2256_s19 = scalar_lea.sflag [#allocation3], %s203_s14  ;;  %s2929_s6 = scalar_lea.vmem %s4777_s27, 16 }
  0x1c   : > { %v3093_v4 = vld [vmem:[%s3081_s7 + $0x98] sm:$0xff]  ;;  %v3096_v5 = vld [vmem:[%s3081_s7 + $0xa0] sm:$0xff]  ;;  %v3099_v6 = vld [vmem:[%s3081_s7 + $0xa8] sm:$0xff]  ;;  %p2930_p11 = scmp.ne.s32.totalorder %s4777_s27, %s2929_s6 }
  0x1d   : > { %v3102_v7 = vld [vmem:[%s3081_s7 + $0xc0] sm:$0xff]  ;;  %v3105_v8 = vld [vmem:[%s3081_s7 + $0xc8] sm:$0xff]  ;;  %v3108_v9 = vld [vmem:[%s3081_s7 + $0xd0] sm:$0xff] }
  0x1e   : > { %v3111_v10 = vld [vmem:[%s3081_s7 + $0xd8] sm:$0xff]  ;;  %v3114_v11 = vld [vmem:[%s3081_s7 + $0xe0] sm:$0xff]  ;;  %v3117_v12 = vld [vmem:[%s3081_s7 + $0xe8] sm:$0xff]  ;;  %v346_v13 = vmax.f32 %v3084_v1, %v3102_v7  ;;  %v347_v14 = vmax.f32 %v3087_v2, %v3105_v8  ;;  %v348_v15 = vmax.f32 %v3090_v3, %v3108_v9  ;;  %p2931_p12 = pnand %p2930_p11, %p3060_p5 }
  0x1f   : > { %v349_v16 = vmax.f32 %v3093_v4, %v3111_v10  ;;  %v350_v17 = vmax.f32 %v3096_v5, %v3114_v11  ;;  %v351_v18 = vmax.f32 %v3099_v6, %v3117_v12  ;;  %v3132_v19 = vld [vmem:[%s3081_s7 + $0x100] sm:$0xff]  ;;  %v3135_v20 = vld [vmem:[%s3081_s7 + $0x108] sm:$0xff]  ;;  %v3138_v21 = vld [vmem:[%s3081_s7 + $0x110] sm:$0xff] }
  0x20   : > { %v3141_v22 = vld [vmem:[%s3081_s7 + $0x118] sm:$0xff]  ;;  %v3144_v23 = vld [vmem:[%s3081_s7 + $0x120] sm:$0xff]  ;;  %v3147_v24 = vld [vmem:[%s3081_s7 + $0x128] sm:$0xff]  ;;  %v363_v25 = vmax.f32 %v346_v13, %v3132_v19  ;;  %v364_v26 = vmax.f32 %v347_v14, %v3135_v20  ;;  %v365_v27 = vmax.f32 %v348_v15, %v3138_v21  ;;  %p2932_p13 = pneg %p2931_p12 }
  0x21   : > { %v366_v28 = vmax.f32 %v349_v16, %v3141_v22  ;;  %v367_v29 = vmax.f32 %v350_v17, %v3144_v23  ;;  %v368_v30 = vmax.f32 %v351_v18, %v3147_v24  ;;  %v3156_v31 = vld [vmem:[%s3081_s7 + $0x140] sm:$0xff]  ;;  %v3159_v32 = vld [vmem:[%s3081_s7 + $0x148] sm:$0xff]  ;;  %v3162_v33 = vld [vmem:[%s3081_s7 + $0x150] sm:$0xff] }
  0x22   : > { %v3165_v34 = vld [vmem:[%s3081_s7 + $0x158] sm:$0xff]  ;;  %v3168_v35 = vld [vmem:[%s3081_s7 + $0x160] sm:$0xff]  ;;  %v3171_v36 = vld [vmem:[%s3081_s7 + $0x168] sm:$0xff]  ;;  %v380_v37 = vmax.f32 %v363_v25, %v3156_v31  ;;  %v381_v38 = vmax.f32 %v364_v26, %v3159_v32  ;;  %v382_v39 = vmax.f32 %v365_v27, %v3162_v33 }
  0x23   : > { %v383_v40 = vmax.f32 %v366_v28, %v3165_v34  ;;  %v384_v41 = vmax.f32 %v367_v29, %v3168_v35  ;;  %v385_v42 = vmax.f32 %v368_v30, %v3171_v36  ;;  %v3180_v43 = vld [vmem:[%s3081_s7 + $0x180] sm:$0xff]  ;;  %v3183_v44 = vld [vmem:[%s3081_s7 + $0x188] sm:$0xff]  ;;  %v3186_v45 = vld [vmem:[%s3081_s7 + $0x190] sm:$0xff] }
  0x24   : > { %v3189_v46 = vld [vmem:[%s3081_s7 + $0x198] sm:$0xff]  ;;  %v3192_v47 = vld [vmem:[%s3081_s7 + $0x1a0] sm:$0xff]  ;;  %v3195_v48 = vld [vmem:[%s3081_s7 + $0x1a8] sm:$0xff]  ;;  %v397_v49 = vmax.f32 %v380_v37, %v3180_v43  ;;  %v398_v50 = vmax.f32 %v381_v38, %v3183_v44  ;;  %v399_v51 = vmax.f32 %v382_v39, %v3186_v45 }
  0x25   : > { %v400_v52 = vmax.f32 %v383_v40, %v3189_v46  ;;  %v401_v53 = vmax.f32 %v384_v41, %v3192_v47  ;;  %v402_v54 = vmax.f32 %v385_v42, %v3195_v48  ;;  %v3204_v55 = vld [vmem:[%s3081_s7 + $0x1c0] sm:$0xff]  ;;  %v3207_v56 = vld [vmem:[%s3081_s7 + $0x1c8] sm:$0xff]  ;;  %v3210_v57 = vld [vmem:[%s3081_s7 + $0x1d0] sm:$0xff] }
  0x26   : > { %v3213_v58 = vld [vmem:[%s3081_s7 + $0x1d8] sm:$0xff]  ;;  %v3216_v59 = vld [vmem:[%s3081_s7 + $0x1e0] sm:$0xff]  ;;  %v3219_v60 = vld [vmem:[%s3081_s7 + $0x1e8] sm:$0xff]  ;;  %v414_v61 = vmax.f32 %v397_v49, %v3204_v55  ;;  %v415_v62 = vmax.f32 %v398_v50, %v3207_v56  ;;  %v416_v63 = vmax.f32 %v399_v51, %v3210_v57 }
  0x27   : > { %4973 = vst [vmem:[#allocation5_spill] sm:$0xff] %v3219_v60  ;;  %v417_v0 = vmax.f32 %v400_v52, %v3213_v58  ;;  %v418_v13 = vmax.f32 %v401_v53, %v3216_v59  ;;  %v419_v14 = vmax.f32 %v402_v54, %v3219_v60  ;;  %v3228_v15 = vld [vmem:[%s3081_s7 + $0x200] sm:$0xff]  ;;  %v3231_v16 = vld [vmem:[%s3081_s7 + $0x208] sm:$0xff]  ;;  %v3234_v17 = vld [vmem:[%s3081_s7 + $0x210] sm:$0xff] }
  0x28   : > { %4974 = vst [vmem:[#allocation6_spill] sm:$0xff] %v3228_v15  ;;  %4975 = vst [vmem:[#allocation7_spill] sm:$0xff] %v3231_v16  ;;  %v3237_v18 = vld [vmem:[%s3081_s7 + $0x218] sm:$0xff]  ;;  %v3240_v25 = vld [vmem:[%s3081_s7 + $0x220] sm:$0xff]  ;;  %v431_v27 = vmax.f32 %v414_v61, %v3228_v15  ;;  %v432_v28 = vmax.f32 %v415_v62, %v3231_v16  ;;  %v433_v29 = vmax.f32 %v416_v63, %v3234_v17 }
  0x29   : > { %4976 = vst [vmem:[#allocation8_spill] sm:$0xff] %v3234_v17  ;;  %4977 = vst [vmem:[#allocation9_spill] sm:$0xff] %v3237_v18  ;;  %v3243_v26 = vld [vmem:[%s3081_s7 + $0x228] sm:$0xff]  ;;  %v434_v30 = vmax.f32 %v417_v0, %v3237_v18  ;;  %v435_v37 = vmax.f32 %v418_v13, %v3240_v25  ;;  %v3252_v39 = vld [vmem:[%s3081_s7 + $0x240] sm:$0xff] }
  0x2a   : > { %4978 = vst [vmem:[#allocation10_spill] sm:$0xff] %v3240_v25  ;;  %4979 = vst [vmem:[#allocation11_spill] sm:$0xff] %v3243_v26  ;;  %v436_v38 = vmax.f32 %v419_v14, %v3243_v26  ;;  %v3255_v40 = vld [vmem:[%s3081_s7 + $0x248] sm:$0xff]  ;;  %v3258_v41 = vld [vmem:[%s3081_s7 + $0x250] sm:$0xff]  ;;  %v448_v51 = vmax.f32 %v431_v27, %v3252_v39 }
  0x2b   : > { %4980 = vst [vmem:[#allocation12_spill] sm:$0xff] %v3252_v39  ;;  %4981 = vst [vmem:[#allocation13_spill] sm:$0xff] %v3255_v40  ;;  %v3261_v42 = vld [vmem:[%s3081_s7 + $0x258] sm:$0xff]  ;;  %v3264_v49 = vld [vmem:[%s3081_s7 + $0x260] sm:$0xff]  ;;  %v449_v52 = vmax.f32 %v432_v28, %v3255_v40  ;;  %v450_v53 = vmax.f32 %v433_v29, %v3258_v41 }
  0x2c   : > { %4982 = vst [vmem:[#allocation14_spill] sm:$0xff] %v3258_v41  ;;  %4983 = vst [vmem:[#allocation15_spill] sm:$0xff] %v3261_v42  ;;  %v3267_v50 = vld [vmem:[%s3081_s7 + $0x268] sm:$0xff]  ;;  %v451_v54 = vmax.f32 %v434_v30, %v3261_v42  ;;  %v452_v61 = vmax.f32 %v435_v37, %v3264_v49  ;;  %v3276_v63 = vld [vmem:[%s3081_s7 + $0x280] sm:$0xff] }
  0x2d   : > { %4984 = vst [vmem:[#allocation16_spill] sm:$0xff] %v3264_v49  ;;  %4985 = vst [vmem:[#allocation17_spill] sm:$0xff] %v3267_v50  ;;  %v453_v62 = vmax.f32 %v436_v38, %v3267_v50  ;;  %v3279_v0 = vld [vmem:[%s3081_s7 + $0x288] sm:$0xff]  ;;  %v3282_v13 = vld [vmem:[%s3081_s7 + $0x290] sm:$0xff]  ;;  %v465_v29 = vmax.f32 %v448_v51, %v3276_v63 }
  0x2e   : > { %4986 = vst [vmem:[#allocation18_spill] sm:$0xff] %v3276_v63  ;;  %4987 = vst [vmem:[#allocation19_spill] sm:$0xff] %v3279_v0  ;;  %v3285_v14 = vld [vmem:[%s3081_s7 + $0x298] sm:$0xff]  ;;  %v3288_v27 = vld [vmem:[%s3081_s7 + $0x2a0] sm:$0xff]  ;;  %v466_v30 = vmax.f32 %v449_v52, %v3279_v0  ;;  %v467_v37 = vmax.f32 %v450_v53, %v3282_v13 }
  0x2f   : > { %4988 = vst [vmem:[#allocation20_spill] sm:$0xff] %v3282_v13  ;;  %4989 = vst [vmem:[#allocation21_spill] sm:$0xff] %v3285_v14  ;;  %v3291_v28 = vld [vmem:[%s3081_s7 + $0x2a8] sm:$0xff]  ;;  %v468_v38 = vmax.f32 %v451_v54, %v3285_v14  ;;  %v469_v50 = vmax.f32 %v452_v61, %v3288_v27  ;;  %v3300_v42 = vld [vmem:[%s3081_s7 + $0x2c0] sm:$0xff] }
  0x30   : > { %4990 = vst [vmem:[#allocation22_spill] sm:$0xff] %v3288_v27  ;;  %4991 = vst [vmem:[#allocation23_spill] sm:$0xff] %v3291_v28  ;;  %v470_v49 = vmax.f32 %v453_v62, %v3291_v28  ;;  %v3303_v41 = vld [vmem:[%s3081_s7 + $0x2c8] sm:$0xff]  ;;  %v3306_v51 = vld [vmem:[%s3081_s7 + $0x2d0] sm:$0xff]  ;;  %v482_v61 = vmax.f32 %v465_v29, %v3300_v42 }
  0x31   : > { %4992 = vst [vmem:[#allocation24_spill] sm:$0xff] %v3300_v42  ;;  %4993 = vst [vmem:[#allocation25_spill] sm:$0xff] %v3303_v41  ;;  %v3309_v52 = vld [vmem:[%s3081_s7 + $0x2d8] sm:$0xff]  ;;  %v3312_v53 = vld [vmem:[%s3081_s7 + $0x2e0] sm:$0xff]  ;;  %v483_v27 = vmax.f32 %v466_v30, %v3303_v41  ;;  %v484_v62 = vmax.f32 %v467_v37, %v3306_v51 }
  0x32   : > { %4994 = vst [vmem:[#allocation26_spill] sm:$0xff] %v3306_v51  ;;  %4995 = vst [vmem:[#allocation27_spill] sm:$0xff] %v3309_v52  ;;  %v3315_v54 = vld [vmem:[%s3081_s7 + $0x2e8] sm:$0xff]  ;;  %v485_v28 = vmax.f32 %v468_v38, %v3309_v52  ;;  %v486_v14 = vmax.f32 %v469_v50, %v3312_v53  ;;  %v3324_v0 = vld [vmem:[%s3081_s7 + $0x300] sm:$0xff] }
  0x33   : > { %4996 = vst [vmem:[#allocation28_spill] sm:$0xff] %v3312_v53  ;;  %4997 = vst [vmem:[#allocation29_spill] sm:$0xff] %v3315_v54  ;;  %v487_v13 = vmax.f32 %v470_v49, %v3315_v54  ;;  %v3327_v63 = vld [vmem:[%s3081_s7 + $0x308] sm:$0xff]  ;;  %v3330_v29 = vld [vmem:[%s3081_s7 + $0x310] sm:$0xff]  ;;  %v499_v50 = vmax.f32 %v482_v61, %v3324_v0 }
  0x34   : > { %4998 = vst [vmem:[#allocation30_spill] sm:$0xff] %v3324_v0  ;;  %4999 = vst [vmem:[#allocation31_spill] sm:$0xff] %v3327_v63  ;;  %v3333_v30 = vld [vmem:[%s3081_s7 + $0x318] sm:$0xff]  ;;  %v3336_v37 = vld [vmem:[%s3081_s7 + $0x320] sm:$0xff]  ;;  %v500_v49 = vmax.f32 %v483_v27, %v3327_v63  ;;  %v501_v54 = vmax.f32 %v484_v62, %v3330_v29 }
  0x35   : > { %5000 = vst [vmem:[#allocation32_spill] sm:$0xff] %v3330_v29  ;;  %5001 = vst [vmem:[#allocation33_spill] sm:$0xff] %v3333_v30  ;;  %v3339_v38 = vld [vmem:[%s3081_s7 + $0x328] sm:$0xff]  ;;  %v502_v53 = vmax.f32 %v485_v28, %v3333_v30  ;;  %v503_v52 = vmax.f32 %v486_v14, %v3336_v37  ;;  %v3348_v41 = vld [vmem:[%s3081_s7 + $0x340] sm:$0xff] }
  0x36   : > { %5002 = vst [vmem:[#allocation34_spill] sm:$0xff] %v3336_v37  ;;  %5003 = vst [vmem:[#allocation35_spill] sm:$0xff] %v3339_v38  ;;  %v504_v51 = vmax.f32 %v487_v13, %v3339_v38  ;;  %v3351_v42 = vld [vmem:[%s3081_s7 + $0x348] sm:$0xff]  ;;  %v3354_v61 = vld [vmem:[%s3081_s7 + $0x350] sm:$0xff]  ;;  %v516_v13 = vmax.f32 %v499_v50, %v3348_v41 }
  0x37   : > { %5004 = vst [vmem:[#allocation36_spill] sm:$0xff] %v3348_v41  ;;  %5005 = vst [vmem:[#allocation37_spill] sm:$0xff] %v3351_v42  ;;  %v3357_v27 = vld [vmem:[%s3081_s7 + $0x358] sm:$0xff]  ;;  %v3360_v62 = vld [vmem:[%s3081_s7 + $0x360] sm:$0xff]  ;;  %v517_v14 = vmax.f32 %v500_v49, %v3351_v42  ;;  %v518_v38 = vmax.f32 %v501_v54, %v3354_v61 }
  0x38   : > { %5006 = vst [vmem:[#allocation38_spill] sm:$0xff] %v3354_v61  ;;  %5007 = vst [vmem:[#allocation39_spill] sm:$0xff] %v3357_v27  ;;  %v3363_v28 = vld [vmem:[%s3081_s7 + $0x368] sm:$0xff]  ;;  %v2343_v37 = vld [vmem:[%s3081_s7 + $0x40] sm:$0xff]  ;;  %v519_v63 = vmax.f32 %v502_v53, %v3357_v27  ;;  %v520_v0 = vmax.f32 %v503_v52, %v3360_v62 }
  0x39   : > { %5008 = vst [vmem:[#allocation40_spill] sm:$0xff] %v3360_v62  ;;  %5009 = vst [vmem:[#allocation41_spill] sm:$0xff] %v3363_v28  ;;  %v2344_v30 = vld [vmem:[%s3081_s7 + $0x48] sm:$0xff]  ;;  %v2345_v29 = vld [vmem:[%s3081_s7 + $0x50] sm:$0xff]  ;;  %v521_v40 = vmax.f32 %v504_v51, %v3363_v28 }
  0x3a   : > { %v3375_v39 = vld [vmem:[%s3081_s7 + $0x380] sm:$0xff]  ;;  %v3378_v50 = vld [vmem:[%s3081_s7 + $0x388] sm:$0xff]  ;;  %v3381_v49 = vld [vmem:[%s3081_s7 + $0x390] sm:$0xff] }
  0x3b   : > { %v2346_v54 = vld [vmem:[%s3081_s7 + $0x58] sm:$0xff]  ;;  %v2347_v61 = vld [vmem:[%s3081_s7 + $0x60] sm:$0xff]  ;;  %v2348_v42 = vld [vmem:[%s3081_s7 + $0x68] sm:$0xff]  ;;  %v533_v28 = vmax.f32 %v516_v13, %v3375_v39  ;;  %v534_v62 = vmax.f32 %v517_v14, %v3378_v50  ;;  %v535_v27 = vmax.f32 %v518_v38, %v3381_v49 }
  0x3c   : > { %v3387_v53 = vld [vmem:[%s3081_s7 + $0x398] sm:$0xff]  ;;  %v3390_v52 = vld [vmem:[%s3081_s7 + $0x3a0] sm:$0xff]  ;;  %v3393_v51 = vld [vmem:[%s3081_s7 + $0x3a8] sm:$0xff] }
  0x3d   : > { %5010 = vst [vmem:[#allocation42_spill] sm:$0xff] %v3390_v52  ;;  %5011 = vst [vmem:[#allocation43_spill] sm:$0xff] %v3393_v51  ;;  %v536_v41 = vmax.f32 %v519_v63, %v3387_v53  ;;  %v537_v26 = vmax.f32 %v520_v0, %v3390_v52  ;;  %v538_v25 = vmax.f32 %v521_v40, %v3393_v51  ;;  %v3402_v18 = vld [vmem:[%s3081_s7 + $0x3c0] sm:$0xff]  ;;  %v3405_v17 = vld [vmem:[%s3081_s7 + $0x3c8] sm:$0xff] }
  0x3e   : > { %v3408_v16 = vld [vmem:[%s3081_s7 + $0x3d0] sm:$0xff]  ;;  %v3411_v15 = vld [vmem:[%s3081_s7 + $0x3d8] sm:$0xff]  ;;  %v3414_v60 = vld [vmem:[%s3081_s7 + $0x3e0] sm:$0xff]  ;;  %v3420_v38 = vmax.f32 %v533_v28, %v3402_v18  ;;  %v3423_v63 = vmax.f32 %v534_v62, %v3405_v17 }
  0x3f   : > { %v3417_v13 = vld [vmem:[%s3081_s7 + $0x3e8] sm:$0xff]  ;;  %v3426_v40 = vmax.f32 %v535_v27, %v3408_v16  ;;  %v3429_v0 = vmax.f32 %v536_v41, %v3411_v15  ;;  %v3432_v14 = vmax.f32 %v537_v26, %v3414_v60 }
  0x40   : > { %v3435_v51 = vmax.f32 %v538_v25, %v3417_v13  ;;  %v3438_v52 = vmax.f32 %v3420_v38, %v2343_v37  ;;  %v3441_v28 = vmax.f32 %v3423_v63, %v2344_v30 }
  0x41   : > { %5012 = vst [vmem:[#allocation44_spill] sm:$0xff] %v3429_v0  ;;  %5013 = vst [vmem:[#allocation45_spill] sm:$0xff] %v3432_v14  ;;  %v3444_v62 = vmax.f32 %v3426_v40, %v2345_v29  ;;  %v3447_v27 = vmax.f32 %v3429_v0, %v2346_v54  ;;  %v3450_v41 = vmax.f32 %v3432_v14, %v2347_v61 }
  0x42   : > { %5014 = vst [vmem:[#allocation46_spill] sm:$0xff] %v3435_v51  ;;  %v3453_v26 = vmax.f32 %v3435_v51, %v2348_v42  ;;  %v566_v25 = vsub.f32 %v3084_v1, %v3438_v52  ;;  %v567_v37 = vsub.f32 %v3087_v2, %v3441_v28  ;;  %v614_v1 = vsub.f32 %v3102_v7, %v3438_v52 }
  0x43   : > { %v568_v30 = vsub.f32 %v3090_v3, %v3444_v62  ;;  %v569_v29 = vsub.f32 %v3093_v4, %v3447_v27  ;;  %v570_v54 = vsub.f32 %v3096_v5, %v3450_v41  ;;  %v615_v2 = vsub.f32 %v3105_v8, %v3441_v28 }
  0x44   : > { %5015 = vst [vmem:[#allocation47_spill] sm:$0xff] %v3453_v26  ;;  %v571_v61 = vsub.f32 %v3099_v6, %v3453_v26  ;;  %v574_v42 = vmul.f32 1.442695, %v566_v25  ;;  %v576_v51 = vmul.f32 1.442695, %v567_v37  ;;  %v616_v4 = vsub.f32 %v3108_v9, %v3444_v62 }
  0x45   : > { %v578_v14 = vmul.f32 1.442695, %v568_v30  ;;  %v580_v0 = vmul.f32 1.442695, %v569_v29  ;;  %v582_v3 = vmul.f32 1.442695, %v570_v54  ;;  %v617_v6 = vsub.f32 %v3111_v10, %v3447_v27 }
  0x46   : > { %2617 = vpow2.f32 %v574_v42  ;;  %v584_v5 = vmul.f32 1.442695, %v571_v61  ;;  %v618_v25 = vsub.f32 %v3114_v11, %v3450_v41  ;;  %v622_v37 = vmul.f32 1.442695, %v614_v1 }
  0x47   : > { %2619 = vpow2.f32 %v576_v51  ;;  %v619_v7 = vsub.f32 %v3117_v12, %v3453_v26  ;;  %v624_v8 = vmul.f32 1.442695, %v615_v2  ;;  %v626_v30 = vmul.f32 1.442695, %v616_v4 }
  0x48   : > { %2621 = vpow2.f32 %v578_v14  ;;  %v662_v9 = vsub.f32 %v3132_v19, %v3438_v52  ;;  %v628_v51 = vmul.f32 1.442695, %v617_v6  ;;  %v663_v10 = vsub.f32 %v3135_v20, %v3441_v28 }
  0x49   : > { %2623 = vpow2.f32 %v580_v0  ;;  %v630_v14 = vmul.f32 1.442695, %v618_v25  ;;  %v664_v11 = vsub.f32 %v3138_v21, %v3444_v62  ;;  %v632_v0 = vmul.f32 1.442695, %v619_v7  ;;  %v3510_v25 = vld [vmem:[%s3081_s7 + $0xb0] sm:$0xff] }
  0x4a   : > { %2625 = vpow2.f32 %v582_v3  ;;  %v665_v12 = vsub.f32 %v3141_v22, %v3447_v27  ;;  %v666_v29 = vsub.f32 %v3144_v23, %v3450_v41  ;;  %v670_v19 = vmul.f32 1.442695, %v662_v9 }
  0x4b   : > { %2627 = vpow2.f32 %v584_v5  ;;  %v667_v54 = vsub.f32 %v3147_v24, %v3453_v26  ;;  %v672_v20 = vmul.f32 1.442695, %v663_v10  ;;  %v674_v21 = vmul.f32 1.442695, %v664_v11 }
  0x4c   : > { %2629 = vpow2.f32 %v622_v37  ;;  %v710_v42 = vsub.f32 %v3156_v31, %v3438_v52  ;;  %v676_v1 = vmul.f32 1.442695, %v665_v12  ;;  %v711_v23 = vsub.f32 %v3159_v32, %v3441_v28  ;;  %v3513_v32 = vld [vmem:[%s3081_s7 + $0xf0] sm:$0xff] }
  0x4d   : > { %2631 = vpow2.f32 %v624_v8  ;;  %v678_v24 = vmul.f32 1.442695, %v666_v29  ;;  %v712_v3 = vsub.f32 %v3162_v33, %v3444_v62  ;;  %v680_v5 = vmul.f32 1.442695, %v667_v54 }
  0x4e   : > { %2633 = vpow2.f32 %v626_v30  ;;  %v713_v31 = vsub.f32 %v3165_v34, %v3447_v27  ;;  %v714_v6 = vsub.f32 %v3168_v35, %v3450_v41  ;;  %v718_v7 = vmul.f32 1.442695, %v710_v42 }
  0x4f   : > { %2635 = vpow2.f32 %v628_v51  ;;  %v715_v33 = vsub.f32 %v3171_v36, %v3453_v26  ;;  %v720_v30 = vmul.f32 1.442695, %v711_v23  ;;  %v758_v34 = vsub.f32 %v3180_v43, %v3438_v52 }
  0x50   : > { %v3491_v61 = vpop.eup %2617  ;;  %2637 = vpow2.f32 %v630_v14  ;;  %v722_v35 = vmul.f32 1.442695, %v712_v3  ;;  %v759_v51 = vsub.f32 %v3183_v44, %v3441_v28  ;;  %v724_v11 = vmul.f32 1.442695, %v713_v31 }
  0x51   : > { %v3495_v22 = vpop.eup %2619  ;;  %2639 = vpow2.f32 %v632_v0  ;;  %v726_v0 = vmul.f32 1.442695, %v714_v6  ;;  %v760_v36 = vsub.f32 %v3186_v45, %v3444_v62  ;;  %v761_v43 = vsub.f32 %v3189_v46, %v3447_v27  ;;  %v5028_v6 = vld [vmem:[#allocation5_spill] sm:$0xff] }
  0x52   : > { %5016 = vst [vmem:[#allocation48_spill] sm:$0xff] %v3495_v22  ;;  %v3499_v2 = vpop.eup %2621  ;;  %2641 = vpow2.f32 %v670_v19  ;;  %v762_v44 = vsub.f32 %v3192_v47, %v3450_v41  ;;  %v763_v29 = vsub.f32 %v3195_v48, %v3453_v26  ;;  %v728_v54 = vmul.f32 1.442695, %v715_v33 }
  0x53   : > { %5017 = vst [vmem:[#allocation49_spill] sm:$0xff] %v3499_v2  ;;  %v3503_v4 = vpop.eup %2623  ;;  %2643 = vpow2.f32 %v672_v20  ;;  %v766_v20 = vmul.f32 1.442695, %v758_v34  ;;  %v806_v45 = vsub.f32 %v3204_v55, %v3438_v52  ;;  %v768_v42 = vmul.f32 1.442695, %v759_v51 }
  0x54   : > { %5018 = vst [vmem:[#allocation50_spill] sm:$0xff] %v3503_v4  ;;  %v3515_v37 = vpop.eup %2625  ;;  %2645 = vpow2.f32 %v674_v21  ;;  %v807_v46 = vsub.f32 %v3207_v56, %v3441_v28  ;;  %v808_v47 = vsub.f32 %v3210_v57, %v3444_v62  ;;  %v770_v48 = vmul.f32 1.442695, %v760_v36 }
  0x55   : > { %5019 = vst [vmem:[#allocation51_spill] sm:$0xff] %v3515_v37  ;;  %v3517_v8 = vpop.eup %2627  ;;  %2647 = vpow2.f32 %v676_v1  ;;  %v809_v23 = vsub.f32 %v3213_v58, %v3447_v27  ;;  %v810_v55 = vsub.f32 %v3216_v59, %v3450_v41  ;;  %v772_v3 = vmul.f32 1.442695, %v761_v43 }
  0x56   : > { %5020 = vst [vmem:[#allocation52_spill] sm:$0xff] %v3517_v8  ;;  %v3523_v9 = vpop.eup %2629  ;;  %2649 = vpow2.f32 %v678_v24  ;;  %v776_v31 = vmul.f32 1.442695, %v763_v29  ;;  %v814_v33 = vmul.f32 1.442695, %v806_v45  ;;  %v5033_v29 = vld [vmem:[#allocation7_spill] sm:$0xff] }
  0x57   : > { %v3529_v14 = vpop.eup %2631  ;;  %2651 = vpow2.f32 %v680_v5  ;;  %v774_v5 = vmul.f32 1.442695, %v762_v44  ;;  %v638_v57 = vadd.f32 %v3523_v9, %v3491_v61  ;;  %v818_v34 = vmul.f32 1.442695, %v808_v47  ;;  %v5036_v47 = vld [vmem:[#allocation9_spill] sm:$0xff] }
  0x58   : > { %5021 = vst [vmem:[#allocation53_spill] sm:$0xff] %v3529_v14  ;;  %v3533_v12 = vpop.eup %2633  ;;  %2653 = vpow2.f32 %v718_v7  ;;  %v811_v7 = vsub.f32 %v5028_v6, %v3453_v26  ;;  %v639_v59 = vadd.f32 %v3529_v14, %v3495_v22  ;;  %v820_v51 = vmul.f32 1.442695, %v809_v23 }
  0x59   : > { %5022 = vst [vmem:[#allocation54_spill] sm:$0xff] %v3533_v12  ;;  %v3541_v19 = vpop.eup %2635  ;;  %2655 = vpow2.f32 %v720_v30  ;;  %v816_v30 = vmul.f32 1.442695, %v807_v46  ;;  %v640_v44 = vadd.f32 %v3533_v12, %v3499_v2  ;;  %v857_v23 = vsub.f32 %v5036_v47, %v3447_v27  ;;  %v5040_v47 = vld [vmem:[#allocation11_spill] sm:$0xff] }
  0x5a   : > { %5023 = vst [vmem:[#allocation55_spill] sm:$0xff] %v3541_v19  ;;  %v3545_v21 = vpop.eup %2637  ;;  %2657 = vpow2.f32 %v722_v35 }
  0x5b   : > { %5024 = vst [vmem:[#allocation56_spill] sm:$0xff] %v3545_v21  ;;  %v3551_v1 = vpop.eup %2639  ;;  %2659 = vpow2.f32 %v724_v11  ;;  %v822_v11 = vmul.f32 1.442695, %v810_v55  ;;  %v5037_v55 = vld [vmem:[#allocation10_spill] sm:$0xff] }
  0x5c   : > { %5025 = vst [vmem:[#allocation57_spill] sm:$0xff] %v3551_v1  ;;  %v3557_v24 = vpop.eup %2641  ;;  %2661 = vpow2.f32 %v726_v0  ;;  %v5031_v0 = vld [vmem:[#allocation6_spill] sm:$0xff]  ;;  %v858_v6 = vsub.f32 %v5037_v55, %v3450_v41  ;;  %v859_v55 = vsub.f32 %v5040_v47, %v3453_v26 }
  0x5d   : > { %5026 = vst [vmem:[#allocation58_spill] sm:$0xff] %v3557_v24  ;;  %v3559_v56 = vpop.eup %2643  ;;  %2663 = vpow2.f32 %v728_v54  ;;  %v854_v36 = vsub.f32 %v5031_v0, %v3438_v52  ;;  %v855_v54 = vsub.f32 %v5033_v29, %v3441_v28  ;;  %v642_v29 = vadd.f32 %v3545_v21, %v3515_v37 }
  0x5e   : > { %5027 = vst [vmem:[#allocation59_spill] sm:$0xff] %v3559_v56  ;;  %v3565_v58 = vpop.eup %2645  ;;  %2665 = vpow2.f32 %v766_v20  ;;  %v5034_v20 = vld [vmem:[#allocation8_spill] sm:$0xff] }
  0x5f   : > { %5029 = vst [vmem:[#allocation5_spill] sm:$0xff] %v3565_v58  ;;  %v3569_v35 = vpop.eup %2647  ;;  %2667 = vpow2.f32 %v768_v42  ;;  %v856_v45 = vsub.f32 %v5034_v20, %v3444_v62  ;;  %v824_v42 = vmul.f32 1.442695, %v811_v7  ;;  %v643_v20 = vadd.f32 %v3551_v1, %v3517_v8  ;;  %v5043_v8 = vld [vmem:[#allocation12_spill] sm:$0xff] }
  0x60   : > { %5030 = vst [vmem:[#allocation60_spill] sm:$0xff] %v3569_v35  ;;  %v3573_v43 = vpop.eup %2649  ;;  %2669 = vpow2.f32 %v770_v48  ;;  %v641_v48 = vadd.f32 %v3541_v19, %v3503_v4  ;;  %v686_v7 = vadd.f32 %v3557_v24, %v638_v57  ;;  %v862_v10 = vmul.f32 1.442695, %v854_v36  ;;  %v5045_v36 = vld [vmem:[#allocation13_spill] sm:$0xff] }
  0x61   : > { %5032 = vst [vmem:[#allocation6_spill] sm:$0xff] %v3573_v43  ;;  %v3581_v46 = vpop.eup %2651  ;;  %2671 = vpow2.f32 %v772_v3  ;;  %v687_v19 = vadd.f32 %v3559_v56, %v639_v59  ;;  %v864_v4 = vmul.f32 1.442695, %v855_v54  ;;  %v866_v21 = vmul.f32 1.442695, %v856_v45  ;;  %v5048_v45 = vld [vmem:[#allocation15_spill] sm:$0xff] }
  0x62   : > { %5035 = vst [vmem:[#allocation7_spill] sm:$0xff] %v3581_v46  ;;  %v3587_v0 = vpop.eup %2653  ;;  %2673 = vpow2.f32 %v774_v5  ;;  %v868_v5 = vmul.f32 1.442695, %v857_v23  ;;  %v870_v1 = vmul.f32 1.442695, %v858_v6  ;;  %v902_v57 = vsub.f32 %v5043_v8, %v3438_v52  ;;  %v5049_v8 = vld [vmem:[#allocation16_spill] sm:$0xff] }
  0x63   : > { %5038 = vst [vmem:[#allocation8_spill] sm:$0xff] %v3587_v0  ;;  %v3595_v3 = vpop.eup %2655  ;;  %2675 = vpow2.f32 %v776_v31  ;;  %v688_v47 = vadd.f32 %v3565_v58, %v640_v44  ;;  %v903_v2 = vsub.f32 %v5045_v36, %v3441_v28  ;;  %v905_v23 = vsub.f32 %v5048_v45, %v3447_v27 }
  0x64   : > { %5039 = vst [vmem:[#allocation9_spill] sm:$0xff] %v3595_v3  ;;  %v3600_v12 = vpop.eup %2657  ;;  %2677 = vpow2.f32 %v814_v33  ;;  %v5046_v33 = vld [vmem:[#allocation14_spill] sm:$0xff]  ;;  %v906_v6 = vsub.f32 %v5049_v8, %v3450_v41  ;;  %v690_v44 = vadd.f32 %v3573_v43, %v642_v29  ;;  %v691_v36 = vadd.f32 %v3581_v46, %v643_v20 }
  0x65   : > { %5041 = vst [vmem:[#allocation10_spill] sm:$0xff] %v3600_v12  ;;  %v3603_v37 = vpop.eup %2659  ;;  %2679 = vpow2.f32 %v816_v30  ;;  %v904_v59 = vsub.f32 %v5046_v33, %v3444_v62  ;;  %v872_v30 = vmul.f32 1.442695, %v859_v55  ;;  %v5052_v55 = vld [vmem:[#allocation17_spill] sm:$0xff]  ;;  %v910_v58 = vmul.f32 1.442695, %v902_v57 }
  0x66   : > { %5042 = vst [vmem:[#allocation11_spill] sm:$0xff] %v3603_v37  ;;  %v3607_v31 = vpop.eup %2661  ;;  %2681 = vpow2.f32 %v818_v34  ;;  %v689_v34 = vadd.f32 %v3569_v35, %v641_v48  ;;  %v907_v45 = vsub.f32 %v5052_v55, %v3453_v26  ;;  %v735_v8 = vadd.f32 %v3595_v3, %v687_v19  ;;  %v5055_v43 = vld [vmem:[#allocation18_spill] sm:$0xff]  ;;  %v5057_v57 = vld [vmem:[#allocation19_spill] sm:$0xff] }
  0x67   : > { %5044 = vst [vmem:[#allocation12_spill] sm:$0xff] %v3607_v31  ;;  %v3614_v54 = vpop.eup %2663  ;;  %2683 = vpow2.f32 %v820_v51  ;;  %v734_v51 = vadd.f32 %v3587_v0, %v686_v7  ;;  %v912_v48 = vmul.f32 1.442695, %v903_v2  ;;  %v914_v35 = vmul.f32 1.442695, %v904_v59  ;;  %v5060_v59 = vld [vmem:[#allocation21_spill] sm:$0xff] }
  0x68   : > { %5047 = vst [vmem:[#allocation13_spill] sm:$0xff] %v3614_v54  ;;  %v3620_v56 = vpop.eup %2665  ;;  %2685 = vpow2.f32 %v822_v11  ;;  %v916_v11 = vmul.f32 1.442695, %v905_v23  ;;  %v918_v20 = vmul.f32 1.442695, %v906_v6  ;;  %v950_v7 = vsub.f32 %v5055_v43, %v3438_v52  ;;  %v5061_v43 = vld [vmem:[#allocation22_spill] sm:$0xff] }
  0x69   : > { %5050 = vst [vmem:[#allocation14_spill] sm:$0xff] %v3620_v56  ;;  %v3625_v33 = vpop.eup %2667  ;;  %2687 = vpow2.f32 %v824_v42  ;;  %v736_v55 = vadd.f32 %v3600_v12, %v688_v47  ;;  %v951_v46 = vsub.f32 %v5057_v57, %v3441_v28  ;;  %v953_v23 = vsub.f32 %v5060_v59, %v3447_v27 }
  0x6a   : > { %5051 = vst [vmem:[#allocation15_spill] sm:$0xff] %v3625_v33  ;;  %v3630_v14 = vpop.eup %2669  ;;  %2689 = vpow2.f32 %v862_v10  ;;  %v5058_v10 = vld [vmem:[#allocation20_spill] sm:$0xff]  ;;  %v954_v6 = vsub.f32 %v5061_v43, %v3450_v41  ;;  %v738_v47 = vadd.f32 %v3607_v31, %v690_v44  ;;  %v739_v57 = vadd.f32 %v3614_v54, %v691_v36 }
  0x6b   : > { %5053 = vst [vmem:[#allocation16_spill] sm:$0xff] %v3630_v14  ;;  %v3633_v29 = vpop.eup %2671  ;;  %2691 = vpow2.f32 %v864_v4  ;;  %v952_v2 = vsub.f32 %v5058_v10, %v3444_v62  ;;  %v920_v4 = vmul.f32 1.442695, %v907_v45  ;;  %v5064_v45 = vld [vmem:[#allocation23_spill] sm:$0xff]  ;;  %v958_v12 = vmul.f32 1.442695, %v950_v7 }
  0x6c   : > { %5054 = vst [vmem:[#allocation17_spill] sm:$0xff] %v3633_v29  ;;  %v3637_v42 = vpop.eup %2673  ;;  %2693 = vpow2.f32 %v866_v21  ;;  %v737_v21 = vadd.f32 %v3603_v37, %v689_v34  ;;  %v955_v59 = vsub.f32 %v5064_v45, %v3453_v26  ;;  %v783_v43 = vadd.f32 %v3625_v33, %v735_v8  ;;  %v5067_v31 = vld [vmem:[#allocation24_spill] sm:$0xff]  ;;  %v5069_v7 = vld [vmem:[#allocation25_spill] sm:$0xff] }
  0x6d   : > { %5056 = vst [vmem:[#allocation18_spill] sm:$0xff] %v3637_v42  ;;  %v3644_v19 = vpop.eup %2675  ;;  %2695 = vpow2.f32 %v868_v5  ;;  %v782_v5 = vadd.f32 %v3620_v56, %v734_v51  ;;  %v960_v34 = vmul.f32 1.442695, %v951_v46  ;;  %v962_v37 = vmul.f32 1.442695, %v952_v2  ;;  %v5072_v2 = vld [vmem:[#allocation27_spill] sm:$0xff] }
  0x6e   : > { %5059 = vst [vmem:[#allocation19_spill] sm:$0xff] %v3644_v19  ;;  %v3650_v3 = vpop.eup %2677  ;;  %2697 = vpow2.f32 %v870_v1  ;;  %v964_v1 = vmul.f32 1.442695, %v953_v23  ;;  %v966_v36 = vmul.f32 1.442695, %v954_v6  ;;  %v998_v51 = vsub.f32 %v5067_v31, %v3438_v52  ;;  %v5073_v31 = vld [vmem:[#allocation28_spill] sm:$0xff] }
  0x6f   : > { %5062 = vst [vmem:[#allocation20_spill] sm:$0xff] %v3650_v3  ;;  %v3655_v10 = vpop.eup %2679  ;;  %2699 = vpow2.f32 %v872_v30  ;;  %v784_v45 = vadd.f32 %v3630_v14, %v736_v55  ;;  %v999_v54 = vsub.f32 %v5069_v7, %v3441_v28  ;;  %v1001_v23 = vsub.f32 %v5072_v2, %v3447_v27 }
  0x70   : > { %5063 = vst [vmem:[#allocation21_spill] sm:$0xff] %v3655_v10  ;;  %v3660_v0 = vpop.eup %2681  ;;  %2701 = vpow2.f32 %v910_v58  ;;  %v5070_v58 = vld [vmem:[#allocation26_spill] sm:$0xff]  ;;  %v1002_v6 = vsub.f32 %v5073_v31, %v3450_v41  ;;  %v786_v55 = vadd.f32 %v3637_v42, %v738_v47  ;;  %v787_v7 = vadd.f32 %v3644_v19, %v739_v57 }
  0x71   : > { %5065 = vst [vmem:[#allocation22_spill] sm:$0xff] %v3660_v0  ;;  %v3663_v44 = vpop.eup %2683  ;;  %2703 = vpow2.f32 %v912_v48  ;;  %v1000_v46 = vsub.f32 %v5070_v58, %v3444_v62  ;;  %v968_v48 = vmul.f32 1.442695, %v955_v59  ;;  %v5076_v59 = vld [vmem:[#allocation29_spill] sm:$0xff]  ;;  %v1006_v14 = vmul.f32 1.442695, %v998_v51 }
  0x72   : > { %5066 = vst [vmem:[#allocation23_spill] sm:$0xff] %v3663_v44  ;;  %v3667_v30 = vpop.eup %2685  ;;  %2705 = vpow2.f32 %v914_v35  ;;  %v785_v35 = vadd.f32 %v3633_v29, %v737_v21  ;;  %v1003_v2 = vsub.f32 %v5076_v59, %v3453_v26  ;;  %v831_v31 = vadd.f32 %v3655_v10, %v783_v43  ;;  %v5079_v42 = vld [vmem:[#allocation30_spill] sm:$0xff]  ;;  %v5081_v51 = vld [vmem:[#allocation31_spill] sm:$0xff] }
  0x73   : > { %5068 = vst [vmem:[#allocation24_spill] sm:$0xff] %v3667_v30  ;;  %v3674_v8 = vpop.eup %2687  ;;  %2707 = vpow2.f32 %v916_v11  ;;  %v830_v11 = vadd.f32 %v3650_v3, %v782_v5  ;;  %v1008_v21 = vmul.f32 1.442695, %v999_v54  ;;  %v1010_v29 = vmul.f32 1.442695, %v1000_v46  ;;  %v5084_v46 = vld [vmem:[#allocation33_spill] sm:$0xff] }
  0x74   : > { %5071 = vst [vmem:[#allocation25_spill] sm:$0xff] %v3674_v8  ;;  %v3680_v33 = vpop.eup %2689  ;;  %2709 = vpow2.f32 %v918_v20  ;;  %v1012_v20 = vmul.f32 1.442695, %v1001_v23  ;;  %v1014_v57 = vmul.f32 1.442695, %v1002_v6  ;;  %v1046_v5 = vsub.f32 %v5079_v42, %v3438_v52  ;;  %v5085_v42 = vld [vmem:[#allocation34_spill] sm:$0xff] }
  0x75   : > { %5074 = vst [vmem:[#allocation26_spill] sm:$0xff] %v3680_v33  ;;  %v3685_v58 = vpop.eup %2691  ;;  %2711 = vpow2.f32 %v920_v4  ;;  %v832_v59 = vadd.f32 %v3660_v0, %v784_v45  ;;  %v1047_v19 = vsub.f32 %v5081_v51, %v3441_v28  ;;  %v1049_v23 = vsub.f32 %v5084_v46, %v3447_v27 }
  0x76   : > { %5075 = vst [vmem:[#allocation27_spill] sm:$0xff] %v3685_v58  ;;  %v3690_v56 = vpop.eup %2693  ;;  %2713 = vpow2.f32 %v958_v12  ;;  %v5082_v12 = vld [vmem:[#allocation32_spill] sm:$0xff]  ;;  %v1050_v6 = vsub.f32 %v5085_v42, %v3450_v41  ;;  %v834_v45 = vadd.f32 %v3667_v30, %v786_v55  ;;  %v835_v51 = vadd.f32 %v3674_v8, %v787_v7 }
  0x77   : > { %5077 = vst [vmem:[#allocation28_spill] sm:$0xff] %v3690_v56  ;;  %v3693_v47 = vpop.eup %2695  ;;  %2715 = vpow2.f32 %v960_v34  ;;  %v1048_v54 = vsub.f32 %v5082_v12, %v3444_v62  ;;  %v1016_v34 = vmul.f32 1.442695, %v1003_v2  ;;  %v5088_v2 = vld [vmem:[#allocation35_spill] sm:$0xff]  ;;  %v1054_v0 = vmul.f32 1.442695, %v1046_v5 }
  0x78   : > { %5078 = vst [vmem:[#allocation29_spill] sm:$0xff] %v3693_v47  ;;  %v3697_v4 = vpop.eup %2697  ;;  %2717 = vpow2.f32 %v962_v37  ;;  %v833_v37 = vadd.f32 %v3663_v44, %v785_v35  ;;  %v1051_v46 = vsub.f32 %v5088_v2, %v3453_v26  ;;  %v879_v42 = vadd.f32 %v3685_v58, %v831_v31  ;;  %v5091_v30 = vld [vmem:[#allocation36_spill] sm:$0xff]  ;;  %v5093_v5 = vld [vmem:[#allocation37_spill] sm:$0xff] }
  0x79   : > { %5080 = vst [vmem:[#allocation30_spill] sm:$0xff] %v3697_v4  ;;  %v3704_v43 = vpop.eup %2699  ;;  %2719 = vpow2.f32 %v964_v1  ;;  %v878_v1 = vadd.f32 %v3680_v33, %v830_v11  ;;  %v1056_v35 = vmul.f32 1.442695, %v1047_v19  ;;  %v1058_v44 = vmul.f32 1.442695, %v1048_v54  ;;  %v5096_v54 = vld [vmem:[#allocation39_spill] sm:$0xff] }
  0x7a   : > { %5083 = vst [vmem:[#allocation31_spill] sm:$0xff] %v3704_v43  ;;  %v3710_v10 = vpop.eup %2701  ;;  %2721 = vpow2.f32 %v966_v36  ;;  %v1060_v36 = vmul.f32 1.442695, %v1049_v23  ;;  %v1062_v7 = vmul.f32 1.442695, %v1050_v6  ;;  %v1094_v11 = vsub.f32 %v5091_v30, %v3438_v52  ;;  %v5097_v30 = vld [vmem:[#allocation40_spill] sm:$0xff] }
  0x7b   : > { %5086 = vst [vmem:[#allocation32_spill] sm:$0xff] %v3710_v10  ;;  %v3715_v12 = vpop.eup %2703  ;;  %2723 = vpow2.f32 %v968_v48  ;;  %v880_v2 = vadd.f32 %v3690_v56, %v832_v59  ;;  %v1095_v8 = vsub.f32 %v5093_v5, %v3441_v28  ;;  %v1097_v23 = vsub.f32 %v5096_v54, %v3447_v27 }
  0x7c   : > { %5087 = vst [vmem:[#allocation33_spill] sm:$0xff] %v3715_v12  ;;  %v3720_v3 = vpop.eup %2705  ;;  %2725 = vpow2.f32 %v1006_v14  ;;  %v5094_v14 = vld [vmem:[#allocation38_spill] sm:$0xff]  ;;  %v1098_v6 = vsub.f32 %v5097_v30, %v3450_v41  ;;  %v882_v59 = vadd.f32 %v3697_v4, %v834_v45  ;;  %v883_v5 = vadd.f32 %v3704_v43, %v835_v51 }
  0x7d   : > { %5089 = vst [vmem:[#allocation34_spill] sm:$0xff] %v3720_v3  ;;  %v3723_v55 = vpop.eup %2707  ;;  %2727 = vpow2.f32 %v1008_v21  ;;  %v1096_v19 = vsub.f32 %v5094_v14, %v3444_v62  ;;  %v1064_v21 = vmul.f32 1.442695, %v1051_v46  ;;  %v5100_v46 = vld [vmem:[#allocation41_spill] sm:$0xff]  ;;  %v1102_v56 = vmul.f32 1.442695, %v1094_v11 }
  0x7e   : > { %5090 = vst [vmem:[#allocation35_spill] sm:$0xff] %v3723_v55  ;;  %v3727_v48 = vpop.eup %2709  ;;  %2729 = vpow2.f32 %v1010_v29  ;;  %v881_v29 = vadd.f32 %v3693_v47, %v833_v37  ;;  %v1099_v54 = vsub.f32 %v5100_v46, %v3453_v26  ;;  %v927_v30 = vadd.f32 %v3715_v12, %v879_v42 }
  0x7f   : > { %5092 = vst [vmem:[#allocation36_spill] sm:$0xff] %v3727_v48  ;;  %v3734_v31 = vpop.eup %2711  ;;  %2731 = vpow2.f32 %v1012_v20  ;;  %v926_v20 = vadd.f32 %v3710_v10, %v878_v1  ;;  %v1104_v37 = vmul.f32 1.442695, %v1095_v8  ;;  %v1106_v47 = vmul.f32 1.442695, %v1096_v19 }
  0x80   : > { %5095 = vst [vmem:[#allocation37_spill] sm:$0xff] %v3734_v31  ;;  %v3740_v58 = vpop.eup %2713  ;;  %2733 = vpow2.f32 %v1014_v57  ;;  %v1108_v57 = vmul.f32 1.442695, %v1097_v23  ;;  %v1110_v51 = vmul.f32 1.442695, %v1098_v6  ;;  %v1142_v1 = vsub.f32 %v3375_v39, %v3438_v52  ;;  %v5105_v39 = vld [vmem:[#allocation42_spill] sm:$0xff] }
  0x81   : > { %5098 = vst [vmem:[#allocation38_spill] sm:$0xff] %v3740_v58  ;;  %v3745_v14 = vpop.eup %2715  ;;  %2735 = vpow2.f32 %v1016_v34  ;;  %v928_v46 = vadd.f32 %v3720_v3, %v880_v2  ;;  %v1143_v11 = vsub.f32 %v3378_v50, %v3441_v28  ;;  %v1112_v42 = vmul.f32 1.442695, %v1099_v54  ;;  %v3848_v3 = vld [vmem:[%s3081_s7 + $0x1b8] sm:$0xff] }
  0x82   : > { %5099 = vst [vmem:[#allocation39_spill] sm:$0xff] %v3745_v14  ;;  %v3750_v33 = vpop.eup %2717  ;;  %2737 = vpow2.f32 %v1054_v0  ;;  %v1144_v0 = vsub.f32 %v3381_v49, %v3444_v62  ;;  %v1146_v19 = vsub.f32 %v5105_v39, %v3450_v41  ;;  %v930_v50 = vadd.f32 %v3727_v48, %v882_v59  ;;  %v5107_v49 = vld [vmem:[#allocation43_spill] sm:$0xff] }
  0x83   : > { %5101 = vst [vmem:[#allocation40_spill] sm:$0xff] %v3750_v33  ;;  %v3753_v45 = vpop.eup %2719  ;;  %2739 = vpow2.f32 %v1056_v35  ;;  %v1145_v35 = vsub.f32 %v3387_v53, %v3447_v27  ;;  %v1147_v2 = vsub.f32 %v5107_v49, %v3453_v26  ;;  %v974_v53 = vadd.f32 %v3740_v58, %v926_v20  ;;  %v3784_v48 = vld [vmem:[%s3081_s7 + $0x130] sm:$0xff] }
  0x84   : > { %5102 = vst [vmem:[#allocation41_spill] sm:$0xff] %v3753_v45  ;;  %v3757_v34 = vpop.eup %2721  ;;  %2741 = vpow2.f32 %v1058_v44  ;;  %v929_v44 = vadd.f32 %v3723_v55, %v881_v29  ;;  %v1150_v54 = vmul.f32 1.442695, %v1142_v1  ;;  %v975_v29 = vadd.f32 %v3745_v14, %v927_v30  ;;  %v3793_v1 = vld [vmem:[%s3081_s7 + $0xf8] sm:$0xff]  ;;  %v3854_v14 = vld [vmem:[%s3081_s7 + $0x230] sm:$0xff] }
  0x85   : > { %5103 = vst [vmem:[#allocation61_spill] sm:$0xff] %v3757_v34  ;;  %v3764_v8 = vpop.eup %2723  ;;  %2743 = vpow2.f32 %v1060_v36  ;;  %v931_v36 = vadd.f32 %v3734_v31, %v883_v5  ;;  %v1154_v59 = vmul.f32 1.442695, %v1144_v0  ;;  %v976_v4 = vadd.f32 %v3750_v33, %v928_v46  ;;  %v3801_v0 = vld [vmem:[%s3081_s7 + $0x170] sm:$0xff] }
  0x86   : > { %5104 = vst [vmem:[#allocation62_spill] sm:$0xff] %v3764_v8  ;;  %v3770_v23 = vpop.eup %2725  ;;  %2745 = vpow2.f32 %v1062_v7  ;;  %v1152_v7 = vmul.f32 1.442695, %v1143_v11  ;;  %v1156_v5 = vmul.f32 1.442695, %v1145_v35  ;;  %v1190_v11 = vsub.f32 %v3402_v18, %v3438_v52  ;;  %v3840_v33 = vld [vmem:[%s3081_s7 + $0x1f0] sm:$0xff] }
  0x87   : > { %5106 = vst [vmem:[#allocation42_spill] sm:$0xff] %v3770_v23  ;;  %v3776_v6 = vpop.eup %2727  ;;  %2747 = vpow2.f32 %v1064_v21  ;;  %v1158_v20 = vmul.f32 1.442695, %v1146_v19  ;;  %v3790_v21 = vld [vmem:[%s3081_s7 + $0xb8] sm:$0xff]  ;;  %v1160_v30 = vmul.f32 1.442695, %v1147_v2  ;;  %v1191_v46 = vsub.f32 %v3405_v17, %v3441_v28 }
  0x88   : > { %5108 = vst [vmem:[#allocation43_spill] sm:$0xff] %v3776_v6  ;;  %v3780_v39 = vpop.eup %2729  ;;  %2749 = vpow2.f32 %v1102_v56  ;;  %v977_v56 = vadd.f32 %v3753_v45, %v929_v44  ;;  %v1192_v35 = vsub.f32 %v3408_v16, %v3444_v62  ;;  %v3814_v44 = vld [vmem:[%s3081_s7 + $0x138] sm:$0xff]  ;;  %v978_v2 = vadd.f32 %v3757_v34, %v930_v50  ;;  %v3822_v17 = vld [vmem:[%s3081_s7 + $0x1b0] sm:$0xff] }
  0x89   : > { %5109 = vst [vmem:[#allocation63_spill] sm:$0xff] %v3780_v39  ;;  %v3786_v49 = vpop.eup %2731  ;;  %2751 = vpow2.f32 %v1104_v37  ;;  %v353_v16 = vmax.f32 %v3790_v21, %v3793_v1  ;;  %v1194_v45 = vsub.f32 %v3414_v60, %v3450_v41  ;;  %v1198_v55 = vmul.f32 1.442695, %v1190_v11 }
  0x8a   : > { %5110 = vst [vmem:[#allocation64_spill] sm:$0xff] %v3786_v49  ;;  %v3795_v31 = vpop.eup %2733  ;;  %2753 = vpow2.f32 %v1106_v47  ;;  %v5113_v47 = vmax.f32 %v3510_v25, %v3513_v32  ;;  %v1022_v60 = vadd.f32 %v3770_v23, %v974_v53  ;;  %v1202_v11 = vmul.f32 1.442695, %v1192_v35  ;;  %v3868_v35 = vld [vmem:[%s3081_s7 + $0x270] sm:$0xff] }
  0x8b   : > { %5111 = vst [vmem:[#allocation65_spill] sm:$0xff] %v3795_v31  ;;  %v3803_v37 = vpop.eup %2735  ;;  %2755 = vpow2.f32 %v1108_v57  ;;  %v1193_v57 = vsub.f32 %v3411_v15, %v3447_v27  ;;  %v1195_v15 = vsub.f32 %v3417_v13, %v3453_v26  ;;  %v1023_v13 = vadd.f32 %v3776_v6, %v975_v29 }
  0x8c   : > { %5112 = vst [vmem:[#allocation66_spill] sm:$0xff] %v3803_v37  ;;  %v369_v19 = vmax.f32 %v5113_v47, %v3784_v48  ;;  %v3816_v18 = vpop.eup %2737  ;;  %2757 = vpow2.f32 %v1110_v51  ;;  %v979_v47 = vadd.f32 %v3764_v8, %v931_v36  ;;  %v3833_v51 = vld [vmem:[%s3081_s7 + $0x178] sm:$0xff]  ;;  %v370_v36 = vmax.f32 %v353_v16, %v3814_v44 }
  0x8d   : > { %5114 = vst [vmem:[#allocation67_spill] sm:$0xff] %v3816_v18  ;;  %v3826_v43 = vpop.eup %2739  ;;  %2759 = vpow2.f32 %v1112_v42  ;;  %v1024_v53 = vadd.f32 %v3780_v39, %v976_v4  ;;  %v1025_v29 = vadd.f32 %v3786_v49, %v977_v56  ;;  %v1026_v4 = vadd.f32 %v3795_v31, %v978_v2  ;;  %v3892_v49 = vld [vmem:[%s3081_s7 + $0x278] sm:$0xff] }
  0x8e   : > { %5115 = vst [vmem:[#allocation68_spill] sm:$0xff] %v3826_v43  ;;  %v386_v50 = vmax.f32 %v369_v19, %v3801_v0  ;;  %v3835_v34 = vpop.eup %2741  ;;  %2761 = vpow2.f32 %v1150_v54  ;;  %v1200_v19 = vmul.f32 1.442695, %v1191_v46  ;;  %v387_v16 = vmax.f32 %v370_v36, %v3833_v51 }
  0x8f   : > { %5116 = vst [vmem:[#allocation69_spill] sm:$0xff] %v3835_v34  ;;  %v3843_v42 = vpop.eup %2743  ;;  %2763 = vpow2.f32 %v1152_v7  ;;  %v1204_v7 = vmul.f32 1.442695, %v1193_v57  ;;  %v3877_v57 = vld [vmem:[%s3081_s7 + $0x238] sm:$0xff] }
  0x90   : > { %5117 = vst [vmem:[#allocation70_spill] sm:$0xff] %v3843_v42  ;;  %v403_v8 = vmax.f32 %v386_v50, %v3822_v17  ;;  %v3850_v54 = vpop.eup %2745  ;;  %2765 = vpow2.f32 %v1154_v59  ;;  %v3862_v50 = vld [vmem:[%s3081_s7 + $0x1f8] sm:$0xff]  ;;  %v1206_v59 = vmul.f32 1.442695, %v1194_v45  ;;  %v404_v36 = vmax.f32 %v387_v16, %v3848_v3  ;;  %v3884_v16 = vld [vmem:[%s3081_s7 + $0x2b0] sm:$0xff] }
  0x91   : > { %5118 = vst [vmem:[#allocation71_spill] sm:$0xff] %v3850_v54  ;;  %v3857_v12 = vpop.eup %2747  ;;  %2767 = vpow2.f32 %v1156_v5  ;;  %v1027_v45 = vadd.f32 %v3803_v37, %v979_v47 }
  0x92   : > { %5119 = vst [vmem:[#allocation72_spill] sm:$0xff] %v3857_v12  ;;  %v420_v46 = vmax.f32 %v403_v8, %v3840_v33  ;;  %v3864_v23 = vpop.eup %2749  ;;  %2769 = vpow2.f32 %v1158_v20  ;;  %v1070_v8 = vadd.f32 %v3816_v18, %v1022_v60  ;;  %v1071_v20 = vadd.f32 %v3826_v43, %v1023_v13  ;;  %v3898_v13 = vld [vmem:[%s3081_s7 + $0x2f0] sm:$0xff] }
  0x93   : > { %5120 = vst [vmem:[#allocation73_spill] sm:$0xff] %v3864_v23  ;;  %v3871_v6 = vpop.eup %2751  ;;  %2771 = vpow2.f32 %v1160_v30  ;;  %v421_v2 = vmax.f32 %v404_v36, %v3862_v50  ;;  %v1072_v30 = vadd.f32 %v3835_v34, %v1024_v53  ;;  %v1208_v60 = vmul.f32 1.442695, %v1195_v15 }
  0x94   : > { %5121 = vst [vmem:[#allocation74_spill] sm:$0xff] %v3871_v6  ;;  %v437_v5 = vmax.f32 %v420_v46, %v3854_v14  ;;  %v3879_v56 = vpop.eup %2753  ;;  %2773 = vpow2.f32 %v1198_v55  ;;  %v1073_v55 = vadd.f32 %v3843_v42, %v1025_v29  ;;  %v1118_v15 = vadd.f32 %v3864_v23, %v1070_v8 }
  0x95   : > { %5122 = vst [vmem:[#allocation75_spill] sm:$0xff] %v3879_v56  ;;  %v3887_v31 = vpop.eup %2755  ;;  %2775 = vpow2.f32 %v1200_v19  ;;  %v438_v36 = vmax.f32 %v421_v2, %v3877_v57  ;;  %v1074_v19 = vadd.f32 %v3850_v54, %v1026_v4  ;;  %v1119_v29 = vadd.f32 %v3871_v6, %v1071_v20  ;;  %v3914_v2 = vld [vmem:[%s3081_s7 + $0x330] sm:$0xff] }
  0x96   : > { %5123 = vst [vmem:[#allocation76_spill] sm:$0xff] %v3887_v31  ;;  %v454_v46 = vmax.f32 %v437_v5, %v3868_v35  ;;  %v3894_v47 = vpop.eup %2757  ;;  %2777 = vpow2.f32 %v1202_v11  ;;  %v3907_v5 = vld [vmem:[%s3081_s7 + $0x2b8] sm:$0xff]  ;;  %v1075_v11 = vadd.f32 %v3857_v12, %v1027_v45  ;;  %v1121_v45 = vadd.f32 %v3887_v31, %v1073_v55  ;;  %v3941_v55 = vld [vmem:[%s3081_s7 + $0x3b0] sm:$0xff] }
  0x97   : > { %5124 = vst [vmem:[#allocation77_spill] sm:$0xff] %v3894_v47  ;;  %v3901_v37 = vpop.eup %2759  ;;  %2779 = vpow2.f32 %v1204_v7  ;;  %v455_v42 = vmax.f32 %v438_v36, %v3892_v49  ;;  %v1120_v7 = vadd.f32 %v3879_v56, %v1072_v30  ;;  %v1122_v12 = vadd.f32 %v3894_v47, %v1074_v19  ;;  %v3955_v47 = vld [vmem:[%s3081_s7 + $0x3f0] sm:$0xff] }
  0x98   : > { %5125 = vst [vmem:[#allocation78_spill] sm:$0xff] %v3901_v37  ;;  %v471_v53 = vmax.f32 %v454_v46, %v3884_v16  ;;  %v3909_v34 = vpop.eup %2761  ;;  %2781 = vpow2.f32 %v1206_v59  ;;  %v3922_v46 = vld [vmem:[%s3081_s7 + $0x2f8] sm:$0xff]  ;;  %v3928_v59 = vld [vmem:[%s3081_s7 + $0x370] sm:$0xff]  ;;  %v1123_v56 = vadd.f32 %v3901_v37, %v1075_v11 }
  0x99   : > { %5126 = vst [vmem:[#allocation79_spill] sm:$0xff] %v3909_v34  ;;  %v3917_v4 = vpop.eup %2763  ;;  %2783 = vpow2.f32 %v1208_v60  ;;  %v472_v20 = vmax.f32 %v455_v42, %v3907_v5  ;;  %v1166_v30 = vadd.f32 %v3909_v34, %v1118_v15  ;;  %v3945_v42 = vld [vmem:[%s3081_s7 + $0x338] sm:$0xff] }
  0x9a   : > { %5127 = vst [vmem:[#allocation80_spill] sm:$0xff] %v3917_v4  ;;  %v488_v8 = vmax.f32 %v471_v53, %v3898_v13  ;;  %v3924_v54 = vpop.eup %2765  ;;  %v1167_v39 = vadd.f32 %v3917_v4, %v1119_v29 }
  0x9b   : > { %5128 = vst [vmem:[#allocation81_spill] sm:$0xff] %v3924_v54  ;;  %v3931_v36 = vpop.eup %2767  ;;  %v489_v31 = vmax.f32 %v472_v20, %v3922_v46  ;;  %v1168_v19 = vadd.f32 %v3924_v54, %v1120_v7 }
  0x9c   : > { %5129 = vst [vmem:[#allocation82_spill] sm:$0xff] %v3931_v36  ;;  %v505_v60 = vmax.f32 %v488_v8, %v3914_v2  ;;  %v3936_v53 = vpop.eup %2769  ;;  %v1169_v11 = vadd.f32 %v3931_v36, %v1121_v45  ;;  %v2349_v45 = vld [vmem:[%s3081_s7 + $0x70] sm:$0xff]  ;;  %v3973_v36 = vld [vmem:[%s3081_s7 + $0x378] sm:$0xff] }
  0x9d   : > { %5130 = vst [vmem:[#allocation83_spill] sm:$0xff] %v3936_v53  ;;  %v3947_v6 = vpop.eup %2771  ;;  %v1170_v20 = vadd.f32 %v3936_v53, %v1122_v12  ;;  %v506_v34 = vmax.f32 %v489_v31, %v3945_v42 }
  0x9e   : > { %5131 = vst [vmem:[#allocation84_spill] sm:$0xff] %v3947_v6  ;;  %v522_v15 = vmax.f32 %v505_v60, %v3928_v59  ;;  %v3951_v8 = vpop.eup %2773  ;;  %v1171_v60 = vadd.f32 %v3947_v6, %v1123_v56  ;;  %v4019_v6 = vld [vmem:[%s3081_s7 + $0x3f8] sm:$0xff] }
  0x9f   : > { %5132 = vst [vmem:[#allocation85_spill] sm:$0xff] %v3951_v8  ;;  %v3957_v29 = vpop.eup %2775  ;;  %v3961_v37 = vadd.f32 %v3951_v8, %v1166_v30 }
  0xa0   : > { %5133 = vst [vmem:[#allocation86_spill] sm:$0xff] %v3957_v29  ;;  %v539_v4 = vmax.f32 %v522_v15, %v3941_v55  ;;  %v3965_v7 = vpop.eup %2777  ;;  %v3969_v54 = vadd.f32 %v3957_v29, %v1167_v39 }
  0xa1   : > { %5134 = vst [vmem:[#allocation87_spill] sm:$0xff] %v3965_v7  ;;  %v3975_v43 = vpop.eup %2779  ;;  %v3978_v12 = vadd.f32 %v3965_v7, %v1168_v19  ;;  %2785 = vlog2.f32 %v3961_v37  ;;  %vm1310_vm0 = vcmp.gt.f32.partialorder %v3961_v37, 0.0 }
  0xa2   : > { %5135 = vst [vmem:[#allocation88_spill] sm:$0xff] %v3975_v43  ;;  %v3982_v31 = vmax.f32 %v539_v4, %v3955_v47  ;;  %v3984_v30 = vpop.eup %2781  ;;  %v3987_v56 = vadd.f32 %v3975_v43, %v1169_v11  ;;  %2787 = vlog2.f32 %v3969_v54  ;;  %v523_v4 = vmax.f32 %v506_v34, %v3973_v36  ;;  %v4005_v11 = vld [vmem:[%s3081_s7 + $0x3b8] sm:$0xff] }
  0xa3   : > { %5136 = vst [vmem:[#allocation89_spill] sm:$0xff] %v3978_v12  ;;  %5137 = vst [vmem:[#allocation90_spill] sm:$0xff] %v3984_v30  ;;  %v3990_v39 = vpop.eup %2783  ;;  %v3993_v15 = vadd.f32 %v3984_v30, %v1170_v20  ;;  %2789 = vlog2.f32 %v3978_v12  ;;  %vm1311_vm1 = vcmp.gt.f32.partialorder %v3969_v54, 0.0  ;;  %vm1312_vm2 = vcmp.gt.f32.partialorder %v3978_v12, 0.0 }
  0xa4   : > { %5138 = vst [vmem:[#allocation91_spill] sm:$0xff] %v3987_v56  ;;  %5139 = vst [vmem:[#allocation92_spill] sm:$0xff] %v3990_v39  ;;  %v3997_v19 = vmax.f32 %v3982_v31, %v2349_v45  ;;  %v4001_v53 = vadd.f32 %v3990_v39, %v1171_v60  ;;  %2791 = vlog2.f32 %v3987_v56  ;;  %v540_v60 = vmax.f32 %v523_v4, %v4005_v11 }
  0xa5   : > { %5140 = vst [vmem:[#allocation93_spill] sm:$0xff] %v3993_v15  ;;  %2793 = vlog2.f32 %v3993_v15  ;;  %vm1313_vm3 = vcmp.gt.f32.partialorder %v3987_v56, 0.0  ;;  %vm1314_vm4 = vcmp.gt.f32.partialorder %v3993_v15, 0.0 }
  0xa6   : > { %5141 = vst [vmem:[#allocation94_spill] sm:$0xff] %v4001_v53  ;;  %v572_v20 = vsub.f32 %v3510_v25, %v3997_v19  ;;  %v620_v30 = vsub.f32 %v3513_v32, %v3997_v19  ;;  %2795 = vlog2.f32 %v4001_v53  ;;  %v668_v34 = vsub.f32 %v3784_v48, %v3997_v19 }
  0xa7   : > { %v716_v39 = vsub.f32 %v3801_v0, %v3997_v19  ;;  %v764_v25 = vsub.f32 %v3822_v17, %v3997_v19  ;;  %v812_v32 = vsub.f32 %v3840_v33, %v3997_v19  ;;  %v860_v48 = vsub.f32 %v3854_v14, %v3997_v19 }
  0xa8   : > { %v586_v45 = vmul.f32 1.442695, %v572_v20  ;;  %v634_v43 = vmul.f32 1.442695, %v620_v30  ;;  %v908_v4 = vsub.f32 %v3868_v35, %v3997_v19  ;;  %v682_v30 = vmul.f32 1.442695, %v668_v34 }
  0xa9   : > { %v4034_v17 = vmax.f32 %v540_v60, %v4019_v6  ;;  %vm1315_vm5 = vcmp.gt.f32.partialorder %v4001_v53, 0.0  ;;  %v730_v14 = vmul.f32 1.442695, %v716_v39  ;;  %v956_v35 = vsub.f32 %v3884_v16, %v3997_v19 }
  0xaa   : > { %2797 = vpow2.f32 %v586_v45  ;;  %v778_v8 = vmul.f32 1.442695, %v764_v25  ;;  %v826_v23 = vmul.f32 1.442695, %v812_v32  ;;  %v874_v58 = vmul.f32 1.442695, %v860_v48 }
  0xab   : > { %v2786_v0 = vpop.eup %2785  ;;  %2799 = vpow2.f32 %v634_v43  ;;  %v922_v10 = vmul.f32 1.442695, %v908_v4  ;;  %v1004_v39 = vsub.f32 %v3898_v13, %v3997_v19  ;;  %v970_v25 = vmul.f32 1.442695, %v956_v35 }
  0xac   : > { %v2788_v33 = vpop.eup %2787  ;;  %v1319_v20 = vmul.f32 0.6931472, %v2786_v0  ;;  %2801 = vpow2.f32 %v682_v30  ;;  %v5142_v30 = vld [vmem:[#allocation44_spill] sm:$0xff] }
  0xad   : > { %v2790_v7 = vpop.eup %2789  ;;  %v1321_v29 = vmul.f32 0.6931472, %v2788_v33  ;;  %2803 = vpow2.f32 %v730_v14 }
  0xae   : > { %v2792_v34 = vpop.eup %2791  ;;  %v1323_v18 = vmul.f32 0.6931472, %v2790_v7  ;;  %v1334_v60 = vadd.f32 %v1319_v20, %v3438_v52  ;;  %2805 = vpow2.f32 %v778_v8 }
  0xaf   : > { %v2794_v24 = vpop.eup %2793  ;;  %v1325_v22 = vmul.f32 0.6931472, %v2792_v34  ;;  %v1335_v0 = vadd.f32 %v1321_v29, %v3441_v28  ;;  %v1052_v34 = vsub.f32 %v3914_v2, %v3997_v19  ;;  %2807 = vpow2.f32 %v826_v23 }
  0xb0   : > { %v2796_v16 = vpop.eup %2795  ;;  %v1327_v45 = vmul.f32 0.6931472, %v2794_v24  ;;  %v1336_v43 = vadd.f32 %v1323_v18, %v3444_v62  ;;  %v1342_v7 = vsel %vm1310_vm0, %v1334_v60, %v3420_v38  ;;  %v1018_v60 = vmul.f32 1.442695, %v1004_v39  ;;  %v5145_v39 = vld [vmem:[#allocation46_spill] sm:$0xff] }
  0xb1   : > { %v1329_v32 = vmul.f32 0.6931472, %v2796_v16  ;;  %v1337_v48 = vadd.f32 %v1325_v22, %v3447_v27  ;;  %v1343_v29 = vsel %vm1311_vm1, %v1335_v0, %v3423_v63  ;;  %v4052_v4 = vmul.f32 %v1342_v7, %v1342_v7 }
  0xb2   : > { %v1338_v13 = vadd.f32 %v1327_v45, %v3450_v41  ;;  %v1344_v24 = vsel %vm1312_vm2, %v1336_v43, %v3426_v40  ;;  %v1351_v18 = vmul.f32 %v1343_v29, %v1343_v29  ;;  %v1100_v40 = vsub.f32 %v3928_v59, %v3997_v19  ;;  %v5144_v59 = vld [vmem:[#allocation45_spill] sm:$0xff] }
  0xb3   : > { %v1339_v38 = vadd.f32 %v1329_v32, %v3453_v26  ;;  %v1345_v22 = vsel %vm1313_vm3, %v1337_v48, %v5142_v30  ;;  %v1352_v33 = vmul.f32 %v1344_v24, %v1344_v24  ;;  %v1365_v20 = vmul.f32 0.054005582, %v4052_v4 }
  0xb4   : > { %v4063_v63 = vmul.f32 %v1345_v22, %v1345_v22  ;;  %v4065_v35 = vmul.f32 0.004433048, %v1351_v18  ;;  %v1148_v0 = vsub.f32 %v3941_v55, %v3997_v19  ;;  %v4075_v16 = vpop.eup %2797  ;;  %v1377_v7 = vmul.f32 0.24203622, %v1351_v18 }
  0xb5   : > { %v4071_v14 = vmul.f32 0.054005582, %v1352_v33  ;;  %v4081_v32 = vmul.f32 0.004433048, %v1352_v33  ;;  %v4083_v2 = vpop.eup %2799  ;;  %v1346_v8 = vsel %vm1314_vm4, %v1338_v13, %v5144_v59  ;;  %v1347_v55 = vsel %vm1315_vm5, %v1339_v38, %v5145_v39 }
  0xb6   : > { %v4078_v45 = vmul.f32 0.004433048, %v4063_v63  ;;  %v1371_v43 = vadd.f32 %v1365_v20, %v4065_v35  ;;  %5143 = vst [vmem:[#allocation44_spill] sm:$0xff] %v4083_v2  ;;  %v4091_v48 = vmul.f32 0.054005582, %v1351_v18  ;;  %2809 = vpow2.f32 %v874_v58  ;;  %v4096_v22 = vpop.eup %2801 }
  0xb7   : > { %v1392_v24 = vmul.f32 0.39905027, %v4052_v4  ;;  %v1066_v30 = vmul.f32 1.442695, %v1052_v34  ;;  %v1378_v59 = vmul.f32 0.24203622, %v4052_v4  ;;  %2811 = vpow2.f32 %v922_v10 }
  0xb8   : > { %v1369_v29 = vadd.f32 %v4071_v14, %v4078_v45  ;;  %v1386_v20 = vadd.f32 %v1377_v7, %v1371_v43  ;;  %v1370_v13 = vadd.f32 %v4091_v48, %v4081_v32  ;;  %v4101_v38 = vmul.f32 %v1346_v8, %v1346_v8  ;;  %v4110_v43 = vpop.eup %2803 }
  0xb9   : > { %v4103_v39 = vmul.f32 %v1347_v55, %v1347_v55  ;;  %v1393_v53 = vmul.f32 0.39905027, %v1351_v18  ;;  %v4105_v15 = vmul.f32 0.24203622, %v1352_v33  ;;  %v4108_v58 = vmul.f32 0.24203622, %v4063_v63 }
  0xba   : > { %v1384_v23 = vadd.f32 %v1377_v7, %v1369_v29  ;;  %v1385_v56 = vadd.f32 %v1378_v59, %v1370_v13  ;;  %v1394_v34 = vmul.f32 0.39905027, %v1352_v33  ;;  %5146 = vst [vmem:[#allocation45_spill] sm:$0xff] %v4110_v43  ;;  %v644_v26 = vadd.f32 %v4083_v2, %v4075_v16 }
  0xbb   : > { %2813 = vpow2.f32 %v970_v25  ;;  %v1114_v10 = vmul.f32 1.442695, %v1100_v40  ;;  %v4115_v8 = vmul.f32 0.054005582, %v4101_v38  ;;  %v4118_v18 = vmul.f32 0.054005582, %v4063_v63 }
  0xbc   : > { %v1400_v12 = vadd.f32 %v1392_v24, %v1384_v23  ;;  %v1401_v55 = vadd.f32 %v1393_v53, %v1385_v56  ;;  %v1402_v29 = vadd.f32 %v1394_v34, %v1386_v20  ;;  %v4121_v33 = vmul.f32 0.004433048, %v4101_v38  ;;  %v4126_v23 = vpop.eup %2805  ;;  %v2350_v53 = vld [vmem:[%s3081_s7 + $0x78] sm:$0xff] }
  0xbd   : > { %v692_v24 = vadd.f32 %v4096_v22, %v644_v26  ;;  %v1196_v59 = vsub.f32 %v3955_v47, %v3997_v19  ;;  %v4131_v2 = vmul.f32 0.004433048, %v4103_v39  ;;  %2815 = vpow2.f32 %v1018_v60  ;;  %v4136_v26 = vpop.eup %2807 }
  0xbe   : > { %v1409_v13 = vadd.f32 %v1400_v12, %v1377_v7  ;;  %v1410_v25 = vadd.f32 %v1401_v55, %v4105_v15  ;;  %v1411_v40 = vadd.f32 %v1402_v29, %v4108_v58  ;;  %2817 = vpow2.f32 %v1066_v30 }
  0xbf   : > { %v740_v56 = vadd.f32 %v4110_v43, %v692_v24  ;;  %v1162_v20 = vmul.f32 1.442695, %v1148_v0  ;;  %v4145_v29 = vmax.f32 %v4034_v17, %v2350_v53  ;;  %2819 = vpow2.f32 %v1114_v10 }
  0xc0   : > { %v1419_v12 = vadd.f32 %v1409_v13, %v4071_v14  ;;  %v1420_v47 = vadd.f32 %v1410_v25, %v4118_v18  ;;  %v1421_v7 = vadd.f32 %v1411_v40, %v4115_v8  ;;  %v4140_v34 = vpop.eup %2809  ;;  %v1210_v25 = vmul.f32 1.442695, %v1196_v59 }
  0xc1   : > { %v788_v60 = vadd.f32 %v4126_v23, %v740_v56  ;;  %v4147_v13 = vpop.eup %2811  ;;  %v573_v30 = vsub.f32 %v3790_v21, %v4145_v29  ;;  %v621_v40 = vsub.f32 %v3793_v1, %v4145_v29  ;;  %v669_v53 = vsub.f32 %v3814_v44, %v4145_v29 }
  0xc2   : > { %v1430_v55 = vadd.f32 %v1419_v12, %v4078_v45  ;;  %v1431_v24 = vadd.f32 %v1420_v47, %v4121_v33  ;;  %v1432_v43 = vadd.f32 %v4131_v2, %v1421_v7  ;;  %2821 = vpow2.f32 %v1162_v20 }
  0xc3   : > { %v836_v0 = vadd.f32 %v4136_v26, %v788_v60  ;;  %v717_v10 = vsub.f32 %v3833_v51, %v4145_v29  ;;  %v765_v59 = vsub.f32 %v3848_v3, %v4145_v29  ;;  %v588_v56 = vmul.f32 1.442695, %v573_v30 }
  0xc4   : > { %2519 = vmatprep.mubr.msk.f32.mxu0 %vm1439_vm6, %v1430_v55  ;;  %v636_v1 = vmul.f32 1.442695, %v621_v40  ;;  %v684_v47 = vmul.f32 1.442695, %v669_v53  ;;  %2823 = vpow2.f32 %v1210_v25  ;;  %v813_v7 = vsub.f32 %v3862_v50, %v4145_v29 }
  0xc5   : > { %2520 = vmatmul.mubr.msk.f32.vlgmr.msra.gmra.mrb[0].mxu0 %vm1439_vm6, %v1431_v24  ;;  %v4164_v12 = vpop.eup %2813  ;;  %v884_v21 = vadd.f32 %v4140_v34, %v836_v0  ;;  %v732_v44 = vmul.f32 1.442695, %v717_v10  ;;  %2825 = vpow2.f32 %v588_v56  ;;  %v780_v3 = vmul.f32 1.442695, %v765_v59 }
  0xc6   : > { %2522 = vmatprep.mubr.msk.f32.mxu0 %vm1439_vm6, %v1432_v43  ;;  %2827 = vpow2.f32 %v636_v1  ;;  %v861_v43 = vsub.f32 %v3877_v57, %v4145_v29  ;;  %v828_v24 = vmul.f32 1.442695, %v813_v7  ;;  %v909_v50 = vsub.f32 %v3892_v49, %v4145_v29 }
  0xc7   : > { %v932_v20 = vadd.f32 %v4147_v13, %v884_v21  ;;  %v4171_v51 = vpop.eup %2815  ;;  %2829 = vpow2.f32 %v684_v47  ;;  %v957_v40 = vsub.f32 %v3907_v5, %v4145_v29  ;;  %v1005_v59 = vsub.f32 %v3922_v46, %v4145_v29 }
  0xc8   : > { %v4176_v60 = vpop.eup %2817  ;;  %2831 = vpow2.f32 %v732_v44  ;;  %v876_v30 = vmul.f32 1.442695, %v861_v43  ;;  %v924_v10 = vmul.f32 1.442695, %v909_v50  ;;  %v1361_v56 = vmul.f32 0.004433048, %v4052_v4 }
  0xc9   : > { %v980_v55 = vadd.f32 %v4164_v12, %v932_v20  ;;  %v4181_v0 = vpop.eup %2819  ;;  %2833 = vpow2.f32 %v780_v3  ;;  %v972_v1 = vmul.f32 1.442695, %v957_v40  ;;  %v1053_v5 = vsub.f32 %v3945_v42, %v4145_v29 }
  0xca   : > { %5147 = vst [vmem:[#allocation46_spill] sm:$0xff] %v4181_v0  ;;  %2835 = vpow2.f32 %v828_v24  ;;  %v1020_v20 = vmul.f32 1.442695, %v1005_v59  ;;  %v1101_v46 = vsub.f32 %v3973_v36, %v4145_v29  ;;  %v1149_v50 = vsub.f32 %v4005_v11, %v4145_v29 }
  0xcb   : > { %v1028_v25 = vadd.f32 %v4171_v51, %v980_v55  ;;  %2837 = vpow2.f32 %v876_v30  ;;  %v1372_v55 = vadd.f32 %v4091_v48, %v1361_v56  ;;  %v1068_v24 = vmul.f32 1.442695, %v1053_v5 }
  0xcc   : > { %v4186_v53 = vpop.eup %2821  ;;  %2839 = vpow2.f32 %v924_v10  ;;  %v1116_v30 = vmul.f32 1.442695, %v1101_v46  ;;  %v1197_v40 = vsub.f32 %v4019_v6, %v4145_v29  ;;  %v1395_v59 = vmul.f32 0.39905027, %v4063_v63 }
  0xcd   : > { %v1076_v57 = vadd.f32 %v4176_v60, %v1028_v25  ;;  %5148 = vst [vmem:[#allocation95_spill] sm:$0xff] %v4186_v53  ;;  %2841 = vpow2.f32 %v972_v1  ;;  %v1387_v11 = vadd.f32 %v4105_v15, %v1372_v55  ;;  %v1381_v6 = vmul.f32 0.24203622, %v4101_v38 }
  0xce   : > { %v4191_v21 = vpop.eup %2823  ;;  %v1212_v5 = vmul.f32 1.442695, %v1197_v40  ;;  %v1396_v63 = vmul.f32 0.39905027, %v4101_v38 }
  0xcf   : > { %v1124_v49 = vadd.f32 %v4181_v0, %v1076_v57  ;;  %5149 = vst [vmem:[#allocation96_spill] sm:$0xff] %v4191_v21  ;;  %v4196_v47 = vpop.eup %2825  ;;  %v1373_v57 = vadd.f32 %v4071_v14, %v4065_v35  ;;  %v5189_v0 = vld [vmem:[#allocation85_spill] sm:$0xff] }
  0xd0   : > { %v4199_v7 = vpop.eup %2827 }
  0xd1   : > { %v1172_v44 = vadd.f32 %v4186_v53, %v1124_v49  ;;  %v4203_v3 = vpop.eup %2829  ;;  %v645_v43 = vadd.f32 %v4199_v7, %v4196_v47  ;;  %v1164_v49 = vmul.f32 1.442695, %v1149_v50  ;;  %v1388_v15 = vadd.f32 %v4108_v58, %v1373_v57 }
  0xd2   : > { %v4210_v42 = vpop.eup %2831  ;;  %v1368_v58 = vmul.f32 0.054005582, %v4103_v39  ;;  %v1397_v57 = vmul.f32 0.39905027, %v4103_v39 }
  0xd3   : > { %v4206_v4 = vadd.f32 %v4191_v21, %v1172_v44  ;;  %v693_v36 = vadd.f32 %v4203_v3, %v645_v43  ;;  %v4217_v25 = vpop.eup %2833  ;;  %v1403_v44 = vadd.f32 %v1395_v59, %v1387_v11  ;;  %v1404_v38 = vadd.f32 %v1396_v63, %v1388_v15 }
  0xd4   : > { %v4224_v10 = vpop.eup %2835  ;;  %v1375_v11 = vadd.f32 %v4115_v8, %v4078_v45 }
  0xd5   : > { %2843 = vlog2.f32 %v4206_v4  ;;  %v741_v48 = vadd.f32 %v4210_v42, %v693_v36  ;;  %v4229_v1 = vpop.eup %2837  ;;  %v1412_v40 = vadd.f32 %v1403_v44, %v1381_v6  ;;  %vm1316_vm7 = vcmp.gt.f32.partialorder %v4206_v4, 0.0 }
  0xd6   : > { %2845 = vpow2.f32 %v1020_v20  ;;  %v4233_v14 = vpop.eup %2839  ;;  %v1374_v20 = vadd.f32 %v4118_v18, %v4081_v32 }
  0xd7   : > { %2847 = vpow2.f32 %v1068_v24  ;;  %v789_v56 = vadd.f32 %v4217_v25, %v741_v48  ;;  %v4240_v43 = vpop.eup %2841  ;;  %v1382_v24 = vmul.f32 0.24203622, %v4103_v39 }
  0xd8   : > { %2849 = vpow2.f32 %v1116_v30  ;;  %v1389_v18 = vadd.f32 %v1381_v6, %v1374_v20 }
  0xd9   : > { %v837_v35 = vadd.f32 %v4224_v10, %v789_v56  ;;  %2851 = vpow2.f32 %v1164_v49  ;;  %v1413_v6 = vadd.f32 %v1404_v38, %v1382_v24  ;;  %v1390_v20 = vadd.f32 %v1382_v24, %v1375_v11 }
  0xda   : > { %2853 = vpow2.f32 %v1212_v5  ;;  %v1405_v63 = vadd.f32 %v1397_v57, %v1389_v18  ;;  %v1376_v11 = vadd.f32 %v1368_v58, %v4121_v33 }
  0xdb   : > { %v885_v46 = vadd.f32 %v4229_v1, %v837_v35  ;;  %v1422_v35 = vadd.f32 %v1412_v40, %v1368_v58 }
  0xdd   : > { %v933_v50 = vadd.f32 %v4233_v14, %v885_v46 }
  0xdf   : > { %v2844_v55 = vpop.eup %2843  ;;  %v981_v32 = vadd.f32 %v4240_v43, %v933_v50 }
  0xe0   : > { %v4244_v36 = vpop.eup %2845  ;;  %v1331_v30 = vmul.f32 0.6931472, %v2844_v55 }
  0xe1   : > { %v4250_v48 = vpop.eup %2847  ;;  %v1029_v49 = vadd.f32 %v4244_v36, %v981_v32 }
  0xe2   : > { %v1340_v59 = vadd.f32 %v1331_v30, %v3997_v19  ;;  %v4256_v56 = vpop.eup %2849 }
  0xe3   : > { %5150 = vst [vmem:[#allocation97_spill] sm:$0xff] %v4256_v56  ;;  %v1077_v15 = vadd.f32 %v4250_v48, %v1029_v49  ;;  %v4260_v39 = vpop.eup %2851 }
  0xe4   : > { %v1348_v5 = vsel %vm1316_vm7, %v1340_v59, %v3982_v31  ;;  %5151 = vst [vmem:[#allocation98_spill] sm:$0xff] %v4260_v39  ;;  %v4263_v50 = vpop.eup %2853 }
  0xe5   : > { %v1356_v44 = vmul.f32 %v1348_v5, %v1348_v5  ;;  %v1125_v45 = vadd.f32 %v4256_v56, %v1077_v15  ;;  %5152 = vst [vmem:[#allocation99_spill] sm:$0xff] %v4263_v50 }
  0xe7   : > { %v1428_v46 = vmul.f32 0.004433048, %v1356_v44  ;;  %v1417_v8 = vmul.f32 0.054005582, %v1356_v44  ;;  %v1383_v55 = vmul.f32 0.24203622, %v1356_v44  ;;  %v1173_v31 = vadd.f32 %v4260_v39, %v1125_v45 }
  0xe8   : > { %v1398_v30 = vmul.f32 0.39905027, %v1356_v44 }
  0xe9   : > { %v1433_v32 = vadd.f32 %v1428_v46, %v1422_v35  ;;  %v1423_v40 = vadd.f32 %v1417_v8, %v1413_v6  ;;  %v1414_v59 = vadd.f32 %v1405_v63, %v1383_v55  ;;  %v4268_v38 = vadd.f32 %v4263_v50, %v1173_v31 }
  0xea   : > { %v1406_v5 = vadd.f32 %v1398_v30, %v1390_v20  ;;  %v1391_v44 = vadd.f32 %v1383_v55, %v1376_v11  ;;  %v4327_v11 = vld [vmem:[%s4320_s13 + $0x8] sm:$0xff] }
  0xeb   : > { %2523 = vmatmul.mubr.msk.f32.gmra.mrb[2].mxu0 %vm1439_vm6, %v1433_v32  ;;  %2855 = vlog2.f32 %v4268_v38  ;;  %vm1317_vm8 = vcmp.gt.f32.partialorder %v4268_v38, 0.0  ;;  %vm224_vm11 = vcmp.gt.s32.totalorder %v4327_v11, 15 }
  0xf5   : > { %v2856_v24 = vpop.eup %2855 }
  0xf6   : > { %v1333_v18 = vmul.f32 0.6931472, %v2856_v24 }
  0xf8   : > { %v1341_v57 = vadd.f32 %v1333_v18, %v4145_v29 }
  0xfa   : > { %v1349_v49 = vsel %vm1317_vm8, %v1341_v57, %v4034_v17 }
  0xfb   : > { %v1357_v35 = vmul.f32 %v1349_v49, %v1349_v49  ;;  %v4959_v49 = vmov 0  }
  0xfd   : > { %v1429_v15 = vmul.f32 0.004433048, %v1357_v35  ;;  %v1418_v6 = vmul.f32 0.054005582, %v1357_v35  ;;  %v1408_v63 = vmul.f32 0.24203622, %v1357_v35 }
  0xfe   : > { %v1399_v20 = vmul.f32 0.39905027, %v1357_v35 }
  0xff   : > { %v1434_v45 = vadd.f32 %v1429_v15, %v1423_v40  ;;  %v1424_v30 = vadd.f32 %v1418_v6, %v1414_v59  ;;  %v1415_v32 = vadd.f32 %v1408_v63, %v1406_v5  ;;  %v4955_v40 = vmov 0.0   ;;  %v4323_v5 = vld [vmem:[%s4320_s13] sm:$0xff] }
 0x100   : > { %v1407_v31 = vadd.f32 %v1399_v20, %v1391_v44  ;;  %2531 = vmatprep.subr.mxu1 %v4955_v40  ;;  %2551 = vmatprep.subr.mxu0 %v4955_v40  ;;  %vm223_vm10 = vcmp.gt.s32.totalorder %v4323_v5, 15  ;;  %v232_v15 = vsel %vm224_vm11, 1, %v4959_v49 }
 0x101   : > { %2525 = vmatprep.mubr.msk.f32.mxu0 %vm1439_vm6, %v1434_v45  ;;  %v1435_v24 = vadd.f32 %v1428_v46, %v1424_v30  ;;  %v1425_v21 = vadd.f32 %v1417_v8, %v1415_v32  ;;  %2533 = vmatprep.mubr.msk.f32.mxu1 %vm2994_vm9, %v4955_v40  ;;  %v231_v35 = vsel %vm223_vm10, 1, %v4959_v49  ;;  %v240_v6 = vsub.s32 %v4327_v11, %v232_v15 }
 0x102   : > { %v1416_v50 = vadd.f32 %v1407_v31, %v1383_v55  ;;  %v239_v44 = vsub.s32 %v4323_v5, %v231_v35  ;;  %v4338_v31 = vld [vmem:[%s4320_s13 + $0x10] sm:$0xff] }
 0x103   : > { %2526 = vmatmul.mubr.msk.f32.gmra.mrb[4].mxu0 %vm1439_vm6, %v1435_v24  ;;  %v1436_v18 = vadd.f32 %v4131_v2, %v1425_v21  ;;  %v1569_v21 = vld [vmem:[%s4820_s3] sm:$0xff]  ;;  %vm248_vm13 = vcmp.gt.s32.totalorder %v240_v6, 14  ;;  %5153 = vst [vmem:[#allocation100_spill] sm:$0xff] %v4338_v31  ;;  %vm225_vm0 = vcmp.gt.s32.totalorder %v4338_v31, 15 }
 0x104   : > { %v1426_v17 = vadd.f32 %v1416_v50, %v1368_v58  ;;  %vm247_vm12 = vcmp.gt.s32.totalorder %v239_v44, 14  ;;  %v256_v45 = vsel %vm248_vm13, 1, %v4959_v49 }
 0x105   : > { %2528 = vmatprep.mubr.msk.f32.mxu0 %vm1439_vm6, %v1436_v18  ;;  %v255_v63 = vsel %vm247_vm12, 1, %v4959_v49  ;;  %v264_v30 = vsub.s32 %v240_v6, %v256_v45 }
 0x106   : > { %v1437_v57 = vadd.f32 %v1426_v17, %v4121_v33  ;;  %v263_v20 = vsub.s32 %v239_v44, %v255_v63  ;;  %v233_v17 = vsel %vm225_vm0, 1, %v4959_v49 }
 0x107   : > { %vm272_vm15 = vcmp.gt.s32.totalorder %v264_v30, 13 }
 0x108   : > { %2529 = vmatmul.mubr.msk.f32.gmra.mrb[6].mxu0 %vm1439_vm6, %v1437_v57  ;;  %vm271_vm14 = vcmp.gt.s32.totalorder %v263_v20, 13  ;;  %v280_v18 = vsel %vm272_vm15, 1, %v4959_v49 }
 0x109   : > { %2553 = vmatprep.mubr.msk.f32.mxu0 %vm2994_vm9, %v4955_v40  ;;  %v279_v32 = vsel %vm271_vm14, 1, %v4959_v49  ;;  %v288_v57 = vsub.s32 %v264_v30, %v280_v18  ;;  %v5156_v30 = vld [vmem:[#allocation58_spill] sm:$0xff] }
 0x10a   : > { %v287_v24 = vsub.s32 %v263_v20, %v279_v32  ;;  %v2922_v32 = vld [vmem:[%s3081_s7 + $0x48] sm:$0xff] }
 0x10b   : > { %vm296_vm2 = vcmp.gt.s32.totalorder %v288_v57, 12 }
 0x10c   : > { %vm295_vm1 = vcmp.gt.s32.totalorder %v287_v24, 12 }
 0x198   : > { %v2521_v2 = vpop.f32.mrb[0].mxu0 }
 0x199   : > { %v1530_v33 = vpop.f32.mrb[1].mxu0 }
 0x19a   : > { %2532 = vmatpush3.msra.mxu1 %v1530_v33  ;;  %v4346_v33 = vld [vmem:[%s4320_s13 + $0x18] sm:$0xff] }
 0x19b   : > { %2534 = vmatmul.mubr.msk.f32.vlgmr.msra.gmra.mrb[0].mxu1 %vm1439_vm6, %v1569_v21  ;;  %2536 = vmatprep.subr.mxu1 %v4955_v40  ;;  %5154 = vst [vmem:[#allocation101_spill] sm:$0xff] %v4346_v33  ;;  %vm226_vm4 = vcmp.gt.s32.totalorder %v4346_v33, 15 }
 0x19c   : > { %2537 = vmatpush3.msra.mxu1 %v2521_v2  ;;  %2538 = vmatprep.mubr.msk.f32.mxu1 %vm2994_vm9, %v4955_v40  ;;  %v241_v2 = vsub.s32 %v4338_v31, %v233_v17  ;;  %v234_v35 = vsel %vm226_vm4, 1, %v4959_v49  ;;  %v5157_v17 = vld [vmem:[#allocation53_spill] sm:$0xff] }
 0x19d   : > { %2541 = vmatprep.subr.mxu1 %v4955_v40  ;;  %v242_v63 = vsub.s32 %v4346_v33, %v234_v35 }
 0x19e   : > { %vm249_vm3 = vcmp.gt.s32.totalorder %v241_v2, 14 }
 0x19f   : > { %2539 = vmatmul.mubr.msk.f32.vlgmr.msra.gmra.mrb[2].mxu1 %vm1439_vm6, %v1569_v21  ;;  %vm250_vm12 = vcmp.gt.s32.totalorder %v242_v63, 14 }
 0x1a0   : > { %2543 = vmatprep.mubr.msk.f32.mxu1 %vm2994_vm9, %v4955_v40 }
 0x1be   : > { %v2524_v58 = vpop.f32.mrb[2].mxu0 }
 0x1bf   : > { %v1540_v46 = vpop.f32.mrb[3].mxu0 }
 0x1c0   : > { %2542 = vmatpush3.msra.mxu1 %v1540_v46  ;;  %v304_v46 = vsel %vm296_vm2, 1, %v4959_v49 }
 0x1c1   : > { %2546 = vmatprep.subr.mxu1 %v4955_v40  ;;  %2544 = vmatmul.mubr.msk.f32.vlgmr.msra.gmra.mrb[4].mxu1 %vm1439_vm6, %v1569_v21 }
 0x1c2   : > { %2547 = vmatpush3.msra.mxu1 %v2524_v58  ;;  %2548 = vmatprep.mubr.msk.f32.mxu1 %vm2994_vm9, %v4955_v40 }
 0x1c3   : > { %2556 = vmatprep.subr.mxu1 %v4955_v40 }
 0x1c5   : > { %2549 = vmatmul.mubr.msk.f32.vlgmr.msra.gmra.mrb[6].mxu1 %vm1439_vm6, %v1569_v21 }
 0x1c6   : > { %2558 = vmatprep.mubr.msk.f32.mxu1 %vm2994_vm9, %v4955_v40 }
 0x1d6   : > { %v2527_v8 = vpop.f32.mrb[4].mxu0 }
 0x1d7   : > { %v1550_v55 = vpop.f32.mrb[5].mxu0  ;;  %2557 = vmatpush3.msra.mxu1 %v2527_v8  ;;  %v257_v8 = vsel %vm249_vm3, 1, %v4959_v49 }
 0x1d8   : > { %2552 = vmatpush3.msra.mxu0 %v1550_v55  ;;  %2559 = vmatmul.mubr.msk.f32.vlgmr.msra.gmra.mrb[8].mxu1 %vm1439_vm6, %v1569_v21  ;;  %v2921_v55 = vld [vmem:[%s3081_s7 + $0x40] sm:$0xff]  ;;  %v265_v44 = vsub.s32 %v241_v2, %v257_v8  ;;  %v5159_v8 = vld [vmem:[#allocation59_spill] sm:$0xff] }
 0x1d9   : > { %2554 = vmatmul.mubr.msk.f32.vlgmr.msra.gmra.mrb[8].mxu0 %vm1439_vm6, %v1569_v21  ;;  %2561 = vmatprep.subr.mxu0 %v4955_v40  ;;  %v5158_v2 = vld [vmem:[#allocation8_spill] sm:$0xff] }
 0x1da   : > { %2563 = vmatprep.mubr.msk.f32.mxu0 %vm2994_vm9, %v4955_v40  ;;  %2566 = vmatprep.subr.mxu1 %v4955_v40  ;;  %vm273_vm10 = vcmp.gt.s32.totalorder %v265_v44, 13 }
 0x1db   : > { %v2530_v50 = vpop.f32.mrb[6].mxu0  ;;  %2568 = vmatprep.mubr.msk.f32.mxu1 %vm2994_vm9, %v4955_v40  ;;  %v281_v18 = vsel %vm273_vm10, 1, %v4959_v49  ;;  %v2923_v40 = vld [vmem:[%s3081_s7 + $0x50] sm:$0xff] }
 0x1dc   : > { %v1560_v59 = vpop.f32.mrb[7].mxu0  ;;  %2567 = vmatpush3.msra.mxu1 %v2530_v50  ;;  %v1238_v50 = vsub.f32 %v2921_v55, %v3438_v52  ;;  %v5155_v52 = vld [vmem:[#allocation48_spill] sm:$0xff] }
 0x1dd   : > { %2562 = vmatpush3.msra.mxu0 %v1560_v59  ;;  %2569 = vmatmul.mubr.msk.f32.vlgmr.msra.gmra.mrb[10].mxu1 %vm1439_vm6, %v1569_v21  ;;  %v4356_v59 = vsub.s32 %v288_v57, %v304_v46  ;;  %v258_v57 = vsel %vm250_vm12, 1, %v4959_v49  ;;  %v289_v46 = vsub.s32 %v265_v44, %v281_v18  ;;  %v5162_v44 = vld [vmem:[#allocation20_spill] sm:$0xff] }
 0x1de   : > { %2564 = vmatmul.mubr.msk.f32.vlgmr.msra.gmra.mrb[10].mxu0 %vm1439_vm6, %v1569_v21  ;;  %v303_v21 = vsel %vm295_vm1, 1, %v4959_v49  ;;  %v1246_v6 = vmul.f32 1.442695, %v1238_v50  ;;  %v266_v35 = vsub.s32 %v242_v63, %v258_v57  ;;  %v5163_v63 = vld [vmem:[#allocation15_spill] sm:$0xff] }
 0x1df   : > { %v4348_v58 = vsub.s32 %v287_v24, %v303_v21  ;;  %vm599_vm8 = vcmp.eq.s32.totalorder %v4356_v59, 1  ;;  %vm647_vm11 = vcmp.eq.s32.totalorder %v4356_v59, 2  ;;  %v1239_v24 = vsub.f32 %v2922_v32, %v3441_v28  ;;  %v5160_v28 = vld [vmem:[#allocation14_spill] sm:$0xff] }
 0x1e0   : > { %v607_v45 = vsel %vm599_vm8, %v5155_v52, 0.0  ;;  %2857 = vpow2.f32 %v1246_v6  ;;  %vm695_vm14 = vcmp.eq.s32.totalorder %v4356_v59, 3  ;;  %vm743_vm0 = vcmp.eq.s32.totalorder %v4356_v59, 4  ;;  %v5161_v6 = vld [vmem:[#allocation9_spill] sm:$0xff]  ;;  %v5164_v32 = vld [vmem:[#allocation26_spill] sm:$0xff] }
 0x1e1   : > { %vm598_vm5 = vcmp.eq.s32.totalorder %v4348_v58, 1  ;;  %vm646_vm7 = vcmp.eq.s32.totalorder %v4348_v58, 2  ;;  %vm694_vm9 = vcmp.eq.s32.totalorder %v4348_v58, 3  ;;  %vm742_vm13 = vcmp.eq.s32.totalorder %v4348_v58, 4 }
 0x1e2   : > { %v606_v15 = vsel %vm598_vm5, %v3491_v61, 0.0  ;;  %vm790_vm15 = vcmp.eq.s32.totalorder %v4348_v58, 5  ;;  %v1248_v50 = vmul.f32 1.442695, %v1239_v24  ;;  %vm838_vm1 = vcmp.eq.s32.totalorder %v4348_v58, 6 }
 0x1e3   : > { %v654_v20 = vsel %vm646_vm7, %v3523_v9, %v606_v15  ;;  %v655_v9 = vsel %vm647_vm11, %v5157_v17, %v607_v45  ;;  %vm791_vm2 = vcmp.eq.s32.totalorder %v4356_v59, 5  ;;  %vm297_vm3 = vcmp.gt.s32.totalorder %v289_v46, 12 }
 0x1e4   : > { %v702_v61 = vsel %vm694_vm9, %v5156_v30, %v654_v20  ;;  %v703_v55 = vsel %vm695_vm14, %v5159_v8, %v655_v9  ;;  %2859 = vpow2.f32 %v1248_v50  ;;  %vm886_vm4 = vcmp.eq.s32.totalorder %v4348_v58, 7  ;;  %v5165_v9 = vld [vmem:[#allocation21_spill] sm:$0xff]  ;;  %v5169_v50 = vld [vmem:[#allocation32_spill] sm:$0xff] }
 0x1e5   : > { %v750_v21 = vsel %vm742_vm13, %v5158_v2, %v702_v61  ;;  %v751_v20 = vsel %vm743_vm0, %v5161_v6, %v703_v55  ;;  %vm274_vm5 = vcmp.gt.s32.totalorder %v266_v35, 13  ;;  %vm839_vm7 = vcmp.eq.s32.totalorder %v4356_v59, 6  ;;  %v4403_v8 = vld [vmem:[%s4320_s13 + $0x28] sm:$0xff]  ;;  %v4406_v55 = vld [vmem:[%s4320_s13 + $0x30] sm:$0xff] }
 0x1e6   : > { %v798_v15 = vsel %vm790_vm15, %v5160_v28, %v750_v21  ;;  %v799_v30 = vsel %vm791_vm2, %v5163_v63, %v751_v20  ;;  %v305_v61 = vsel %vm297_vm3, 1, %v4959_v49  ;;  %vm934_vm8 = vcmp.eq.s32.totalorder %v4348_v58, 8  ;;  %v4400_v21 = vld [vmem:[%s4320_s13 + $0x20] sm:$0xff]  ;;  %5167 = vst [vmem:[#allocation58_spill] sm:$0xff] %v4403_v8  ;;  %5168 = vst [vmem:[#allocation53_spill] sm:$0xff] %v4406_v55  ;;  %v5171_v6 = vld [vmem:[#allocation27_spill] sm:$0xff] }
 0x1e7   : > { %v846_v45 = vsel %vm838_vm1, %v5162_v44, %v798_v15  ;;  %v282_v17 = vsel %vm274_vm5, 1, %v4959_v49  ;;  %v847_v57 = vsel %vm839_vm7, %v5165_v9, %v799_v30  ;;  %vm887_vm9 = vcmp.eq.s32.totalorder %v4356_v59, 7  ;;  %5166 = vst [vmem:[#allocation48_spill] sm:$0xff] %v4400_v21  ;;  %v5172_v44 = vld [vmem:[#allocation38_spill] sm:$0xff]  ;;  %v5174_v30 = vld [vmem:[#allocation49_spill] sm:$0xff] }
 0x1e8   : > { %v894_v24 = vsel %vm886_vm4, %v5164_v32, %v846_v45  ;;  %v4397_v2 = vsub.s32 %v289_v46, %v305_v61  ;;  %vm982_vm10 = vcmp.eq.s32.totalorder %v4348_v58, 9  ;;  %v290_v15 = vsub.s32 %v266_v35, %v282_v17  ;;  %v5173_v35 = vld [vmem:[#allocation33_spill] sm:$0xff]  ;;  %v5175_v17 = vld [vmem:[#allocation42_spill] sm:$0xff] }
 0x1e9   : > { %v942_v28 = vsel %vm934_vm8, %v5169_v50, %v894_v24  ;;  %v895_v20 = vsel %vm887_vm9, %v5171_v6, %v847_v57  ;;  %vm935_vm11 = vcmp.eq.s32.totalorder %v4356_v59, 8  ;;  %vm227_vm13 = vcmp.gt.s32.totalorder %v4400_v21, 15 }
 0x1ea   : > { %v4383_v52 = vpop.eup %2857  ;;  %vm600_vm12 = vcmp.eq.s32.totalorder %v4397_v2, 1  ;;  %vm228_vm14 = vcmp.gt.s32.totalorder %v4403_v8, 15  ;;  %vm229_vm15 = vcmp.gt.s32.totalorder %v4406_v55, 15  ;;  %v990_v45 = vsel %vm982_vm10, %v5172_v44, %v942_v28  ;;  %v5176_v28 = vld [vmem:[#allocation39_spill] sm:$0xff]  ;;  %v5177_v44 = vld [vmem:[#allocation54_spill] sm:$0xff] }
 0x1eb   : > { %v1262_v18 = vadd.f32 %v4383_v52, %v3961_v37  ;;  %v4411_v37 = vld [vmem:[%s4320_s13 + $0x38] sm:$0xff]  ;;  %vm1030_vm0 = vcmp.eq.s32.totalorder %v4348_v58, 10  ;;  %v943_v63 = vsel %vm935_vm11, %v5173_v35, %v895_v20  ;;  %vm983_vm2 = vcmp.eq.s32.totalorder %v4356_v59, 9 }
 0x1ec   : > { %5170 = vst [vmem:[#allocation8_spill] sm:$0xff] %v4411_v37  ;;  %vm230_vm1 = vcmp.gt.s32.totalorder %v4411_v37, 15  ;;  %vm648_vm3 = vcmp.eq.s32.totalorder %v4397_v2, 2  ;;  %vm298_vm4 = vcmp.gt.s32.totalorder %v290_v15, 12  ;;  %v608_v61 = vsel %vm600_vm12, %v5174_v30, 0.0 }
 0x1ed   : > { %2861 = vrcp.f32 %v1262_v18  ;;  %v235_v32 = vsel %vm227_vm13, 1, %v4959_v49  ;;  %v236_v24 = vsel %vm228_vm14, 1, %v4959_v49  ;;  %v237_v18 = vsel %vm229_vm15, 1, %v4959_v49 }
 0x1ee   : > { %v4419_v46 = vpop.eup %2859  ;;  %v1038_v9 = vsel %vm1030_vm0, %v5175_v17, %v990_v45  ;;  %vm1078_vm5 = vcmp.eq.s32.totalorder %v4348_v58, 11  ;;  %v238_v50 = vsel %vm230_vm1, 1, %v4959_v49  ;;  %v991_v6 = vsel %vm983_vm2, %v5176_v28, %v943_v63  ;;  %v5178_v63 = vld [vmem:[#allocation67_spill] sm:$0xff] }
 0x1ef   : > { %v1263_v57 = vadd.f32 %v4419_v46, %v3969_v54  ;;  %vm1031_vm7 = vcmp.eq.s32.totalorder %v4356_v59, 10  ;;  %vm696_vm8 = vcmp.eq.s32.totalorder %v4397_v2, 3  ;;  %v306_v20 = vsel %vm298_vm4, 1, %v4959_v49 }
 0x1f0   : > { %v656_v35 = vsel %vm648_vm3, %v5177_v44, %v608_v61  ;;  %v243_v30 = vsub.s32 %v4400_v21, %v235_v32  ;;  %v244_v45 = vsub.s32 %v4403_v8, %v236_v24  ;;  %v245_v17 = vsub.s32 %v4406_v55, %v237_v18  ;;  %v5179_v44 = vld [vmem:[#allocation43_spill] sm:$0xff]  ;;  %v5180_v24 = vld [vmem:[#allocation5_spill] sm:$0xff] }
 0x1f1   : > { %v1240_v54 = vsub.f32 %v2923_v40, %v3444_v62  ;;  %v246_v33 = vsub.s32 %v4411_v37, %v238_v50  ;;  %v1086_v28 = vsel %vm1078_vm5, %v5178_v63, %v1038_v9  ;;  %vm1126_vm9 = vcmp.eq.s32.totalorder %v4348_v58, 12  ;;  %v5181_v62 = vld [vmem:[#allocation73_spill] sm:$0xff]  ;;  %v5188_v37 = vld [vmem:[#allocation50_spill] sm:$0xff] }
 0x1f2   : > { %vm1079_vm10 = vcmp.eq.s32.totalorder %v4356_v59, 11  ;;  %v4450_v49 = vsub.s32 %v290_v15, %v306_v20  ;;  %v1039_v32 = vsel %vm1031_vm7, %v5179_v44, %v991_v6  ;;  %2863 = vrcp.f32 %v1263_v57  ;;  %v5182_v15 = vld [vmem:[#allocation68_spill] sm:$0xff]  ;;  %v5183_v57 = vld [vmem:[#allocation10_spill] sm:$0xff]  ;;  %v5185_v44 = vld [vmem:[#allocation79_spill] sm:$0xff] }
 0x1f3   : > { %v704_v18 = vsel %vm696_vm8, %v5180_v24, %v656_v35  ;;  %vm744_vm11 = vcmp.eq.s32.totalorder %v4397_v2, 4  ;;  %vm1174_vm12 = vcmp.eq.s32.totalorder %v4348_v58, 13  ;;  %vm251_vm13 = vcmp.gt.s32.totalorder %v243_v30, 14 }
 0x1f4   : > { %vm252_vm14 = vcmp.gt.s32.totalorder %v244_v45, 14  ;;  %vm253_vm15 = vcmp.gt.s32.totalorder %v245_v17, 14  ;;  %v1134_v40 = vsel %vm1126_vm9, %v5181_v62, %v1086_v28  ;;  %vm1222_vm0 = vcmp.eq.s32.totalorder %v4348_v58, 14  ;;  %v5186_v62 = vld [vmem:[#allocation74_spill] sm:$0xff] }
 0x1f5   : > { %vm1127_vm1 = vcmp.eq.s32.totalorder %v4356_v59, 12  ;;  %vm254_vm2 = vcmp.gt.s32.totalorder %v246_v33, 14  ;;  %v1087_v9 = vsel %vm1079_vm10, %v5182_v15, %v1039_v32  ;;  %v752_v50 = vsel %vm744_vm11, %v5183_v57, %v704_v18  ;;  %v5187_v15 = vld [vmem:[#allocation16_spill] sm:$0xff] }
 0x1f6   : > { %vm792_vm3 = vcmp.eq.s32.totalorder %v4397_v2, 5  ;;  %vm601_vm4 = vcmp.eq.s32.totalorder %v4450_v49, 1  ;;  %v5184_v20 = vmov 0   ;;  %v1182_v24 = vsel %vm1174_vm12, %v5185_v44, %v1134_v40  ;;  %v2924_v44 = vld [vmem:[%s3081_s7 + $0x58] sm:$0xff] }
 0x1f7   : > { %v2862_v61 = vpop.eup %2861  ;;  %v259_v35 = vsel %vm251_vm13, 1, %v5184_v20  ;;  %v260_v63 = vsel %vm252_vm14, 1, %v5184_v20  ;;  %v261_v28 = vsel %vm253_vm15, 1, %v5184_v20  ;;  %vm1175_vm5 = vcmp.eq.s32.totalorder %v4356_v59, 13 }
 0x1f8   : > { %v1278_v6 = vmul.f32 %v2862_v61, %v4383_v52  ;;  %vm840_vm7 = vcmp.eq.s32.totalorder %v4397_v2, 6  ;;  %v262_v32 = vsel %vm254_vm2, 1, %v5184_v20  ;;  %v1135_v52 = vsel %vm1127_vm1, %v5186_v62, %v1087_v9 }
 0x1f9   : > { %v800_v57 = vsel %vm792_vm3, %v5187_v15, %v752_v50  ;;  %v609_v55 = vsel %vm601_vm4, %v5188_v37, 0.0  ;;  %vm649_vm8 = vcmp.eq.s32.totalorder %v4450_v49, 2  ;;  %v267_v21 = vsub.s32 %v243_v30, %v259_v35  ;;  %v5190_v50 = vld [vmem:[#allocation80_spill] sm:$0xff] }
 0x1fa   : > { %v268_v39 = vsub.s32 %v244_v45, %v260_v63  ;;  %v269_v40 = vsub.s32 %v245_v17, %v261_v28  ;;  %v1241_v53 = vsub.f32 %v2924_v44, %v3447_v27  ;;  %v1250_v56 = vmul.f32 1.442695, %v1240_v54  ;;  %v5191_v45 = vld [vmem:[#allocation22_spill] sm:$0xff]  ;;  %v5192_v27 = vld [vmem:[#allocation55_spill] sm:$0xff]  ;;  %v5194_v35 = vld [vmem:[#allocation28_spill] sm:$0xff] }
 0x1fb   : > { %v270_v31 = vsub.s32 %v246_v33, %v262_v32  ;;  %v1230_v9 = vsel %vm1222_vm0, %v5189_v0, %v1182_v24  ;;  %v1286_v62 = vmax.f32 %v1278_v6, 1e-07  ;;  %v1183_v37 = vsel %vm1175_vm5, %v5190_v50, %v1135_v52 }
 0x1fc   : > { %vm1223_vm9 = vcmp.eq.s32.totalorder %v4356_v59, 14  ;;  %v848_v17 = vsel %vm840_vm7, %v5191_v45, %v800_v57  ;;  %vm888_vm10 = vcmp.eq.s32.totalorder %v4397_v2, 7  ;;  %v657_v33 = vsel %vm649_vm8, %v5192_v27, %v609_v55  ;;  %v5193_v59 = vld [vmem:[#allocation86_spill] sm:$0xff]  ;;  %v5195_v55 = vld [vmem:[#allocation60_spill] sm:$0xff] }
 0x1fd   : > { %vm697_vm11 = vcmp.eq.s32.totalorder %v4450_v49, 3  ;;  %vm275_vm12 = vcmp.gt.s32.totalorder %v267_v21, 13  ;;  %vm276_vm13 = vcmp.gt.s32.totalorder %v268_v39, 13  ;;  %vm277_vm14 = vcmp.gt.s32.totalorder %v269_v40, 13 }
 0x1fe   : > { %v1294_v58 = vmul.f32 %v2862_v61, %v1230_v9  ;;  %v1231_v54 = vsel %vm1223_vm9, %v5193_v59, %v1183_v37  ;;  %vm278_vm15 = vcmp.gt.s32.totalorder %v270_v31, 13  ;;  %v896_v63 = vsel %vm888_vm10, %v5194_v35, %v848_v17  ;;  %v5197_v9 = vld [vmem:[#allocation11_spill] sm:$0xff]  ;;  %v5199_v59 = vld [vmem:[#allocation17_spill] sm:$0xff] }
 0x1ff   : > { %vm936_vm0 = vcmp.eq.s32.totalorder %v4397_v2, 8  ;;  %vm745_vm1 = vcmp.eq.s32.totalorder %v4450_v49, 4  ;;  %v705_v28 = vsel %vm697_vm11, %v5195_v55, %v657_v33  ;;  %v283_v24 = vsel %vm275_vm12, 1, %v5184_v20 }
 0x200   : > { %v284_v32 = vsel %vm276_vm13, 1, %v5184_v20  ;;  %v285_v61 = vsel %vm277_vm14, 1, %v5184_v20  ;;  %v1302_v15 = vmax.f32 %v1294_v58, 1e-07  ;;  %vm984_vm2 = vcmp.eq.s32.totalorder %v4397_v2, 9 }
 0x201   : > { %vm793_vm3 = vcmp.eq.s32.totalorder %v4450_v49, 5  ;;  %v753_v50 = vsel %vm745_vm1, %v5197_v9, %v705_v28  ;;  %v291_v37 = vsub.s32 %v267_v21, %v283_v24  ;;  %v293_v45 = vsub.s32 %v269_v40, %v285_v61  ;;  %v2925_v21 = vld [vmem:[%s3081_s7 + $0x60] sm:$0xff]  ;;  %v2926_v28 = vld [vmem:[%s3081_s7 + $0x68] sm:$0xff]  ;;  %v5202_v24 = vld [vmem:[#allocation47_spill] sm:$0xff] }
 0x202   : > { %vm1032_vm4 = vcmp.eq.s32.totalorder %v4397_v2, 10  ;;  %vm841_vm5 = vcmp.eq.s32.totalorder %v4450_v49, 6  ;;  %vm1080_vm7 = vcmp.eq.s32.totalorder %v4397_v2, 11  ;;  %v1242_v40 = vsub.f32 %v2925_v21, %v3450_v41  ;;  %v5203_v41 = vld [vmem:[#allocation89_spill] sm:$0xff]  ;;  %v5207_v21 = vld [vmem:[#allocation35_spill] sm:$0xff] }
 0x203   : > { %vm299_vm8 = vcmp.gt.s32.totalorder %v291_v37, 12  ;;  %vm301_vm10 = vcmp.gt.s32.totalorder %v293_v45, 12  ;;  %vm889_vm12 = vcmp.eq.s32.totalorder %v4450_v49, 7  ;;  %vm1128_vm13 = vcmp.eq.s32.totalorder %v4397_v2, 12 }
 0x204   : > { %vm937_vm14 = vcmp.eq.s32.totalorder %v4450_v49, 8  ;;  %v1254_v9 = vmul.f32 1.442695, %v1242_v40  ;;  %v5209_v40 = vld [vmem:[#allocation91_spill] sm:$0xff] }
 0x26e   : > { %v1639_v18 = vpop.f32.mrb[0].mxu1 }
 0x26f   : > { %2865 = vrcp.f32 %v1639_v18  ;;  %v2535_v8 = vpop.f32.mrb[1].mxu1  ;;  %v1252_v18 = vmul.f32 1.442695, %v1241_v53 }
 0x270   : > { %v2864_v8 = vpop.eup %2863 }
 0x271   : > { %v1279_v6 = vmul.f32 %v2864_v8, %v4419_v46  ;;  %v1295_v52 = vmul.f32 %v2864_v8, %v1231_v54  ;;  %v5196_v46 = vld [vmem:[#allocation34_spill] sm:$0xff]  ;;  %v801_v54 = vsel %vm793_vm3, %v5199_v59, %v753_v50  ;;  %v5205_v50 = vld [vmem:[#allocation29_spill] sm:$0xff]  ;;  %v5206_v59 = vld [vmem:[#allocation75_spill] sm:$0xff] }
 0x272   : > { %v1717_v30 = vpop.f32.mrb[2].mxu1  ;;  %v944_v57 = vsel %vm936_vm0, %v5196_v46, %v896_v63  ;;  %v5201_v63 = vld [vmem:[#allocation23_spill] sm:$0xff]  ;;  %vm985_vm0 = vcmp.eq.s32.totalorder %v4450_v49, 9 }
 0x273   : > { %2867 = vrcp.f32 %v1717_v30  ;;  %v2540_v0 = vpop.f32.mrb[3].mxu1  ;;  %v292_v30 = vsub.s32 %v268_v39, %v284_v32  ;;  %v1287_v27 = vmax.f32 %v1279_v6, 1e-07  ;;  %v1303_v53 = vmax.f32 %v1295_v52, 1e-07 }
 0x274   : > { %2869 = vpow2.f32 %v1250_v56  ;;  %v286_v56 = vsel %vm278_vm15, 1, %v5184_v20  ;;  %v5198_v0 = vld [vmem:[#allocation40_spill] sm:$0xff]  ;;  %v849_v55 = vsel %vm841_vm5, %v5201_v63, %v801_v54  ;;  %v1243_v32 = vsub.f32 %v2926_v28, %v5202_v24 }
 0x275   : > { %v294_v33 = vsub.s32 %v270_v31, %v286_v56  ;;  %2871 = vpow2.f32 %v1252_v18  ;;  %v992_v58 = vsel %vm984_vm2, %v5198_v0, %v944_v57  ;;  %vm300_vm9 = vcmp.gt.s32.totalorder %v292_v30, 12  ;;  %v5204_v57 = vld [vmem:[#allocation69_spill] sm:$0xff]  ;;  %v5212_v24 = vld [vmem:[#allocation52_spill] sm:$0xff] }
 0x276   : > { %v307_v18 = vsel %vm299_vm8, 1, %v5184_v20  ;;  %v308_v52 = vsel %vm300_vm9, 1, %v5184_v20  ;;  %v309_v56 = vsel %vm301_vm10, 1, %v5184_v20  ;;  %v1256_v0 = vmul.f32 1.442695, %v1243_v32 }
 0x277   : > { %vm302_vm11 = vcmp.gt.s32.totalorder %v294_v33, 12  ;;  %vm1176_vm15 = vcmp.eq.s32.totalorder %v4397_v2, 13 }
 0x278   : > { %v310_v46 = vsel %vm302_vm11, 1, %v5184_v20 }
 0x279   : > { %v2866_v44 = vpop.eup %2865 }
 0x27a   : > { %v1644_v17 = vmul.f32 %v2866_v44, %v1286_v62  ;;  %v5200_v62 = vld [vmem:[#allocation63_spill] sm:$0xff] }
 0x27b   : > { %v1040_v6 = vsel %vm1032_vm4, %v5200_v62, %v992_v58  ;;  %v4544_v58 = vsub.s32 %v294_v33, %v310_v46  ;;  %vm1224_vm4 = vcmp.eq.s32.totalorder %v4397_v2, 14  ;;  %v5210_v62 = vld [vmem:[#allocation41_spill] sm:$0xff] }
 0x27c   : > { %v1645_v8 = vadd.f32 %v1644_v17, %v1302_v15  ;;  %v1088_v44 = vsel %vm1080_vm7, %v5204_v57, %v1040_v6  ;;  %v897_v17 = vsel %vm889_vm12, %v5205_v50, %v849_v55  ;;  %vm1033_vm7 = vcmp.eq.s32.totalorder %v4450_v49, 10  ;;  %v5211_v55 = vld [vmem:[#allocation51_spill] sm:$0xff]  ;;  %v5215_v57 = vld [vmem:[#allocation56_spill] sm:$0xff] }
 0x27d   : > { %v2868_v35 = vpop.eup %2867  ;;  %v1136_v54 = vsel %vm1128_vm13, %v5206_v59, %v1088_v44  ;;  %vm605_vm5 = vcmp.eq.s32.totalorder %v4544_v58, 1  ;;  %vm653_vm11 = vcmp.eq.s32.totalorder %v4544_v58, 2  ;;  %vm1081_vm12 = vcmp.eq.s32.totalorder %v4450_v49, 11 }
 0x27e   : > { %v4515_v39 = vpop.eup %2869  ;;  %2873 = vlog2.f32 %v1645_v8  ;;  %v1722_v31 = vmul.f32 %v2868_v35, %v1287_v27  ;;  %v4538_v27 = vsub.s32 %v291_v37, %v307_v18  ;;  %v4542_v8 = vsub.s32 %v293_v45, %v309_v56  ;;  %v2927_v35 = vld [vmem:[%s3081_s7 + $0x70] sm:$0xff]  ;;  %v5208_v45 = vld [vmem:[#allocation81_spill] sm:$0xff] }
 0x27f   : > { %v1264_v15 = vadd.f32 %v4515_v39, %v5203_v41  ;;  %v4546_v20 = vpop.eup %2871  ;;  %v945_v37 = vsel %vm937_vm14, %v5207_v21, %v897_v17  ;;  %v1184_v33 = vsel %vm1176_vm15, %v5208_v45, %v1136_v54  ;;  %v613_v18 = vsel %vm605_vm5, %v4196_v47, 0.0  ;;  %v5213_v41 = vld [vmem:[#allocation64_spill] sm:$0xff]  ;;  %v5218_v45 = vld [vmem:[#allocation70_spill] sm:$0xff] }
 0x280   : > { %v1723_v61 = vadd.f32 %v1722_v31, %v1303_v53  ;;  %v4540_v53 = vsub.s32 %v292_v30, %v308_v52  ;;  %v1244_v31 = vsub.f32 %v2927_v35, %v3997_v19  ;;  %vm602_vm1 = vcmp.eq.s32.totalorder %v4538_v27, 1  ;;  %v5217_v35 = vld [vmem:[#allocation7_spill] sm:$0xff] }
 0x281   : > { %vm604_vm3 = vcmp.eq.s32.totalorder %v4542_v8, 1  ;;  %v1265_v19 = vadd.f32 %v4546_v20, %v5209_v40  ;;  %v993_v6 = vsel %vm985_vm0, %v5210_v62, %v945_v37  ;;  %vm650_vm8 = vcmp.eq.s32.totalorder %v4538_v27, 2  ;;  %v2928_v21 = vld [vmem:[%s3081_s7 + $0x78] sm:$0xff]  ;;  %s2996_s7 = smov [#allocation2]  }
 0x282   : > { %2875 = vlog2.f32 %v1723_v61  ;;  %vm603_vm2 = vcmp.eq.s32.totalorder %v4540_v53, 1  ;;  %v1258_v63 = vmul.f32 1.442695, %v1244_v31  ;;  %v610_v28 = vsel %vm602_vm1, %v5211_v55, 0.0  ;;  %s2933_s8 = sshll.u32 %s2996_s7, 4  ;;  %s2934_s8 = int_to_ptr.vmem [resolvable:$false] %s2933_s8 }
 0x283   : > { %2877 = vrcp.f32 %v1264_v15  ;;  %v611_v32 = vsel %vm603_vm2, %v5212_v24, 0.0  ;;  %v612_v61 = vsel %vm604_vm3, %v4075_v16, 0.0  ;;  %vm651_vm9 = vcmp.eq.s32.totalorder %v4540_v53, 2  ;;  %v5214_v15 = vld [vmem:[#allocation57_spill] sm:$0xff]  ;;  %s2935_s9 = scalar_lea.vmem %s2934_s8, 32  ;;  %p2936_p0 = scmp.lt.s32.totalorder %s4777_s27, %s2934_s8 }
 0x284   : > { %2879 = vpow2.f32 %v1254_v9  ;;  %vm652_vm10 = vcmp.eq.s32.totalorder %v4542_v8, 2  ;;  %vm1648_vm13 = vcmp.ne.s32.totalorder %v4323_v5, 0  ;;  %vm1726_vm14 = vcmp.ne.s32.totalorder %v4327_v11, 0  ;;  %v5216_v9 = vld [vmem:[#allocation44_spill] sm:$0xff]  ;;  %p2937_p1 = scmp.lt.s32.totalorder %s2935_s9, %s2929_s6 }
 0x285   : > { %2881 = vpow2.f32 %v1256_v0  ;;  %v1041_v16 = vsel %vm1033_vm7, %v5213_v41, %v993_v6  ;;  %v659_v47 = vsel %vm651_vm9, %v5214_v15, %v611_v32  ;;  %vm699_vm15 = vcmp.eq.s32.totalorder %v4540_v53, 3  ;;  %v5221_v32 = vld [vmem:[#allocation13_spill] sm:$0xff] }
 0x286   : > { %2883 = vrcp.f32 %v1265_v19  ;;  %v658_v44 = vsel %vm650_vm8, %v5215_v57, %v610_v28  ;;  %v660_v50 = vsel %vm652_vm10, %v5216_v9, %v612_v61  ;;  %v661_v17 = vsel %vm653_vm11, %v4199_v7, %v613_v18  ;;  %v5219_v19 = vld [vmem:[#allocation6_spill] sm:$0xff]  ;;  %v5220_v28 = vld [vmem:[#allocation87_spill] sm:$0xff]  ;;  %v5224_v41 = vld [vmem:[#allocation45_spill] sm:$0xff]  ;;  %p2938_p2 = por %p2937_p1, %p2936_p0 }
 0x287   : > { %vm698_vm0 = vcmp.eq.s32.totalorder %v4538_v27, 3  ;;  %vm700_vm1 = vcmp.eq.s32.totalorder %v4542_v8, 3  ;;  %vm701_vm2 = vcmp.eq.s32.totalorder %v4544_v58, 3  ;;  %v707_v31 = vsel %vm699_vm15, %v5217_v35, %v659_v47  ;;  %v5225_v47 = vld [vmem:[#allocation19_spill] sm:$0xff]  ;;  %v5226_v9 = vld [vmem:[#allocation18_spill] sm:$0xff] }
 0x288   : > { %v2874_v30 = vpop.eup %2873  ;;  %vm747_vm3 = vcmp.eq.s32.totalorder %v4540_v53, 4  ;;  %v1245_v7 = vsub.f32 %v2928_v21, %v4145_v29  ;;  %v1089_v40 = vsel %vm1081_vm12, %v5218_v45, %v1041_v16  ;;  %vm1129_vm5 = vcmp.eq.s32.totalorder %v4450_v49, 12  ;;  %v5229_v21 = vld [vmem:[#allocation24_spill] sm:$0xff]  ;;  %p2939_p3 = pnand %p2938_p2, %p2932_p13 }
 0x289   : > { %v1647_v52 = vmul.f32 0.6931472, %v2874_v30  ;;  %v706_v62 = vsel %vm698_vm0, %v5219_v19, %v658_v44  ;;  %vm746_vm7 = vcmp.eq.s32.totalorder %v4538_v27, 4  ;;  %v708_v29 = vsel %vm700_vm1, %v4096_v22, %v660_v50  ;;  %v5222_v22 = vld [vmem:[#allocation76_spill] sm:$0xff] }
 0x28a   : > { %v709_v55 = vsel %vm701_vm2, %v4203_v3, %v661_v17  ;;  %vm748_vm8 = vcmp.eq.s32.totalorder %v4542_v8, 4  ;;  %vm749_vm9 = vcmp.eq.s32.totalorder %v4544_v58, 4  ;;  %v1232_v24 = vsel %vm1224_vm4, %v5220_v28, %v1184_v33  ;;  %v5223_v3 = vld [vmem:[#allocation12_spill] sm:$0xff] }
 0x28b   : > { %v1649_v0 = vsel %vm1648_vm13, %v1647_v52, 0.0  ;;  %2885 = vpow2.f32 %v1258_v63  ;;  %v755_v61 = vsel %vm747_vm3, %v5221_v32, %v707_v31  ;;  %vm795_vm10 = vcmp.eq.s32.totalorder %v4540_v53, 5  ;;  %v5228_v31 = vld [vmem:[#allocation25_spill] sm:$0xff] }
 0x28c   : > { %v2876_v56 = vpop.eup %2875  ;;  %v1137_v18 = vsel %vm1129_vm5, %v5222_v22, %v1089_v40  ;;  %vm1177_vm11 = vcmp.eq.s32.totalorder %v4450_v49, 13  ;;  %v754_v52 = vsel %vm746_vm7, %v5223_v3, %v706_v62  ;;  %vm794_vm12 = vcmp.eq.s32.totalorder %v4538_v27, 5 }
 0x28d   : > { %v1725_v46 = vmul.f32 0.6931472, %v2876_v56  ;;  %v2878_v54 = vpop.eup %2877  ;;  %v756_v16 = vsel %vm748_vm8, %v5224_v41, %v708_v29  ;;  %v757_v2 = vsel %vm749_vm9, %v4210_v42, %v709_v55  ;;  %vm796_vm4 = vcmp.eq.s32.totalorder %v4542_v8, 5  ;;  %v5227_v42 = vld [vmem:[#allocation82_spill] sm:$0xff]  ;;  %v5232_v55 = vld [vmem:[#allocation31_spill] sm:$0xff] }
 0x28e   : > { %v4598_v30 = vpop.eup %2879  ;;  %v1260_v33 = vmul.f32 1.442695, %v1245_v7  ;;  %vm797_vm15 = vcmp.eq.s32.totalorder %v4544_v58, 5  ;;  %vm843_vm0 = vcmp.eq.s32.totalorder %v4540_v53, 6  ;;  %v1280_v57 = vmul.f32 %v2878_v54, %v4515_v39 }
 0x28f   : > { %v1727_v59 = vsel %vm1726_vm14, %v1725_v46, 0.0  ;;  %v4606_v6 = vpop.eup %2881  ;;  %v803_v46 = vsel %vm795_vm10, %v5225_v47, %v755_v61  ;;  %v1296_v44 = vmul.f32 %v2878_v54, %v1232_v24  ;;  %v802_v50 = vsel %vm794_vm12, %v5226_v9, %v754_v52  ;;  %v5233_v61 = vld [vmem:[#allocation30_spill] sm:$0xff]  ;;  %v5235_v52 = vld [vmem:[#allocation37_spill] sm:$0xff] }
 0x290   : > { %v4596_v37 = vadd.f32 %v1727_v59, %v1649_v0  ;;  %v2884_v63 = vpop.eup %2883  ;;  %vm842_vm1 = vcmp.eq.s32.totalorder %v4538_v27, 6  ;;  %v1185_v17 = vsel %vm1177_vm11, %v5227_v42, %v1137_v18  ;;  %vm1225_vm2 = vcmp.eq.s32.totalorder %v4450_v49, 14  ;;  %v5234_v18 = vld [vmem:[#allocation94_spill] sm:$0xff]  ;;  %v5238_v9 = vld [vmem:[#allocation61_spill] sm:$0xff] }
 0x291   : > { %v804_v0 = vsel %vm796_vm4, %v4126_v23, %v756_v16  ;;  %vm844_vm3 = vcmp.eq.s32.totalorder %v4542_v8, 6  ;;  %v805_v35 = vsel %vm797_vm15, %v4217_v25, %v757_v2  ;;  %v851_v39 = vsel %vm843_vm0, %v5228_v31, %v803_v46  ;;  %v5230_v23 = vld [vmem:[#allocation93_spill] sm:$0xff]  ;;  %v5231_v25 = vld [vmem:[#allocation88_spill] sm:$0xff]  ;;  %v5237_v47 = vld [vmem:[#allocation62_spill] sm:$0xff] }
 0x292   : > { %vm891_vm5 = vcmp.eq.s32.totalorder %v4540_v53, 7  ;;  %vm845_vm7 = vcmp.eq.s32.totalorder %v4544_v58, 6  ;;  %v850_v7 = vsel %vm842_vm1, %v5229_v21, %v802_v50  ;;  %vm890_vm8 = vcmp.eq.s32.totalorder %v4538_v27, 7  ;;  %v5236_v2 = vld [vmem:[#allocation36_spill] sm:$0xff] }
 0x293   : > { %v1288_v45 = vmax.f32 %v1280_v57, 1e-07  ;;  %v1266_v40 = vadd.f32 %v4598_v30, %v5230_v23  ;;  %v852_v19 = vsel %vm844_vm3, %v4136_v26, %v804_v0  ;;  %vm892_vm9 = vcmp.eq.s32.totalorder %v4542_v8, 7  ;;  %v5239_v0 = vld [vmem:[#allocation66_spill] sm:$0xff]  ;;  %v5241_v21 = vld [vmem:[#allocation72_spill] sm:$0xff]  ;;  %v5242_v23 = vld [vmem:[#allocation71_spill] sm:$0xff] }
 0x294   : > { %v1795_v56 = vpop.f32.mrb[4].mxu1  ;;  %v1233_v62 = vsel %vm1225_vm2, %v5231_v25, %v1185_v17  ;;  %v1281_v29 = vmul.f32 %v2884_v63, %v4546_v20  ;;  %v899_v28 = vsel %vm891_vm5, %v5232_v55, %v851_v39  ;;  %vm939_vm10 = vcmp.eq.s32.totalorder %v4540_v53, 8 }
 0x295   : > { %2887 = vrcp.f32 %v1795_v56  ;;  %v2545_v15 = vpop.f32.mrb[5].mxu1  ;;  %v4658_v24 = vpop.eup %2885  ;;  %v853_v32 = vsel %vm845_vm7, %v4224_v10, %v805_v35  ;;  %vm893_vm11 = vcmp.eq.s32.totalorder %v4544_v58, 7  ;;  %v898_v26 = vsel %vm890_vm8, %v5233_v61, %v850_v7  ;;  %v5240_v35 = vld [vmem:[#allocation65_spill] sm:$0xff] }
 0x296   : > { %2889 = vpow2.f32 %v1260_v33  ;;  %vm938_vm12 = vcmp.eq.s32.totalorder %v4538_v27, 8  ;;  %v1304_v22 = vmax.f32 %v1296_v44, 1e-07  ;;  %v1267_v49 = vadd.f32 %v4606_v6, %v5234_v18 }
 0x297   : > { %v900_v20 = vsel %vm892_vm9, %v4140_v34, %v852_v19  ;;  %vm940_vm4 = vcmp.eq.s32.totalorder %v4542_v8, 8  ;;  %v1297_v3 = vmul.f32 %v2884_v63, %v1233_v62  ;;  %v947_v56 = vsel %vm939_vm10, %v5235_v52, %v899_v28  ;;  %v5244_v62 = vld [vmem:[#allocation77_spill] sm:$0xff]  ;;  %v5245_v28 = vld [vmem:[#allocation46_spill] sm:$0xff] }
 0x298   : > { %v1873_v59 = vpop.f32.mrb[6].mxu1  ;;  %vm987_vm15 = vcmp.eq.s32.totalorder %v4540_v53, 9  ;;  %v1289_v41 = vmax.f32 %v1281_v29, 1e-07  ;;  %v901_v16 = vsel %vm893_vm11, %v4229_v1, %v853_v32  ;;  %v946_v33 = vsel %vm938_vm12, %v5236_v2, %v898_v26  ;;  %v5249_v52 = vld [vmem:[#allocation97_spill] sm:$0xff] }
 0x299   : > { %2891 = vrcp.f32 %v1873_v59  ;;  %v2550_v54 = vpop.f32.mrb[7].mxu1  ;;  %vm986_vm0 = vcmp.eq.s32.totalorder %v4538_v27, 9  ;;  %vm941_vm1 = vcmp.eq.s32.totalorder %v4544_v58, 8  ;;  %v948_v34 = vsel %vm940_vm4, %v4147_v13, %v900_v20 }
 0x29a   : > { %2893 = vrcp.f32 %v1266_v40  ;;  %vm988_vm2 = vcmp.eq.s32.totalorder %v4542_v8, 9  ;;  %v1268_v63 = vadd.f32 %v4658_v24, %v4206_v4  ;;  %v995_v46 = vsel %vm987_vm15, %v5237_v47, %v947_v56 }
 0x29b   : > { %2895 = vrcp.f32 %v1267_v49  ;;  %vm1035_vm3 = vcmp.eq.s32.totalorder %v4540_v53, 10  ;;  %v1305_v44 = vmax.f32 %v1297_v3, 1e-07  ;;  %v994_v50 = vsel %vm986_vm0, %v5238_v9, %v946_v33  ;;  %v5247_v49 = vld [vmem:[#allocation83_spill] sm:$0xff] }
 0x29c   : > { %vm1034_vm5 = vcmp.eq.s32.totalorder %v4538_v27, 10  ;;  %v949_v13 = vsel %vm941_vm1, %v4233_v14, %v901_v16  ;;  %vm989_vm7 = vcmp.eq.s32.totalorder %v4544_v58, 9  ;;  %v996_v17 = vsel %vm988_vm2, %v4164_v12, %v948_v34  ;;  %v5250_v16 = vld [vmem:[#allocation92_spill] sm:$0xff]  ;;  %v5252_v34 = vld [vmem:[#allocation90_spill] sm:$0xff] }
 0x29d   : > { %vm1036_vm8 = vcmp.eq.s32.totalorder %v4542_v8, 10  ;;  %v1043_v59 = vsel %vm1035_vm3, %v5239_v0, %v995_v46  ;;  %vm1083_vm9 = vcmp.eq.s32.totalorder %v4540_v53, 11  ;;  %v1042_v31 = vsel %vm1034_vm5, %v5240_v35, %v994_v50  ;;  %v5254_v50 = vld [vmem:[#allocation101_spill] sm:$0xff] }
 0x29e   : > { %vm1082_vm10 = vcmp.eq.s32.totalorder %v4538_v27, 11  ;;  %v997_v54 = vsel %vm989_vm7, %v4240_v43, %v949_v13  ;;  %vm1037_vm11 = vcmp.eq.s32.totalorder %v4544_v58, 10  ;;  %v1044_v12 = vsel %vm1036_vm8, %v4171_v51, %v996_v17  ;;  %v5243_v51 = vld [vmem:[#allocation78_spill] sm:$0xff] }
 0x29f   : > { %v2888_v10 = vpop.eup %2887  ;;  %vm1084_vm12 = vcmp.eq.s32.totalorder %v4542_v8, 11  ;;  %v1091_v7 = vsel %vm1083_vm9, %v5241_v21, %v1043_v59  ;;  %vm1131_vm4 = vcmp.eq.s32.totalorder %v4540_v53, 12  ;;  %v1090_v40 = vsel %vm1082_vm10, %v5242_v23, %v1042_v31  ;;  %v5255_v31 = vld [vmem:[#allocation99_spill] sm:$0xff] }
 0x2a0   : > { %v1800_v15 = vmul.f32 %v2888_v10, %v1288_v45  ;;  %v4680_v1 = vpop.eup %2889  ;;  %vm1130_vm15 = vcmp.eq.s32.totalorder %v4538_v27, 12  ;;  %vm1085_vm0 = vcmp.eq.s32.totalorder %v4544_v58, 11  ;;  %v1092_v43 = vsel %vm1084_vm12, %v4176_v60, %v1044_v12  ;;  %v5246_v60 = vld [vmem:[#allocation84_spill] sm:$0xff] }
 0x2a1   : > { %v1269_v39 = vadd.f32 %v4680_v1, %v4268_v38  ;;  %v1045_v38 = vsel %vm1037_vm11, %v4244_v36, %v997_v54  ;;  %vm1132_vm1 = vcmp.eq.s32.totalorder %v4542_v8, 12  ;;  %v1139_v19 = vsel %vm1131_vm4, %v5243_v51, %v1091_v7 }
 0x2a2   : > { %v1801_v57 = vadd.f32 %v1800_v15, %v1304_v22  ;;  %vm1179_vm2 = vcmp.eq.s32.totalorder %v4540_v53, 13  ;;  %v1138_v29 = vsel %vm1130_vm15, %v5244_v62, %v1090_v40  ;;  %vm1178_vm3 = vcmp.eq.s32.totalorder %v4538_v27, 13  ;;  %v5251_v15 = vld [vmem:[#allocation95_spill] sm:$0xff] }
 0x2a3   : > { %v2892_v42 = vpop.eup %2891  ;;  %v1093_v55 = vsel %vm1085_vm0, %v4250_v48, %v1045_v38  ;;  %vm1133_vm5 = vcmp.eq.s32.totalorder %v4544_v58, 12  ;;  %v1140_v32 = vsel %vm1132_vm1, %v5245_v28, %v1092_v43  ;;  %vm1180_vm7 = vcmp.eq.s32.totalorder %v4542_v8, 13  ;;  %v5248_v48 = vld [vmem:[#allocation100_spill] sm:$0xff] }
 0x2a4   : > { %2897 = vlog2.f32 %v1801_v57  ;;  %v1878_v4 = vmul.f32 %v2892_v42, %v1289_v41  ;;  %v2894_v45 = vpop.eup %2893  ;;  %v1187_v61 = vsel %vm1179_vm2, %v5246_v60, %v1139_v19  ;;  %vm1227_vm8 = vcmp.eq.s32.totalorder %v4540_v53, 14 }
 0x2a5   : > { %2899 = vrcp.f32 %v1268_v63  ;;  %v2896_v25 = vpop.eup %2895  ;;  %v1186_v20 = vsel %vm1178_vm3, %v5247_v49, %v1138_v29  ;;  %vm1226_vm9 = vcmp.eq.s32.totalorder %v4538_v27, 14  ;;  %vm1804_vm10 = vcmp.ne.s32.totalorder %v5248_v48, 0  ;;  %v5258_v48 = vld [vmem:[#allocation48_spill] sm:$0xff] }
 0x2a6   : > { %v1879_v14 = vadd.f32 %v1878_v4, %v1305_v44  ;;  %v1141_v56 = vsel %vm1133_vm5, %v5249_v52, %v1093_v55  ;;  %vm1181_vm11 = vcmp.eq.s32.totalorder %v4544_v58, 13  ;;  %v1282_v53 = vmul.f32 %v2894_v45, %v4598_v30  ;;  %v5253_v44 = vld [vmem:[#allocation98_spill] sm:$0xff] }
 0x2a7   : > { %v1235_v2 = vsel %vm1227_vm8, %v5250_v16, %v1187_v61  ;;  %v1283_v33 = vmul.f32 %v2896_v25, %v4606_v6  ;;  %v1188_v27 = vsel %vm1180_vm7, %v5251_v15, %v1140_v32  ;;  %v1234_v63 = vsel %vm1226_vm9, %v5252_v34, %v1186_v20 }
 0x2a8   : > { %2901 = vlog2.f32 %v1879_v14  ;;  %v1189_v9 = vsel %vm1181_vm11, %v5253_v44, %v1141_v56  ;;  %vm1229_vm12 = vcmp.eq.s32.totalorder %v4544_v58, 14  ;;  %vm1882_vm4 = vcmp.ne.s32.totalorder %v5254_v50, 0  ;;  %v5256_v14 = vld [vmem:[#allocation96_spill] sm:$0xff] }
 0x2a9   : > { %2903 = vrcp.f32 %v1269_v39  ;;  %vm1228_vm15 = vcmp.eq.s32.totalorder %v4542_v8, 14  ;;  %v1299_v17 = vmul.f32 %v2896_v25, %v1235_v2  ;;  %v1298_v59 = vmul.f32 %v2894_v45, %v1234_v63 }
 0x2aa   : > { %v1291_v35 = vmax.f32 %v1283_v33, 1e-07  ;;  %v1237_v39 = vsel %vm1229_vm12, %v5255_v31, %v1189_v9  ;;  %v1236_v54 = vsel %vm1228_vm15, %v5256_v14, %v1188_v27  ;;  %v5257_v43 = vmov 0.0   ;;  %v5259_v33 = vld [vmem:[#allocation58_spill] sm:$0xff]  ;;  %v5260_v9 = vld [vmem:[#allocation53_spill] sm:$0xff] }
 0x2ab   : > { %v2029_v36 = vpop.f32.mrb[8].mxu1  ;;  %v1307_v8 = vmax.f32 %v1299_v17, 1e-07  ;;  %v1306_v38 = vmax.f32 %v1298_v59, 1e-07  ;;  %v2479_v45 = vsel %vm1648_vm13, 1.0, %v5257_v43 }
 0x2ac   : > { %v1951_v22 = vpop.f32.mrb[8].mxu0  ;;  %2905 = vrcp.f32 %v2029_v36  ;;  %v2560_v18 = vpop.f32.mrb[9].mxu1  ;;  %v2480_v51 = vsel %vm1726_vm14, 1.0, %v5257_v43  ;;  %v2481_v5 = vsel %vm1804_vm10, 1.0, %v5257_v43  ;;  %v2482_v52 = vsel %vm1882_vm4, 1.0, %v5257_v43 }
 0x2ad   : > { %2907 = vrcp.f32 %v1951_v22  ;;  %v2555_v3 = vpop.f32.mrb[9].mxu0  ;;  %v2224_v28 = vsel %vm1439_vm6, %v2480_v51, 0.0  ;;  %v2226_v20 = vsel %vm1439_vm6, %v2481_v5, 0.0  ;;  %vm1960_vm13 = vcmp.ne.s32.totalorder %v5258_v48, 0 }
 0x2ae   : > { %v2898_v26 = vpop.eup %2897  ;;  %vm2038_vm14 = vcmp.ne.s32.totalorder %v5259_v33, 0  ;;  %vm2116_vm0 = vcmp.ne.s32.totalorder %v5260_v9, 0  ;;  %vm2253_vm2 = vcmask 8192  }
 0x2af   : > { %v1803_v10 = vmul.f32 0.6931472, %v2898_v26  ;;  %v2900_v41 = vpop.eup %2899  ;;  %v2484_v63 = vsel %vm2038_vm14, 1.0, %v5257_v43 }
 0x2b0   : > { %v2185_v57 = vpop.f32.mrb[10].mxu1  ;;  %v1284_v7 = vmul.f32 %v2900_v41, %v4658_v24  ;;  %v1300_v62 = vmul.f32 %v2900_v41, %v1236_v54  ;;  %v2223_v24 = vsel %vm1439_vm6, %v2479_v45, 0.0  ;;  %v2228_v41 = vsel %vm1439_vm6, %v2482_v52, 0.0 }
 0x2b1   : > { %v1805_v47 = vsel %vm1804_vm10, %v1803_v10, 0.0  ;;  %v2107_v42 = vpop.f32.mrb[10].mxu0  ;;  %2909 = vrcp.f32 %v2185_v57  ;;  %v2570_v13 = vpop.f32.mrb[11].mxu1  ;;  %v2225_v18 = vadd.f32 %v2224_v28, %v2223_v24  ;;  %v2247_v28 = vlaneseq }
 0x2b2   : > { %v2902_v46 = vpop.eup %2901  ;;  %v1806_v30 = vadd.f32 %v1805_v47, %v4596_v37  ;;  %2911 = vrcp.f32 %v2107_v42  ;;  %v2565_v0 = vpop.f32.mrb[11].mxu0  ;;  %v1290_v37 = vmax.f32 %v1282_v53, 1e-07  ;;  %v1292_v55 = vmax.f32 %v1284_v7, 1e-07 }
 0x2b3   : > { %v2904_v6 = vpop.eup %2903  ;;  %v1881_v4 = vmul.f32 0.6931472, %v2902_v46  ;;  %v1308_v11 = vmax.f32 %v1300_v62, 1e-07  ;;  %v2227_v10 = vadd.f32 %v2226_v20, %v2225_v18  ;;  %v2483_v53 = vsel %vm1960_vm13, 1.0, %v5257_v43 }
 0x2b4   : > { %v1285_v12 = vmul.f32 %v2904_v6, %v4680_v1  ;;  %v1301_v40 = vmul.f32 %v2904_v6, %v1237_v39  ;;  %v2230_v15 = vsel %vm1439_vm6, %v2483_v53, 0.0  ;;  %v2485_v42 = vsel %vm2116_vm0, 1.0, %v5257_v43 }
 0x2b5   : > { %v1883_v58 = vsel %vm1882_vm4, %v1881_v4, 0.0  ;;  %v2229_v16 = vadd.f32 %v2228_v41, %v2227_v10  ;;  %v5261_v4 = vld [vmem:[#allocation8_spill] sm:$0xff]  ;;  %v2234_v31 = vsel %vm1439_vm6, %v2485_v42, 0.0 }
 0x2b6   : > { %v1884_v21 = vadd.f32 %v1883_v58, %v1806_v30  ;;  %v2906_v23 = vpop.eup %2905  ;;  %v1293_v1 = vmax.f32 %v1285_v12, 1e-07  ;;  %v1309_v32 = vmax.f32 %v1301_v40, 1e-07  ;;  %v2232_v30 = vsel %vm1439_vm6, %v2484_v63, 0.0 }
 0x2b7   : > { %v2908_v19 = vpop.eup %2907  ;;  %v2034_v25 = vmul.f32 %v2906_v23, %v1291_v35  ;;  %v2231_v46 = vadd.f32 %v2230_v15, %v2229_v16  ;;  %vm2194_vm1 = vcmp.ne.s32.totalorder %v5261_v4, 0 }
 0x2b8   : > { %v1956_v29 = vmul.f32 %v2908_v19, %v1290_v37  ;;  %v2486_v37 = vsel %vm2194_vm1, 1.0, %v5257_v43 }
 0x2b9   : > { %v2035_v36 = vadd.f32 %v2034_v25, %v1307_v8  ;;  %v2233_v35 = vadd.f32 %v2232_v30, %v2231_v46 }
 0x2ba   : > { %v1957_v60 = vadd.f32 %v1956_v29, %v1306_v38 }
 0x2bb   : > { %v2910_v61 = vpop.eup %2909  ;;  %2913 = vlog2.f32 %v2035_v36  ;;  %v2235_v54 = vadd.f32 %v2234_v31, %v2233_v35 }
 0x2bc   : > { %v2912_v26 = vpop.eup %2911  ;;  %2915 = vlog2.f32 %v1957_v60  ;;  %v2190_v22 = vmul.f32 %v2910_v61, %v1293_v1 }
 0x2bd   : > { %v2112_v49 = vmul.f32 %v2912_v26, %v1292_v55 }
 0x2be   : > { %v2191_v3 = vadd.f32 %v2190_v22, %v1309_v32  ;;  %v2248_v32 = vand.u32 127, %v2247_v28 }
 0x2bf   : > { %v2113_v56 = vadd.f32 %v2112_v49, %v1308_v11 }
 0x2c0   : > { %2917 = vlog2.f32 %v2191_v3 }
 0x2c1   : > { %2919 = vlog2.f32 %v2113_v56 }
 0x2c5   : > { %v2914_v2 = vpop.eup %2913 }
 0x2c6   : > { %v2916_v27 = vpop.eup %2915  ;;  %v2037_v34 = vmul.f32 0.6931472, %v2914_v2 }
 0x2c7   : > { %v1959_v47 = vmul.f32 0.6931472, %v2916_v27 }
 0x2c8   : > { %v2039_v44 = vsel %vm2038_vm14, %v2037_v34, 0.0 }
 0x2c9   : > { %v1961_v57 = vsel %vm1960_vm13, %v1959_v47, 0.0 }
 0x2ca   : > { %v2918_v50 = vpop.eup %2917  ;;  %v1962_v6 = vadd.f32 %v1961_v57, %v1884_v21  ;;  %v2236_v21 = vsel %vm1439_vm6, %v2486_v37, 0.0 }
 0x2cb   : > { %v2920_v13 = vpop.eup %2919  ;;  %v2193_v17 = vmul.f32 0.6931472, %v2918_v50  ;;  %v2237_v8 = vadd.f32 %v2236_v21, %v2235_v54 }
 0x2cc   : > { %v2040_v0 = vadd.f32 %v2039_v44, %v1962_v6  ;;  %v2115_v59 = vmul.f32 0.6931472, %v2920_v13 }
 0x2cd   : > { %v2195_v58 = vsel %vm2194_vm1, %v2193_v17, 0.0 }
 0x2ce   : > { %v2117_v39 = vsel %vm2116_vm0, %v2115_v59, 0.0 }
 0x2cf   : > { %v2118_v14 = vadd.f32 %v2117_v39, %v2040_v0 }
 0x2d1   : > { %v2196_v12 = vadd.f32 %v2195_v58, %v2118_v14 }
 0x2d3   : > { %v2197_v7 = vsel %vm1439_vm6, %v2196_v12, 0.0  ;;  %vm2249_vm6 = vcmp.eq.s32.totalorder %v2248_v32, 0 }
 0x2d4   : > { %2198 = vadd.xlane.f32.xlu0 %v2197_v7 }
 0x2d8   : > { %2238 = vadd.xlane.f32.xlu0 %v2237_v8 }
 0x361   : > { %v2199_v23 = vpop.xlane.xlu0 %2198 }
 0x362   : > { %v2200_v40 = vrot.slane %v2199_v23, 4 }
 0x364   : > { %v2201_v38 = vadd.f32 %v2200_v40, %v2199_v23 }
 0x365   : > { %v2239_v45 = vpop.xlane.xlu0 %2238 }
 0x366   : > { %v2202_v51 = vrot.slane %v2201_v38, 2  ;;  %v2240_v19 = vrot.slane %v2239_v45, 4 }
 0x368   : > { %v2241_v25 = vadd.f32 %v2240_v19, %v2239_v45  ;;  %v2203_v43 = vadd.f32 %v2202_v51, %v2201_v38 }
 0x36a   : > { %v2242_v62 = vrot.slane %v2241_v25, 2  ;;  %v2204_v29 = vrot.slane %v2203_v43, 1 }
 0x36c   : > { %v2243_v1 = vadd.f32 %v2242_v62, %v2241_v25  ;;  %v2205_v55 = vadd.f32 %v2204_v29, %v2203_v43 }
 0x36e   : > { %2571 = vpush %v2205_v55  ;;  %v2244_v36 = vrot.slane %v2243_v1, 1 }
 0x370   : > { %v2245_v24 = vadd.f32 %v2244_v36, %v2243_v1 }
 0x372   : > { %2573 = vpush %v2245_v24 }
 0x39f   : > { %s2572_s22 = spop %2571 }
 0x3a0   : > { %v2250_v60 = vstv %s2572_s22 }
 0x3a3   : > { %s2574_s28 = spop %2573 }
 0x3a4   : > { %v2251_v5 = vstv %s2574_s28 }
 0x3a5   : > { %v2252_v61 = vsel %vm2249_vm6, %v2250_v60, %v2251_v5 }
 0x3a6   : > { %2254 = vst.msk [vmem:[%s204_s23] sm:$0x1] %vm2253_vm2, %v2252_v61 }
 0x3a7   : > { %2942 = shalt.err (!%p2939_p3)
}
 0x3a8   : > { %s2943_s10 = scalar_lea.hbm %s4775_s5, 16  ;;  %s2947_s13 = scalar_lea.hbm %s4821_s4, 32 }
 0x3a9   : > { %p2944_p4 = scmp.ne.s32.totalorder %s4775_s5, %s2943_s10  ;;  %p2948_p9 = scmp.lt.u32.totalorder %s4775_s5, %s4821_s4 }
 0x3aa   : > { %p2949_p10 = scmp.lt.u32.totalorder %s2947_s13, %s2943_s10  ;;  %p2951_p12 = scmp.lt.u32.totalorder %s2943_s10, %s4775_s5 }
 0x3ab   : > { %p2945_p7 = pnand %p2944_p4, %p3060_p5 }
 0x3ac   : > { %p2950_p11 = por %p2949_p10, %p2948_p9 }
 0x3ad   : > { %p2946_p8 = pneg %p2945_p7 }
 0x3ae   : > { %p2952_p13 = por %p2951_p12, %p2950_p11 }
 0x3b0   : > { %p2953_p0 = pnand %p2952_p13, %p2946_p8 }
 0x3b2   : > { %2956 = shalt.err (!%p2953_p0)
}
 0x3b3   : > { %2575 = dma.vmem_to_hbm [thread:$0]  (%p3060_p5), %s4777_s27, 16, %s4775_s5, %s2256_s19  }
 0x3b4 PF: > { %p2581_p1 = scmp.ge.s32.totalorder %s2991_s18, 2  ;;  %s2280_s22 = sand.u32 1, %s2979_s15  }
 0x3b5   : > { %s2281_s23 = scalar_lea.sflag [#allocation3], %s2280_s22 }
 0x3b6   : > { %p2578_p2 = pnand %p2581_p1, %p3064_p6 }
 0x3b8   : > { %2974 = dma.done.wait (!%p2578_p2), %s2281_s23, 16  }
 0x3b9   : > { %2976 = vsyncadd (!%p2578_p2), %s2281_s23, 4294967280  ;;  %p14_p3 = scmp.ge.s32.totalorder %s3047_s21, 4   ;;  %s5262_s15 = smov %s2983_s16 }
 0x3ba   : > { %s5263_s16 = smov %s2987_s17  ;;  %s5264_s17 = smov %s3058_s24 }
 0x3bb   : > { %s5265_s18 = smov %s3047_s21  ;;  %16 = sbr.rel (!%p14_p3) target bundleno = 3 (0x3), region = 89 }
 0x3c2   :  { %2285 = vsyncpa [#allocation3], 1 }
 0x3c3   :  { %2287 = vsyncpa [#allocation3 + $0x1], 1 }

</bundles_post_ra>
